<compile_context>
chip_gen: v7x
topology: tpu7x:2x2x1
jax: 0.10.0
libtpu: 0.0.40
codegen_flags: <defaults>
</compile_context>

<pallas_src>
import jax
import jax.numpy as jnp
from jax import lax
from jax.experimental import pallas as pl
from jax.experimental.pallas import tpu as pltpu

FEATURE_DIMENSION = 4  # stand-in for config.FEATURE_DIMENSION


def make_anet_prob_kernel(TB, N, F, E, H, L):
    """Build the Pallas kernel computing the full PointerNet forward."""
    NEG = -1e30
    f32 = jnp.float32

    # Static row offsets into the packed (., 4H) weight buffer.
    w4h_offs = []
    off = 0
    for l in range(L):
        in_dim = E if l == 0 else H
        w4h_offs.append((off, off + in_dim, off + in_dim + H))
        off += in_dim + H
    decx_start, decx_end = off, off + E              # decoder input_to_hidden
    dech_start, dech_end = decx_end, decx_end + H    # decoder hidden_to_hidden

    def kernel(state_ref, w_emb_ref, w4h_ref, b4h_ref, wh_ref, bh_ref, e_ref,
               ptr_ref, logp_ref, ent_ref):
        state = state_ref[...].astype(f32)                       # (TB, N, F)

        # ---- hoisted loop-invariant parameter loads / broadcasts ----
        W_emb = w_emb_ref[...]                                   # (F, E)
        b_emb = e_ref[0:1, :]                                    # (1, E)
        dec_in0 = e_ref[1:2, :]                                  # (1, E)
        wh_top = wh_ref[0:H, :]                                  # (H, 2H)
        W_hout_a = wh_top[:, 0:H]                                # W_hout[:H]
        W_ctx = wh_top[:, H:2 * H]                               # (H, H)
        W_hfused = wh_ref[H:2 * H, :]                            # (H, 2H) = [W_att | W_hout[H:]]
        b_hout = bh_ref[0:1, :]
        b_att = bh_ref[1:2, :]
        b_ctx = bh_ref[2:3, :]
        v_row = bh_ref[3:4, :][:, None, :]                       # (1, 1, H)
        W_dec_x = w4h_ref[decx_start:decx_end, :]                # (E, 4H)
        W_dec_h = w4h_ref[dech_start:dech_end, :]                # (H, 4H)
        b_dec = b4h_ref[L:L + 1, :]                              # (1, 4H)
        iota_n = lax.broadcasted_iota(jnp.int32, (TB, N), 1)
        iota_3d = lax.broadcasted_iota(jnp.int32, (1, N, 1), 1)

        # ---- per-position embedding: Linear(F -> E), one matmul ----
        emb_flat = (jnp.dot(state.reshape(TB * N, F), W_emb,
                            preferred_element_type=f32) + b_emb)   # (TB*N, E)

        # ---- encoder: L-layer unidirectional LSTM over the N positions ----
        x_seq_flat = emb_flat
        enc_out = None
        h = jnp.zeros((TB, H), f32)
        c = jnp.zeros((TB, H), f32)
        for l in range(L):
            ih_s, hh_s, w_end = w4h_offs[l]
            W_ih = w4h_ref[ih_s:hh_s, :]
            W_hh = w4h_ref[hh_s:w_end, :]
            b_l = b4h_ref[l:l + 1, :]
            # Input projection hoisted out of the time loop: one big matmul.
            xW = (jnp.dot(x_seq_flat, W_ih, preferred_element_type=f32)
                  + b_l).reshape(TB, N, 4 * H)
            h = jnp.zeros((TB, H), f32)
            c = jnp.zeros((TB, H), f32)
            # Encoder outputs collected in registers via constant-mask selects
            # (no VMEM scratch round-trip, no per-step partial stores).
            enc_out = jnp.zeros((TB, N, H), f32)
            for t in range(N):
                gates = xW[:, t, :] + jnp.dot(h, W_hh,
                                              preferred_element_type=f32)
                i_g = jax.nn.sigmoid(gates[:, 0 * H:1 * H])
                f_g = jax.nn.sigmoid(gates[:, 1 * H:2 * H])
                g_g = jnp.tanh(gates[:, 2 * H:3 * H])
                o_g = jax.nn.sigmoid(gates[:, 3 * H:4 * H])
                c = f_g * c + i_g * g_g
                h = o_g * jnp.tanh(c)
                enc_out = jnp.where(iota_3d == t, h[:, None, :], enc_out)
            if l + 1 < L:
                x_seq_flat = enc_out.reshape(TB * N, H)
        h_enc, c_enc = h, c
        enc_flat = enc_out.reshape(TB * N, H)

        # ---- loop-invariant pre-decoder projections (off the serial chain) --
        # Attention context projection (Conv1d(H,H,1) == Linear).
        ctx_flat = (jnp.dot(enc_flat, W_ctx, preferred_element_type=f32)
                    + b_ctx)                                     # (TB*N, H)
        # h_attn half of hidden_out hoisted: (ctx @ W_hout[:H]) per position.
        ctxWh = jnp.dot(ctx_flat, W_hout_a,
                        preferred_element_type=f32).reshape(TB, N, H)
        # b_att folded into ctx once (tanh(q + b_att + ctx) invariant).
        ctx_att = (ctx_flat + b_att).reshape(TB, N, H)
        # x-side half of the decoder gate matmul, for every candidate input,
        # with the gate bias folded in (one-hot selection preserves it).
        embW = (jnp.dot(emb_flat, W_dec_x, preferred_element_type=f32)
                + b_dec).reshape(TB, N, 4 * H)
        xW0 = jnp.dot(dec_in0, W_dec_x, preferred_element_type=f32) + b_dec

        # ---- pointer decoder: N greedy steps with masking ----
        h = h_enc
        c = c_enc
        xW_in = jnp.broadcast_to(xW0, (TB, 4 * H))
        mask = jnp.ones((TB, N), jnp.bool_)      # True = still selectable
        logp = jnp.zeros((TB, 1), f32)
        ent = jnp.zeros((TB, 1), f32)
        ptr_acc = jnp.zeros((TB, N), jnp.int32)

        for t in range(N):
            # Decoder LSTM-cell gates: x-side projection precomputed above;
            # only the K=H h-side matmul sits on the serial dependency chain.
            gates = xW_in + jnp.dot(h, W_dec_h, preferred_element_type=f32)
            i_g = jax.nn.sigmoid(gates[:, 0 * H:1 * H])
            f_g = jax.nn.sigmoid(gates[:, 1 * H:2 * H])
            g_g = jnp.tanh(gates[:, 2 * H:3 * H])
            o_g = jax.nn.sigmoid(gates[:, 3 * H:4 * H])
            c_t = f_g * c + i_g * g_g
            h_t = o_g * jnp.tanh(c_t)

            # Fused h_t matmuls: q = h_t @ W_att and h_t @ W_hout[H:] at once.
            qh = jnp.dot(h_t, W_hfused, preferred_element_type=f32)  # (TB, 2H)
            q = qh[:, 0:H]
            htWh = qh[:, H:2 * H]

            # Additive attention over encoder outputs.
            att = jnp.tanh(q[:, None, :] + ctx_att)              # (TB, N, H)
            logits = jnp.sum(att * v_row, axis=-1)               # (TB, N)
            logits = jnp.where(mask, logits, NEG)

            # Masked softmax (numerically stable).
            m = jnp.max(logits, axis=1, keepdims=True)
            e = jnp.where(mask, jnp.exp(logits - m), 0.0)
            s = jnp.sum(e, axis=1, keepdims=True)
            alpha = e / s                                        # (TB, N)
            log_alpha = (logits - m) - jnp.log(s)

            # Greedy pointer (argmax; lowest index on exact float ties).
            idx = jnp.min(jnp.where(logits >= m, iota_n, N),
                          axis=1, keepdims=True)                 # (TB, 1)
            onehot_b = iota_n == idx                             # (TB, N) bool
            onehot = onehot_b.astype(f32)

            logp = logp + jnp.sum(onehot * log_alpha, axis=1, keepdims=True)
            ent = ent + jnp.sum(jnp.where(mask, -alpha * log_alpha, 0.0),
                                axis=1, keepdims=True)

            # hidden_out with the W_hout matmul off the chain: alpha-weighted
            # sum of the precomputed ctxWh plus the fused h_t contribution.
            hWa = jnp.sum(ctxWh * alpha[:, :, None], axis=1)     # (TB, H)
            h = jnp.tanh(hWa + htWh + b_hout)
            c = c_t

            # Pointer kept in registers; single store after the loop.
            ptr_acc = jnp.where(iota_n == t, idx, ptr_acc)

            # Next decoder input's x-side gate projection = selected embW row.
            xW_in = jnp.sum(embW * onehot[:, :, None], axis=1)   # (TB, 4H)
            mask = jnp.logical_and(mask, jnp.logical_not(onehot_b))

        ptr_ref[...] = ptr_acc
        logp_ref[...] = logp
        ent_ref[...] = ent

    return kernel


def init_params(key, F, E, H, L):
    """Deterministic parameter init mirroring the PointerNet module shapes."""
    def uni(k, shape, bound):
        return jax.random.uniform(k, shape, jnp.float32, -bound, bound)

    keys = jax.random.split(key, 64)
    ki = iter(keys)
    params = []
    # embedding: Linear(F -> E)
    b = 1.0 / (F ** 0.5)
    params += [uni(next(ki), (F, E), b), uni(next(ki), (1, E), b)]
    # encoder LSTM layers
    bh = 1.0 / (H ** 0.5)
    for l in range(L):
        in_dim = E if l == 0 else H
        params += [uni(next(ki), (in_dim, 4 * H), bh),
                   uni(next(ki), (H, 4 * H), bh),
                   uni(next(ki), (1, 4 * H), bh),
                   uni(next(ki), (1, 4 * H), bh)]
    # decoder
    be = 1.0 / (E ** 0.5)
    b2 = 1.0 / ((2 * H) ** 0.5)
    params += [
        uni(next(ki), (1, E), 1.0),        # decoder_input0
        uni(next(ki), (E, 4 * H), be),     # input_to_hidden.W
        uni(next(ki), (1, 4 * H), be),     # input_to_hidden.b
        uni(next(ki), (H, 4 * H), bh),     # hidden_to_hidden.W
        uni(next(ki), (1, 4 * H), bh),     # hidden_to_hidden.b
        uni(next(ki), (2 * H, H), b2),     # hidden_out.W
        uni(next(ki), (1, H), b2),         # hidden_out.b
        uni(next(ki), (H, H), bh),         # attention input_linear.W
        uni(next(ki), (1, H), bh),         # attention input_linear.b
        uni(next(ki), (H, H), bh),         # attention context_linear (conv1d k=1)
        uni(next(ki), (1, H), bh),         # attention context_linear bias
        uni(next(ki), (1, H), bh),         # attention V
    ]
    return params


def pack_params(params, F, E, H, L):
    """Host-side packing of the 22 module parameters into 6 contiguous buffers."""
    it = iter(params)
    W_emb = next(it)
    b_emb = next(it)
    enc_w, enc_b = [], []
    for _ in range(L):
        W_ih = next(it); W_hh = next(it); b_ih = next(it); b_hh = next(it)
        enc_w += [W_ih, W_hh]
        enc_b.append(b_ih + b_hh)          # LSTM biases always appear summed
    dec_in0 = next(it)
    W_i2h = next(it); b_i2h = next(it)
    W_h2h = next(it); b_h2h = next(it)
    W_hout = next(it); b_hout = next(it)
    W_att = next(it); b_att = next(it)
    W_ctx = next(it); b_ctx = next(it)
    V = next(it)

    # Decoder x-side (E,4H) and h-side (H,4H) gate weights kept as separate
    # row blocks so the kernel can split the gate matmul.
    w4h = jnp.concatenate(enc_w + [W_i2h, W_h2h], axis=0)        # (., 4H)
    b4h = jnp.concatenate(enc_b + [b_i2h + b_h2h], axis=0)       # (L+1, 4H)
    # wh rows [0:H]  = [ W_hout[:H] | W_ctx       ]   (pre-decoder projections)
    # wh rows [H:2H] = [ W_att      | W_hout[H:]  ]   (fused per-step h_t matmul)
    wh = jnp.concatenate([
        jnp.concatenate([W_hout[:H, :], W_ctx], axis=1),
        jnp.concatenate([W_att, W_hout[H:, :]], axis=1),
    ], axis=0)                                                   # (2H, 2H)
    bh = jnp.concatenate([b_hout, b_att, b_ctx, V], axis=0)      # (4, H)
    e_pack = jnp.concatenate([b_emb, dec_in0], axis=0)           # (2, E)
    return W_emb, w4h, b4h, wh, bh, e_pack


def _pick_batch_tile(B):
    """Batch tile: fill the MXU sublanes / both v7x cores for big batches."""
    for tb in (256, 128, 64, 32, 16, 8):
        if B % tb == 0:
            return tb
    return B


def anet_prob_forward(state, params, *, E, H, L):
    """ANetProb.forward(state) with action=None (greedy pointer decoding)."""
    B, N, F = state.shape
    # Packed-weight slicing assumes sublane-aligned section offsets.
    assert E % 8 == 0 and H % 8 == 0, "E and H must be multiples of 8"

    packed = pack_params(params, F, E, H, L)
    TB = _pick_batch_tile(B)
    kernel = make_anet_prob_kernel(TB, N, F, E, H, L)

    def weight_spec(x):
        nd = x.ndim
        return pl.BlockSpec(x.shape, lambda b, _nd=nd: (0,) * _nd)

    in_specs = ([pl.BlockSpec((TB, N, F), lambda b: (b, 0, 0))]
                + [weight_spec(p) for p in packed])
    out_specs = (
        pl.BlockSpec((TB, N), lambda b: (b, 0)),
        pl.BlockSpec((TB, 1), lambda b: (b, 0)),
        pl.BlockSpec((TB, 1), lambda b: (b, 0)),
    )
    out_shape = (
        jax.ShapeDtypeStruct((B, N), jnp.int32),        # pointers
        jax.ShapeDtypeStruct((B, 1), jnp.float32),      # log_prob
        jax.ShapeDtypeStruct((B, 1), jnp.float32),      # entropy
    )
    pointer, logp, ent = pl.pallas_call(
        kernel,
        out_shape=out_shape,
        grid=(B // TB,),
        in_specs=in_specs,
        out_specs=out_specs,
        compiler_params=pltpu.CompilerParams(
            dimension_semantics=("parallel",)),
    )(state, *packed)

    log_prob = logp[:, 0]
    entropy = ent[:, 0]
    # TODO(synk): the `action is not None` teacher-forcing branch is not
    # exercised here (action=None path only), matching the default call.
    return pointer[0], ((log_prob, entropy), pointer)


if __name__ == "__main__":
    B, N = 2, 8                 # batch_size, max_carnum
    F = FEATURE_DIMENSION       # feature_num
    E, H, L = 16, 32, 1         # embedding_dim, hidden_dim, lstm_layers

    key = jax.random.PRNGKey(0)
    k_state, k_params = jax.random.split(key)
    state = jax.random.normal(k_state, (B, N, F), jnp.float32)
    params = init_params(k_params, F, E, H, L)

    out = anet_prob_forward(state, params, E=E, H=H, L=L)
    jax.block_until_ready(out)
    print("KERNEL_OK")
</pallas_src>

<mosaic_0001>
module attributes {stable_mosaic.version = 11 : i64} {
  func.func @kernel(%arg0: i32, %arg1: memref<2x8x4xf32, #tpu.memory_space<vmem>>, %arg2: memref<4x16xf32, #tpu.memory_space<vmem>>, %arg3: memref<96x128xf32, #tpu.memory_space<vmem>>, %arg4: memref<2x128xf32, #tpu.memory_space<vmem>>, %arg5: memref<64x64xf32, #tpu.memory_space<vmem>>, %arg6: memref<4x32xf32, #tpu.memory_space<vmem>>, %arg7: memref<2x16xf32, #tpu.memory_space<vmem>>, %arg8: memref<2x8xi32, #tpu.memory_space<vmem>>, %arg9: memref<2x1xf32, #tpu.memory_space<vmem>>, %arg10: memref<2x1xf32, #tpu.memory_space<vmem>>) attributes {dimension_semantics = [#tpu.dimension_semantics<parallel>], iteration_bounds = array<i64: 1>, scalar_prefetch = 0 : i64, scratch_operands = 0 : i64, tpu.core_type = #tpu.core_type<tc>, window_params = [{transform_indices = @transform_0, window_bounds = array<i64: 2, 8, 4>}, {pipeline_mode = #tpu.pipeline_mode<synchronous>, transform_indices = @transform_1, window_bounds = array<i64: 4, 16>}, {pipeline_mode = #tpu.pipeline_mode<synchronous>, transform_indices = @transform_2, window_bounds = array<i64: 96, 128>}, {pipeline_mode = #tpu.pipeline_mode<synchronous>, transform_indices = @transform_3, window_bounds = array<i64: 2, 128>}, {pipeline_mode = #tpu.pipeline_mode<synchronous>, transform_indices = @transform_4, window_bounds = array<i64: 64, 64>}, {pipeline_mode = #tpu.pipeline_mode<synchronous>, transform_indices = @transform_5, window_bounds = array<i64: 4, 32>}, {pipeline_mode = #tpu.pipeline_mode<synchronous>, transform_indices = @transform_6, window_bounds = array<i64: 2, 16>}, {transform_indices = @transform_7, window_bounds = array<i64: 2, 8>}, {transform_indices = @transform_8, window_bounds = array<i64: 2, 1>}, {transform_indices = @transform_9, window_bounds = array<i64: 2, 1>}]} {
    %c0 = arith.constant 0 : index
    %c0_0 = arith.constant 0 : index
    %c0_1 = arith.constant 0 : index
    %0 = vector.load %arg1[%c0, %c0_0, %c0_1] : memref<2x8x4xf32, #tpu.memory_space<vmem>>, vector<2x8x4xf32>
    %c0_2 = arith.constant 0 : index
    %c0_3 = arith.constant 0 : index
    %1 = vector.load %arg2[%c0_2, %c0_3] : memref<4x16xf32, #tpu.memory_space<vmem>>, vector<4x16xf32>
    %c0_4 = arith.constant 0 : index
    %c0_5 = arith.constant 0 : index
    %2 = vector.load %arg7[%c0_4, %c0_5] : memref<2x16xf32, #tpu.memory_space<vmem>>, vector<1x16xf32>
    %c1 = arith.constant 1 : index
    %c0_6 = arith.constant 0 : index
    %3 = vector.load %arg7[%c1, %c0_6] : memref<2x16xf32, #tpu.memory_space<vmem>>, vector<1x16xf32>
    %c0_7 = arith.constant 0 : index
    %c0_8 = arith.constant 0 : index
    %4 = vector.load %arg5[%c0_7, %c0_8] : memref<64x64xf32, #tpu.memory_space<vmem>>, vector<32x64xf32>
    %5 = vector.extract_strided_slice %4 {offsets = [0, 0], sizes = [32, 32], strides = [1, 1]} : vector<32x64xf32> to vector<32x32xf32>
    %6 = vector.extract_strided_slice %4 {offsets = [0, 32], sizes = [32, 32], strides = [1, 1]} : vector<32x64xf32> to vector<32x32xf32>
    %c32 = arith.constant 32 : index
    %c0_9 = arith.constant 0 : index
    %7 = vector.load %arg5[%c32, %c0_9] : memref<64x64xf32, #tpu.memory_space<vmem>>, vector<32x64xf32>
    %c0_10 = arith.constant 0 : index
    %c0_11 = arith.constant 0 : index
    %8 = vector.load %arg6[%c0_10, %c0_11] : memref<4x32xf32, #tpu.memory_space<vmem>>, vector<1x32xf32>
    %c1_12 = arith.constant 1 : index
    %c0_13 = arith.constant 0 : index
    %9 = vector.load %arg6[%c1_12, %c0_13] : memref<4x32xf32, #tpu.memory_space<vmem>>, vector<1x32xf32>
    %c2 = arith.constant 2 : index
    %c0_14 = arith.constant 0 : index
    %10 = vector.load %arg6[%c2, %c0_14] : memref<4x32xf32, #tpu.memory_space<vmem>>, vector<1x32xf32>
    %c3 = arith.constant 3 : index
    %c0_15 = arith.constant 0 : index
    %11 = vector.load %arg6[%c3, %c0_15] : memref<4x32xf32, #tpu.memory_space<vmem>>, vector<1x32xf32>
    %12 = vector.shape_cast %11 : vector<1x32xf32> to vector<1x1x32xf32>
    %c48 = arith.constant 48 : index
    %c0_16 = arith.constant 0 : index
    %13 = vector.load %arg3[%c48, %c0_16] : memref<96x128xf32, #tpu.memory_space<vmem>>, vector<16x128xf32>
    %c64 = arith.constant 64 : index
    %c0_17 = arith.constant 0 : index
    %14 = vector.load %arg3[%c64, %c0_17] : memref<96x128xf32, #tpu.memory_space<vmem>>, vector<32x128xf32>
    %c1_18 = arith.constant 1 : index
    %c0_19 = arith.constant 0 : index
    %15 = vector.load %arg4[%c1_18, %c0_19] : memref<2x128xf32, #tpu.memory_space<vmem>>, vector<1x128xf32>
    %16 = tpu.iota {dimensions = array<i32: 1>} : vector<2x8xi32>
    %17 = tpu.iota {dimensions = array<i32: 1>} : vector<1x8x1xi32>
    %18 = vector.shape_cast %0 : vector<2x8x4xf32> to vector<16x4xf32>
    %cst = arith.constant dense<0.000000e+00> : vector<16x16xf32>
    %19 = tpu.matmul %18, %1, %cst {dimension_numbers = #tpu.dot_dimension_numbers<[1], [0], [0], [1], [0, 0, 1, 1], [], []>} : vector<16x4xf32>, vector<4x16xf32>, vector<16x16xf32> -> vector<16x16xf32>
    %20 = vector.broadcast %2 : vector<1x16xf32> to vector<16x16xf32>
    %21 = arith.addf %19, %20 : vector<16x16xf32>
    %c0_20 = arith.constant 0 : index
    %c0_21 = arith.constant 0 : index
    %22 = vector.load %arg3[%c0_20, %c0_21] : memref<96x128xf32, #tpu.memory_space<vmem>>, vector<16x128xf32>
    %c16 = arith.constant 16 : index
    %c0_22 = arith.constant 0 : index
    %23 = vector.load %arg3[%c16, %c0_22] : memref<96x128xf32, #tpu.memory_space<vmem>>, vector<32x128xf32>
    %c0_23 = arith.constant 0 : index
    %c0_24 = arith.constant 0 : index
    %24 = vector.load %arg4[%c0_23, %c0_24] : memref<2x128xf32, #tpu.memory_space<vmem>>, vector<1x128xf32>
    %cst_25 = arith.constant dense<0.000000e+00> : vector<16x128xf32>
    %25 = tpu.matmul %21, %22, %cst_25 {dimension_numbers = #tpu.dot_dimension_numbers<[1], [0], [0], [1], [0, 0, 1, 1], [], []>} : vector<16x16xf32>, vector<16x128xf32>, vector<16x128xf32> -> vector<16x128xf32>
    %26 = vector.broadcast %24 : vector<1x128xf32> to vector<16x128xf32>
    %27 = arith.addf %25, %26 : vector<16x128xf32>
    %28 = vector.shape_cast %27 : vector<16x128xf32> to vector<2x8x128xf32>
    %cst_26 = arith.constant 0.000000e+00 : f32
    %29 = vector.broadcast %cst_26 : f32 to vector<2x32xf32>
    %cst_27 = arith.constant 0.000000e+00 : f32
    %30 = vector.broadcast %cst_27 : f32 to vector<2x32xf32>
    %cst_28 = arith.constant 0.000000e+00 : f32
    %31 = vector.broadcast %cst_28 : f32 to vector<2x8x32xf32>
    %32 = vector.extract_strided_slice %28 {offsets = [0, 0, 0], sizes = [2, 1, 128], strides = [1, 1, 1]} : vector<2x8x128xf32> to vector<2x1x128xf32>
    %33 = vector.shape_cast %32 : vector<2x1x128xf32> to vector<2x128xf32>
    %cst_29 = arith.constant dense<0.000000e+00> : vector<2x128xf32>
    %34 = tpu.matmul %29, %23, %cst_29 {dimension_numbers = #tpu.dot_dimension_numbers<[1], [0], [0], [1], [0, 0, 1, 1], [], []>} : vector<2x32xf32>, vector<32x128xf32>, vector<2x128xf32> -> vector<2x128xf32>
    %35 = arith.addf %33, %34 : vector<2x128xf32>
    %36 = vector.extract_strided_slice %35 {offsets = [0, 0], sizes = [2, 32], strides = [1, 1]} : vector<2x128xf32> to vector<2x32xf32>
    %37 = arith.negf %36 : vector<2x32xf32>
    %38 = math.exp %37 : vector<2x32xf32>
    %cst_30 = arith.constant 1.000000e+00 : f32
    %39 = vector.broadcast %cst_30 : f32 to vector<2x32xf32>
    %40 = arith.addf %39, %38 : vector<2x32xf32>
    %41 = arith.divf %39, %40 : vector<2x32xf32>
    %42 = vector.extract_strided_slice %35 {offsets = [0, 32], sizes = [2, 32], strides = [1, 1]} : vector<2x128xf32> to vector<2x32xf32>
    %43 = arith.negf %42 : vector<2x32xf32>
    %44 = math.exp %43 : vector<2x32xf32>
    %cst_31 = arith.constant 1.000000e+00 : f32
    %45 = vector.broadcast %cst_31 : f32 to vector<2x32xf32>
    %46 = arith.addf %45, %44 : vector<2x32xf32>
    %47 = arith.divf %45, %46 : vector<2x32xf32>
    %48 = vector.extract_strided_slice %35 {offsets = [0, 64], sizes = [2, 32], strides = [1, 1]} : vector<2x128xf32> to vector<2x32xf32>
    %49 = math.tanh %48 : vector<2x32xf32>
    %50 = vector.extract_strided_slice %35 {offsets = [0, 96], sizes = [2, 32], strides = [1, 1]} : vector<2x128xf32> to vector<2x32xf32>
    %51 = arith.negf %50 : vector<2x32xf32>
    %52 = math.exp %51 : vector<2x32xf32>
    %cst_32 = arith.constant 1.000000e+00 : f32
    %53 = vector.broadcast %cst_32 : f32 to vector<2x32xf32>
    %54 = arith.addf %53, %52 : vector<2x32xf32>
    %55 = arith.divf %53, %54 : vector<2x32xf32>
    %56 = arith.mulf %47, %30 : vector<2x32xf32>
    %57 = arith.mulf %41, %49 : vector<2x32xf32>
    %58 = arith.addf %56, %57 : vector<2x32xf32>
    %59 = math.tanh %58 : vector<2x32xf32>
    %60 = arith.mulf %55, %59 : vector<2x32xf32>
    %c0_i32 = arith.constant 0 : i32
    %61 = vector.broadcast %c0_i32 : i32 to vector<1x8x1xi32>
    %62 = arith.cmpi eq, %17, %61 : vector<1x8x1xi32>
    %63 = vector.shape_cast %60 : vector<2x32xf32> to vector<2x1x32xf32>
    %64 = vector.shape_cast %62 : vector<1x8x1xi1> to vector<1x8x1xi1>
    %65 = vector.broadcast %64 : vector<1x8x1xi1> to vector<2x8x32xi1>
    %66 = vector.shape_cast %63 : vector<2x1x32xf32> to vector<2x1x32xf32>
    %67 = vector.broadcast %66 : vector<2x1x32xf32> to vector<2x8x32xf32>
    %68 = arith.select %65, %67, %31 : vector<2x8x32xi1>, vector<2x8x32xf32>
    %69 = vector.extract_strided_slice %28 {offsets = [0, 1, 0], sizes = [2, 1, 128], strides = [1, 1, 1]} : vector<2x8x128xf32> to vector<2x1x128xf32>
    %70 = vector.shape_cast %69 : vector<2x1x128xf32> to vector<2x128xf32>
    %cst_33 = arith.constant dense<0.000000e+00> : vector<2x128xf32>
    %71 = tpu.matmul %60, %23, %cst_33 {dimension_numbers = #tpu.dot_dimension_numbers<[1], [0], [0], [1], [0, 0, 1, 1], [], []>} : vector<2x32xf32>, vector<32x128xf32>, vector<2x128xf32> -> vector<2x128xf32>
    %72 = arith.addf %70, %71 : vector<2x128xf32>
    %73 = vector.extract_strided_slice %72 {offsets = [0, 0], sizes = [2, 32], strides = [1, 1]} : vector<2x128xf32> to vector<2x32xf32>
    %74 = arith.negf %73 : vector<2x32xf32>
    %75 = math.exp %74 : vector<2x32xf32>
    %cst_34 = arith.constant 1.000000e+00 : f32
    %76 = vector.broadcast %cst_34 : f32 to vector<2x32xf32>
    %77 = arith.addf %76, %75 : vector<2x32xf32>
    %78 = arith.divf %76, %77 : vector<2x32xf32>
    %79 = vector.extract_strided_slice %72 {offsets = [0, 32], sizes = [2, 32], strides = [1, 1]} : vector<2x128xf32> to vector<2x32xf32>
    %80 = arith.negf %79 : vector<2x32xf32>
    %81 = math.exp %80 : vector<2x32xf32>
    %cst_35 = arith.constant 1.000000e+00 : f32
    %82 = vector.broadcast %cst_35 : f32 to vector<2x32xf32>
    %83 = arith.addf %82, %81 : vector<2x32xf32>
    %84 = arith.divf %82, %83 : vector<2x32xf32>
    %85 = vector.extract_strided_slice %72 {offsets = [0, 64], sizes = [2, 32], strides = [1, 1]} : vector<2x128xf32> to vector<2x32xf32>
    %86 = math.tanh %85 : vector<2x32xf32>
    %87 = vector.extract_strided_slice %72 {offsets = [0, 96], sizes = [2, 32], strides = [1, 1]} : vector<2x128xf32> to vector<2x32xf32>
    %88 = arith.negf %87 : vector<2x32xf32>
    %89 = math.exp %88 : vector<2x32xf32>
    %cst_36 = arith.constant 1.000000e+00 : f32
    %90 = vector.broadcast %cst_36 : f32 to vector<2x32xf32>
    %91 = arith.addf %90, %89 : vector<2x32xf32>
    %92 = arith.divf %90, %91 : vector<2x32xf32>
    %93 = arith.mulf %84, %58 : vector<2x32xf32>
    %94 = arith.mulf %78, %86 : vector<2x32xf32>
    %95 = arith.addf %93, %94 : vector<2x32xf32>
    %96 = math.tanh %95 : vector<2x32xf32>
    %97 = arith.mulf %92, %96 : vector<2x32xf32>
    %c1_i32 = arith.constant 1 : i32
    %98 = vector.broadcast %c1_i32 : i32 to vector<1x8x1xi32>
    %99 = arith.cmpi eq, %17, %98 : vector<1x8x1xi32>
    %100 = vector.shape_cast %97 : vector<2x32xf32> to vector<2x1x32xf32>
    %101 = vector.shape_cast %99 : vector<1x8x1xi1> to vector<1x8x1xi1>
    %102 = vector.broadcast %101 : vector<1x8x1xi1> to vector<2x8x32xi1>
    %103 = vector.shape_cast %100 : vector<2x1x32xf32> to vector<2x1x32xf32>
    %104 = vector.broadcast %103 : vector<2x1x32xf32> to vector<2x8x32xf32>
    %105 = arith.select %102, %104, %68 : vector<2x8x32xi1>, vector<2x8x32xf32>
    %106 = vector.extract_strided_slice %28 {offsets = [0, 2, 0], sizes = [2, 1, 128], strides = [1, 1, 1]} : vector<2x8x128xf32> to vector<2x1x128xf32>
    %107 = vector.shape_cast %106 : vector<2x1x128xf32> to vector<2x128xf32>
    %cst_37 = arith.constant dense<0.000000e+00> : vector<2x128xf32>
    %108 = tpu.matmul %97, %23, %cst_37 {dimension_numbers = #tpu.dot_dimension_numbers<[1], [0], [0], [1], [0, 0, 1, 1], [], []>} : vector<2x32xf32>, vector<32x128xf32>, vector<2x128xf32> -> vector<2x128xf32>
    %109 = arith.addf %107, %108 : vector<2x128xf32>
    %110 = vector.extract_strided_slice %109 {offsets = [0, 0], sizes = [2, 32], strides = [1, 1]} : vector<2x128xf32> to vector<2x32xf32>
    %111 = arith.negf %110 : vector<2x32xf32>
    %112 = math.exp %111 : vector<2x32xf32>
    %cst_38 = arith.constant 1.000000e+00 : f32
    %113 = vector.broadcast %cst_38 : f32 to vector<2x32xf32>
    %114 = arith.addf %113, %112 : vector<2x32xf32>
    %115 = arith.divf %113, %114 : vector<2x32xf32>
    %116 = vector.extract_strided_slice %109 {offsets = [0, 32], sizes = [2, 32], strides = [1, 1]} : vector<2x128xf32> to vector<2x32xf32>
    %117 = arith.negf %116 : vector<2x32xf32>
    %118 = math.exp %117 : vector<2x32xf32>
    %cst_39 = arith.constant 1.000000e+00 : f32
    %119 = vector.broadcast %cst_39 : f32 to vector<2x32xf32>
    %120 = arith.addf %119, %118 : vector<2x32xf32>
    %121 = arith.divf %119, %120 : vector<2x32xf32>
    %122 = vector.extract_strided_slice %109 {offsets = [0, 64], sizes = [2, 32], strides = [1, 1]} : vector<2x128xf32> to vector<2x32xf32>
    %123 = math.tanh %122 : vector<2x32xf32>
    %124 = vector.extract_strided_slice %109 {offsets = [0, 96], sizes = [2, 32], strides = [1, 1]} : vector<2x128xf32> to vector<2x32xf32>
    %125 = arith.negf %124 : vector<2x32xf32>
    %126 = math.exp %125 : vector<2x32xf32>
    %cst_40 = arith.constant 1.000000e+00 : f32
    %127 = vector.broadcast %cst_40 : f32 to vector<2x32xf32>
    %128 = arith.addf %127, %126 : vector<2x32xf32>
    %129 = arith.divf %127, %128 : vector<2x32xf32>
    %130 = arith.mulf %121, %95 : vector<2x32xf32>
    %131 = arith.mulf %115, %123 : vector<2x32xf32>
    %132 = arith.addf %130, %131 : vector<2x32xf32>
    %133 = math.tanh %132 : vector<2x32xf32>
    %134 = arith.mulf %129, %133 : vector<2x32xf32>
    %c2_i32 = arith.constant 2 : i32
    %135 = vector.broadcast %c2_i32 : i32 to vector<1x8x1xi32>
    %136 = arith.cmpi eq, %17, %135 : vector<1x8x1xi32>
    %137 = vector.shape_cast %134 : vector<2x32xf32> to vector<2x1x32xf32>
    %138 = vector.shape_cast %136 : vector<1x8x1xi1> to vector<1x8x1xi1>
    %139 = vector.broadcast %138 : vector<1x8x1xi1> to vector<2x8x32xi1>
    %140 = vector.shape_cast %137 : vector<2x1x32xf32> to vector<2x1x32xf32>
    %141 = vector.broadcast %140 : vector<2x1x32xf32> to vector<2x8x32xf32>
    %142 = arith.select %139, %141, %105 : vector<2x8x32xi1>, vector<2x8x32xf32>
    %143 = vector.extract_strided_slice %28 {offsets = [0, 3, 0], sizes = [2, 1, 128], strides = [1, 1, 1]} : vector<2x8x128xf32> to vector<2x1x128xf32>
    %144 = vector.shape_cast %143 : vector<2x1x128xf32> to vector<2x128xf32>
    %cst_41 = arith.constant dense<0.000000e+00> : vector<2x128xf32>
    %145 = tpu.matmul %134, %23, %cst_41 {dimension_numbers = #tpu.dot_dimension_numbers<[1], [0], [0], [1], [0, 0, 1, 1], [], []>} : vector<2x32xf32>, vector<32x128xf32>, vector<2x128xf32> -> vector<2x128xf32>
    %146 = arith.addf %144, %145 : vector<2x128xf32>
    %147 = vector.extract_strided_slice %146 {offsets = [0, 0], sizes = [2, 32], strides = [1, 1]} : vector<2x128xf32> to vector<2x32xf32>
    %148 = arith.negf %147 : vector<2x32xf32>
    %149 = math.exp %148 : vector<2x32xf32>
    %cst_42 = arith.constant 1.000000e+00 : f32
    %150 = vector.broadcast %cst_42 : f32 to vector<2x32xf32>
    %151 = arith.addf %150, %149 : vector<2x32xf32>
    %152 = arith.divf %150, %151 : vector<2x32xf32>
    %153 = vector.extract_strided_slice %146 {offsets = [0, 32], sizes = [2, 32], strides = [1, 1]} : vector<2x128xf32> to vector<2x32xf32>
    %154 = arith.negf %153 : vector<2x32xf32>
    %155 = math.exp %154 : vector<2x32xf32>
    %cst_43 = arith.constant 1.000000e+00 : f32
    %156 = vector.broadcast %cst_43 : f32 to vector<2x32xf32>
    %157 = arith.addf %156, %155 : vector<2x32xf32>
    %158 = arith.divf %156, %157 : vector<2x32xf32>
    %159 = vector.extract_strided_slice %146 {offsets = [0, 64], sizes = [2, 32], strides = [1, 1]} : vector<2x128xf32> to vector<2x32xf32>
    %160 = math.tanh %159 : vector<2x32xf32>
    %161 = vector.extract_strided_slice %146 {offsets = [0, 96], sizes = [2, 32], strides = [1, 1]} : vector<2x128xf32> to vector<2x32xf32>
    %162 = arith.negf %161 : vector<2x32xf32>
    %163 = math.exp %162 : vector<2x32xf32>
    %cst_44 = arith.constant 1.000000e+00 : f32
    %164 = vector.broadcast %cst_44 : f32 to vector<2x32xf32>
    %165 = arith.addf %164, %163 : vector<2x32xf32>
    %166 = arith.divf %164, %165 : vector<2x32xf32>
    %167 = arith.mulf %158, %132 : vector<2x32xf32>
    %168 = arith.mulf %152, %160 : vector<2x32xf32>
    %169 = arith.addf %167, %168 : vector<2x32xf32>
    %170 = math.tanh %169 : vector<2x32xf32>
    %171 = arith.mulf %166, %170 : vector<2x32xf32>
    %c3_i32 = arith.constant 3 : i32
    %172 = vector.broadcast %c3_i32 : i32 to vector<1x8x1xi32>
    %173 = arith.cmpi eq, %17, %172 : vector<1x8x1xi32>
    %174 = vector.shape_cast %171 : vector<2x32xf32> to vector<2x1x32xf32>
    %175 = vector.shape_cast %173 : vector<1x8x1xi1> to vector<1x8x1xi1>
    %176 = vector.broadcast %175 : vector<1x8x1xi1> to vector<2x8x32xi1>
    %177 = vector.shape_cast %174 : vector<2x1x32xf32> to vector<2x1x32xf32>
    %178 = vector.broadcast %177 : vector<2x1x32xf32> to vector<2x8x32xf32>
    %179 = arith.select %176, %178, %142 : vector<2x8x32xi1>, vector<2x8x32xf32>
    %180 = vector.extract_strided_slice %28 {offsets = [0, 4, 0], sizes = [2, 1, 128], strides = [1, 1, 1]} : vector<2x8x128xf32> to vector<2x1x128xf32>
    %181 = vector.shape_cast %180 : vector<2x1x128xf32> to vector<2x128xf32>
    %cst_45 = arith.constant dense<0.000000e+00> : vector<2x128xf32>
    %182 = tpu.matmul %171, %23, %cst_45 {dimension_numbers = #tpu.dot_dimension_numbers<[1], [0], [0], [1], [0, 0, 1, 1], [], []>} : vector<2x32xf32>, vector<32x128xf32>, vector<2x128xf32> -> vector<2x128xf32>
    %183 = arith.addf %181, %182 : vector<2x128xf32>
    %184 = vector.extract_strided_slice %183 {offsets = [0, 0], sizes = [2, 32], strides = [1, 1]} : vector<2x128xf32> to vector<2x32xf32>
    %185 = arith.negf %184 : vector<2x32xf32>
    %186 = math.exp %185 : vector<2x32xf32>
    %cst_46 = arith.constant 1.000000e+00 : f32
    %187 = vector.broadcast %cst_46 : f32 to vector<2x32xf32>
    %188 = arith.addf %187, %186 : vector<2x32xf32>
    %189 = arith.divf %187, %188 : vector<2x32xf32>
    %190 = vector.extract_strided_slice %183 {offsets = [0, 32], sizes = [2, 32], strides = [1, 1]} : vector<2x128xf32> to vector<2x32xf32>
    %191 = arith.negf %190 : vector<2x32xf32>
    %192 = math.exp %191 : vector<2x32xf32>
    %cst_47 = arith.constant 1.000000e+00 : f32
    %193 = vector.broadcast %cst_47 : f32 to vector<2x32xf32>
    %194 = arith.addf %193, %192 : vector<2x32xf32>
    %195 = arith.divf %193, %194 : vector<2x32xf32>
    %196 = vector.extract_strided_slice %183 {offsets = [0, 64], sizes = [2, 32], strides = [1, 1]} : vector<2x128xf32> to vector<2x32xf32>
    %197 = math.tanh %196 : vector<2x32xf32>
    %198 = vector.extract_strided_slice %183 {offsets = [0, 96], sizes = [2, 32], strides = [1, 1]} : vector<2x128xf32> to vector<2x32xf32>
    %199 = arith.negf %198 : vector<2x32xf32>
    %200 = math.exp %199 : vector<2x32xf32>
    %cst_48 = arith.constant 1.000000e+00 : f32
    %201 = vector.broadcast %cst_48 : f32 to vector<2x32xf32>
    %202 = arith.addf %201, %200 : vector<2x32xf32>
    %203 = arith.divf %201, %202 : vector<2x32xf32>
    %204 = arith.mulf %195, %169 : vector<2x32xf32>
    %205 = arith.mulf %189, %197 : vector<2x32xf32>
    %206 = arith.addf %204, %205 : vector<2x32xf32>
    %207 = math.tanh %206 : vector<2x32xf32>
    %208 = arith.mulf %203, %207 : vector<2x32xf32>
    %c4_i32 = arith.constant 4 : i32
    %209 = vector.broadcast %c4_i32 : i32 to vector<1x8x1xi32>
    %210 = arith.cmpi eq, %17, %209 : vector<1x8x1xi32>
    %211 = vector.shape_cast %208 : vector<2x32xf32> to vector<2x1x32xf32>
    %212 = vector.shape_cast %210 : vector<1x8x1xi1> to vector<1x8x1xi1>
    %213 = vector.broadcast %212 : vector<1x8x1xi1> to vector<2x8x32xi1>
    %214 = vector.shape_cast %211 : vector<2x1x32xf32> to vector<2x1x32xf32>
    %215 = vector.broadcast %214 : vector<2x1x32xf32> to vector<2x8x32xf32>
    %216 = arith.select %213, %215, %179 : vector<2x8x32xi1>, vector<2x8x32xf32>
    %217 = vector.extract_strided_slice %28 {offsets = [0, 5, 0], sizes = [2, 1, 128], strides = [1, 1, 1]} : vector<2x8x128xf32> to vector<2x1x128xf32>
    %218 = vector.shape_cast %217 : vector<2x1x128xf32> to vector<2x128xf32>
    %cst_49 = arith.constant dense<0.000000e+00> : vector<2x128xf32>
    %219 = tpu.matmul %208, %23, %cst_49 {dimension_numbers = #tpu.dot_dimension_numbers<[1], [0], [0], [1], [0, 0, 1, 1], [], []>} : vector<2x32xf32>, vector<32x128xf32>, vector<2x128xf32> -> vector<2x128xf32>
    %220 = arith.addf %218, %219 : vector<2x128xf32>
    %221 = vector.extract_strided_slice %220 {offsets = [0, 0], sizes = [2, 32], strides = [1, 1]} : vector<2x128xf32> to vector<2x32xf32>
    %222 = arith.negf %221 : vector<2x32xf32>
    %223 = math.exp %222 : vector<2x32xf32>
    %cst_50 = arith.constant 1.000000e+00 : f32
    %224 = vector.broadcast %cst_50 : f32 to vector<2x32xf32>
    %225 = arith.addf %224, %223 : vector<2x32xf32>
    %226 = arith.divf %224, %225 : vector<2x32xf32>
    %227 = vector.extract_strided_slice %220 {offsets = [0, 32], sizes = [2, 32], strides = [1, 1]} : vector<2x128xf32> to vector<2x32xf32>
    %228 = arith.negf %227 : vector<2x32xf32>
    %229 = math.exp %228 : vector<2x32xf32>
    %cst_51 = arith.constant 1.000000e+00 : f32
    %230 = vector.broadcast %cst_51 : f32 to vector<2x32xf32>
    %231 = arith.addf %230, %229 : vector<2x32xf32>
    %232 = arith.divf %230, %231 : vector<2x32xf32>
    %233 = vector.extract_strided_slice %220 {offsets = [0, 64], sizes = [2, 32], strides = [1, 1]} : vector<2x128xf32> to vector<2x32xf32>
    %234 = math.tanh %233 : vector<2x32xf32>
    %235 = vector.extract_strided_slice %220 {offsets = [0, 96], sizes = [2, 32], strides = [1, 1]} : vector<2x128xf32> to vector<2x32xf32>
    %236 = arith.negf %235 : vector<2x32xf32>
    %237 = math.exp %236 : vector<2x32xf32>
    %cst_52 = arith.constant 1.000000e+00 : f32
    %238 = vector.broadcast %cst_52 : f32 to vector<2x32xf32>
    %239 = arith.addf %238, %237 : vector<2x32xf32>
    %240 = arith.divf %238, %239 : vector<2x32xf32>
    %241 = arith.mulf %232, %206 : vector<2x32xf32>
    %242 = arith.mulf %226, %234 : vector<2x32xf32>
    %243 = arith.addf %241, %242 : vector<2x32xf32>
    %244 = math.tanh %243 : vector<2x32xf32>
    %245 = arith.mulf %240, %244 : vector<2x32xf32>
    %c5_i32 = arith.constant 5 : i32
    %246 = vector.broadcast %c5_i32 : i32 to vector<1x8x1xi32>
    %247 = arith.cmpi eq, %17, %246 : vector<1x8x1xi32>
    %248 = vector.shape_cast %245 : vector<2x32xf32> to vector<2x1x32xf32>
    %249 = vector.shape_cast %247 : vector<1x8x1xi1> to vector<1x8x1xi1>
    %250 = vector.broadcast %249 : vector<1x8x1xi1> to vector<2x8x32xi1>
    %251 = vector.shape_cast %248 : vector<2x1x32xf32> to vector<2x1x32xf32>
    %252 = vector.broadcast %251 : vector<2x1x32xf32> to vector<2x8x32xf32>
    %253 = arith.select %250, %252, %216 : vector<2x8x32xi1>, vector<2x8x32xf32>
    %254 = vector.extract_strided_slice %28 {offsets = [0, 6, 0], sizes = [2, 1, 128], strides = [1, 1, 1]} : vector<2x8x128xf32> to vector<2x1x128xf32>
    %255 = vector.shape_cast %254 : vector<2x1x128xf32> to vector<2x128xf32>
    %cst_53 = arith.constant dense<0.000000e+00> : vector<2x128xf32>
    %256 = tpu.matmul %245, %23, %cst_53 {dimension_numbers = #tpu.dot_dimension_numbers<[1], [0], [0], [1], [0, 0, 1, 1], [], []>} : vector<2x32xf32>, vector<32x128xf32>, vector<2x128xf32> -> vector<2x128xf32>
    %257 = arith.addf %255, %256 : vector<2x128xf32>
    %258 = vector.extract_strided_slice %257 {offsets = [0, 0], sizes = [2, 32], strides = [1, 1]} : vector<2x128xf32> to vector<2x32xf32>
    %259 = arith.negf %258 : vector<2x32xf32>
    %260 = math.exp %259 : vector<2x32xf32>
    %cst_54 = arith.constant 1.000000e+00 : f32
    %261 = vector.broadcast %cst_54 : f32 to vector<2x32xf32>
    %262 = arith.addf %261, %260 : vector<2x32xf32>
    %263 = arith.divf %261, %262 : vector<2x32xf32>
    %264 = vector.extract_strided_slice %257 {offsets = [0, 32], sizes = [2, 32], strides = [1, 1]} : vector<2x128xf32> to vector<2x32xf32>
    %265 = arith.negf %264 : vector<2x32xf32>
    %266 = math.exp %265 : vector<2x32xf32>
    %cst_55 = arith.constant 1.000000e+00 : f32
    %267 = vector.broadcast %cst_55 : f32 to vector<2x32xf32>
    %268 = arith.addf %267, %266 : vector<2x32xf32>
    %269 = arith.divf %267, %268 : vector<2x32xf32>
    %270 = vector.extract_strided_slice %257 {offsets = [0, 64], sizes = [2, 32], strides = [1, 1]} : vector<2x128xf32> to vector<2x32xf32>
    %271 = math.tanh %270 : vector<2x32xf32>
    %272 = vector.extract_strided_slice %257 {offsets = [0, 96], sizes = [2, 32], strides = [1, 1]} : vector<2x128xf32> to vector<2x32xf32>
    %273 = arith.negf %272 : vector<2x32xf32>
    %274 = math.exp %273 : vector<2x32xf32>
    %cst_56 = arith.constant 1.000000e+00 : f32
    %275 = vector.broadcast %cst_56 : f32 to vector<2x32xf32>
    %276 = arith.addf %275, %274 : vector<2x32xf32>
    %277 = arith.divf %275, %276 : vector<2x32xf32>
    %278 = arith.mulf %269, %243 : vector<2x32xf32>
    %279 = arith.mulf %263, %271 : vector<2x32xf32>
    %280 = arith.addf %278, %279 : vector<2x32xf32>
    %281 = math.tanh %280 : vector<2x32xf32>
    %282 = arith.mulf %277, %281 : vector<2x32xf32>
    %c6_i32 = arith.constant 6 : i32
    %283 = vector.broadcast %c6_i32 : i32 to vector<1x8x1xi32>
    %284 = arith.cmpi eq, %17, %283 : vector<1x8x1xi32>
    %285 = vector.shape_cast %282 : vector<2x32xf32> to vector<2x1x32xf32>
    %286 = vector.shape_cast %284 : vector<1x8x1xi1> to vector<1x8x1xi1>
    %287 = vector.broadcast %286 : vector<1x8x1xi1> to vector<2x8x32xi1>
    %288 = vector.shape_cast %285 : vector<2x1x32xf32> to vector<2x1x32xf32>
    %289 = vector.broadcast %288 : vector<2x1x32xf32> to vector<2x8x32xf32>
    %290 = arith.select %287, %289, %253 : vector<2x8x32xi1>, vector<2x8x32xf32>
    %291 = vector.extract_strided_slice %28 {offsets = [0, 7, 0], sizes = [2, 1, 128], strides = [1, 1, 1]} : vector<2x8x128xf32> to vector<2x1x128xf32>
    %292 = vector.shape_cast %291 : vector<2x1x128xf32> to vector<2x128xf32>
    %cst_57 = arith.constant dense<0.000000e+00> : vector<2x128xf32>
    %293 = tpu.matmul %282, %23, %cst_57 {dimension_numbers = #tpu.dot_dimension_numbers<[1], [0], [0], [1], [0, 0, 1, 1], [], []>} : vector<2x32xf32>, vector<32x128xf32>, vector<2x128xf32> -> vector<2x128xf32>
    %294 = arith.addf %292, %293 : vector<2x128xf32>
    %295 = vector.extract_strided_slice %294 {offsets = [0, 0], sizes = [2, 32], strides = [1, 1]} : vector<2x128xf32> to vector<2x32xf32>
    %296 = arith.negf %295 : vector<2x32xf32>
    %297 = math.exp %296 : vector<2x32xf32>
    %cst_58 = arith.constant 1.000000e+00 : f32
    %298 = vector.broadcast %cst_58 : f32 to vector<2x32xf32>
    %299 = arith.addf %298, %297 : vector<2x32xf32>
    %300 = arith.divf %298, %299 : vector<2x32xf32>
    %301 = vector.extract_strided_slice %294 {offsets = [0, 32], sizes = [2, 32], strides = [1, 1]} : vector<2x128xf32> to vector<2x32xf32>
    %302 = arith.negf %301 : vector<2x32xf32>
    %303 = math.exp %302 : vector<2x32xf32>
    %cst_59 = arith.constant 1.000000e+00 : f32
    %304 = vector.broadcast %cst_59 : f32 to vector<2x32xf32>
    %305 = arith.addf %304, %303 : vector<2x32xf32>
    %306 = arith.divf %304, %305 : vector<2x32xf32>
    %307 = vector.extract_strided_slice %294 {offsets = [0, 64], sizes = [2, 32], strides = [1, 1]} : vector<2x128xf32> to vector<2x32xf32>
    %308 = math.tanh %307 : vector<2x32xf32>
    %309 = vector.extract_strided_slice %294 {offsets = [0, 96], sizes = [2, 32], strides = [1, 1]} : vector<2x128xf32> to vector<2x32xf32>
    %310 = arith.negf %309 : vector<2x32xf32>
    %311 = math.exp %310 : vector<2x32xf32>
    %cst_60 = arith.constant 1.000000e+00 : f32
    %312 = vector.broadcast %cst_60 : f32 to vector<2x32xf32>
    %313 = arith.addf %312, %311 : vector<2x32xf32>
    %314 = arith.divf %312, %313 : vector<2x32xf32>
    %315 = arith.mulf %306, %280 : vector<2x32xf32>
    %316 = arith.mulf %300, %308 : vector<2x32xf32>
    %317 = arith.addf %315, %316 : vector<2x32xf32>
    %318 = math.tanh %317 : vector<2x32xf32>
    %319 = arith.mulf %314, %318 : vector<2x32xf32>
    %c7_i32 = arith.constant 7 : i32
    %320 = vector.broadcast %c7_i32 : i32 to vector<1x8x1xi32>
    %321 = arith.cmpi eq, %17, %320 : vector<1x8x1xi32>
    %322 = vector.shape_cast %319 : vector<2x32xf32> to vector<2x1x32xf32>
    %323 = vector.shape_cast %321 : vector<1x8x1xi1> to vector<1x8x1xi1>
    %324 = vector.broadcast %323 : vector<1x8x1xi1> to vector<2x8x32xi1>
    %325 = vector.shape_cast %322 : vector<2x1x32xf32> to vector<2x1x32xf32>
    %326 = vector.broadcast %325 : vector<2x1x32xf32> to vector<2x8x32xf32>
    %327 = arith.select %324, %326, %290 : vector<2x8x32xi1>, vector<2x8x32xf32>
    %328 = vector.shape_cast %327 : vector<2x8x32xf32> to vector<16x32xf32>
    %cst_61 = arith.constant dense<0.000000e+00> : vector<16x32xf32>
    %329 = tpu.matmul %328, %6, %cst_61 {dimension_numbers = #tpu.dot_dimension_numbers<[1], [0], [0], [1], [0, 0, 1, 1], [], []>} : vector<16x32xf32>, vector<32x32xf32>, vector<16x32xf32> -> vector<16x32xf32>
    %330 = vector.broadcast %10 : vector<1x32xf32> to vector<16x32xf32>
    %331 = arith.addf %329, %330 : vector<16x32xf32>
    %cst_62 = arith.constant dense<0.000000e+00> : vector<16x32xf32>
    %332 = tpu.matmul %331, %5, %cst_62 {dimension_numbers = #tpu.dot_dimension_numbers<[1], [0], [0], [1], [0, 0, 1, 1], [], []>} : vector<16x32xf32>, vector<32x32xf32>, vector<16x32xf32> -> vector<16x32xf32>
    %333 = vector.shape_cast %332 : vector<16x32xf32> to vector<2x8x32xf32>
    %334 = vector.broadcast %9 : vector<1x32xf32> to vector<16x32xf32>
    %335 = arith.addf %331, %334 : vector<16x32xf32>
    %336 = vector.shape_cast %335 : vector<16x32xf32> to vector<2x8x32xf32>
    %cst_63 = arith.constant dense<0.000000e+00> : vector<16x128xf32>
    %337 = tpu.matmul %21, %13, %cst_63 {dimension_numbers = #tpu.dot_dimension_numbers<[1], [0], [0], [1], [0, 0, 1, 1], [], []>} : vector<16x16xf32>, vector<16x128xf32>, vector<16x128xf32> -> vector<16x128xf32>
    %338 = vector.broadcast %15 : vector<1x128xf32> to vector<16x128xf32>
    %339 = arith.addf %337, %338 : vector<16x128xf32>
    %340 = vector.shape_cast %339 : vector<16x128xf32> to vector<2x8x128xf32>
    %cst_64 = arith.constant dense<0.000000e+00> : vector<1x128xf32>
    %341 = tpu.matmul %3, %13, %cst_64 {dimension_numbers = #tpu.dot_dimension_numbers<[1], [0], [0], [1], [0, 0, 1, 1], [], []>} : vector<1x16xf32>, vector<16x128xf32>, vector<1x128xf32> -> vector<1x128xf32>
    %342 = arith.addf %341, %15 : vector<1x128xf32>
    %343 = vector.shape_cast %342 : vector<1x128xf32> to vector<1x128xf32>
    %344 = vector.broadcast %343 : vector<1x128xf32> to vector<2x128xf32>
    %true = arith.constant true
    %345 = vector.broadcast %true : i1 to vector<2x8xi1>
    %cst_65 = arith.constant 0.000000e+00 : f32
    %346 = vector.broadcast %cst_65 : f32 to vector<2x1xf32>
    %cst_66 = arith.constant 0.000000e+00 : f32
    %347 = vector.broadcast %cst_66 : f32 to vector<2x1xf32>
    %c0_i32_67 = arith.constant 0 : i32
    %348 = vector.broadcast %c0_i32_67 : i32 to vector<2x8xi32>
    %cst_68 = arith.constant dense<0.000000e+00> : vector<2x128xf32>
    %349 = tpu.matmul %319, %14, %cst_68 {dimension_numbers = #tpu.dot_dimension_numbers<[1], [0], [0], [1], [0, 0, 1, 1], [], []>} : vector<2x32xf32>, vector<32x128xf32>, vector<2x128xf32> -> vector<2x128xf32>
    %350 = arith.addf %344, %349 : vector<2x128xf32>
    %351 = vector.extract_strided_slice %350 {offsets = [0, 0], sizes = [2, 32], strides = [1, 1]} : vector<2x128xf32> to vector<2x32xf32>
    %352 = arith.negf %351 : vector<2x32xf32>
    %353 = math.exp %352 : vector<2x32xf32>
    %cst_69 = arith.constant 1.000000e+00 : f32
    %354 = vector.broadcast %cst_69 : f32 to vector<2x32xf32>
    %355 = arith.addf %354, %353 : vector<2x32xf32>
    %356 = arith.divf %354, %355 : vector<2x32xf32>
    %357 = vector.extract_strided_slice %350 {offsets = [0, 32], sizes = [2, 32], strides = [1, 1]} : vector<2x128xf32> to vector<2x32xf32>
    %358 = arith.negf %357 : vector<2x32xf32>
    %359 = math.exp %358 : vector<2x32xf32>
    %cst_70 = arith.constant 1.000000e+00 : f32
    %360 = vector.broadcast %cst_70 : f32 to vector<2x32xf32>
    %361 = arith.addf %360, %359 : vector<2x32xf32>
    %362 = arith.divf %360, %361 : vector<2x32xf32>
    %363 = vector.extract_strided_slice %350 {offsets = [0, 64], sizes = [2, 32], strides = [1, 1]} : vector<2x128xf32> to vector<2x32xf32>
    %364 = math.tanh %363 : vector<2x32xf32>
    %365 = vector.extract_strided_slice %350 {offsets = [0, 96], sizes = [2, 32], strides = [1, 1]} : vector<2x128xf32> to vector<2x32xf32>
    %366 = arith.negf %365 : vector<2x32xf32>
    %367 = math.exp %366 : vector<2x32xf32>
    %cst_71 = arith.constant 1.000000e+00 : f32
    %368 = vector.broadcast %cst_71 : f32 to vector<2x32xf32>
    %369 = arith.addf %368, %367 : vector<2x32xf32>
    %370 = arith.divf %368, %369 : vector<2x32xf32>
    %371 = arith.mulf %362, %317 : vector<2x32xf32>
    %372 = arith.mulf %356, %364 : vector<2x32xf32>
    %373 = arith.addf %371, %372 : vector<2x32xf32>
    %374 = math.tanh %373 : vector<2x32xf32>
    %375 = arith.mulf %370, %374 : vector<2x32xf32>
    %cst_72 = arith.constant dense<0.000000e+00> : vector<2x64xf32>
    %376 = tpu.matmul %375, %7, %cst_72 {dimension_numbers = #tpu.dot_dimension_numbers<[1], [0], [0], [1], [0, 0, 1, 1], [], []>} : vector<2x32xf32>, vector<32x64xf32>, vector<2x64xf32> -> vector<2x64xf32>
    %377 = vector.extract_strided_slice %376 {offsets = [0, 0], sizes = [2, 32], strides = [1, 1]} : vector<2x64xf32> to vector<2x32xf32>
    %378 = vector.extract_strided_slice %376 {offsets = [0, 32], sizes = [2, 32], strides = [1, 1]} : vector<2x64xf32> to vector<2x32xf32>
    %379 = vector.shape_cast %377 : vector<2x32xf32> to vector<2x1x32xf32>
    %380 = vector.broadcast %379 : vector<2x1x32xf32> to vector<2x8x32xf32>
    %381 = arith.addf %380, %336 : vector<2x8x32xf32>
    %382 = math.tanh %381 : vector<2x8x32xf32>
    %383 = vector.broadcast %12 : vector<1x1x32xf32> to vector<2x8x32xf32>
    %384 = arith.mulf %382, %383 : vector<2x8x32xf32>
    %cst_73 = arith.constant dense<0.000000e+00> : vector<2x8xf32>
    %385 = vector.multi_reduction <add>, %384, %cst_73 [2] : vector<2x8x32xf32> to vector<2x8xf32>
    %cst_74 = arith.constant -1.000000e+30 : f32
    %386 = vector.broadcast %cst_74 : f32 to vector<2x8xf32>
    %387 = arith.select %345, %385, %386 : vector<2x8xi1>, vector<2x8xf32>
    %cst_75 = arith.constant dense<0xFF800000> : vector<2xf32>
    %388 = vector.multi_reduction <maximumf>, %387, %cst_75 [1] : vector<2x8xf32> to vector<2xf32>
    %389 = vector.shape_cast %388 : vector<2xf32> to vector<2x1xf32>
    %390 = vector.broadcast %389 : vector<2x1xf32> to vector<2x8xf32>
    %391 = arith.subf %387, %390 : vector<2x8xf32>
    %392 = math.exp %391 : vector<2x8xf32>
    %cst_76 = arith.constant 0.000000e+00 : f32
    %393 = vector.broadcast %cst_76 : f32 to vector<2x8xf32>
    %394 = arith.select %345, %392, %393 : vector<2x8xi1>, vector<2x8xf32>
    %cst_77 = arith.constant dense<0.000000e+00> : vector<2xf32>
    %395 = vector.multi_reduction <add>, %394, %cst_77 [1] : vector<2x8xf32> to vector<2xf32>
    %396 = vector.shape_cast %395 : vector<2xf32> to vector<2x1xf32>
    %397 = vector.broadcast %396 : vector<2x1xf32> to vector<2x8xf32>
    %398 = arith.divf %394, %397 : vector<2x8xf32>
    %399 = vector.broadcast %389 : vector<2x1xf32> to vector<2x8xf32>
    %400 = arith.subf %387, %399 : vector<2x8xf32>
    %401 = math.log %396 : vector<2x1xf32>
    %402 = vector.broadcast %401 : vector<2x1xf32> to vector<2x8xf32>
    %403 = arith.subf %400, %402 : vector<2x8xf32>
    %404 = vector.broadcast %389 : vector<2x1xf32> to vector<2x8xf32>
    %405 = arith.cmpf oge, %387, %404 : vector<2x8xf32>
    %c8_i32 = arith.constant 8 : i32
    %406 = vector.broadcast %c8_i32 : i32 to vector<2x8xi32>
    %407 = arith.select %405, %16, %406 : vector<2x8xi1>, vector<2x8xi32>
    %cst_78 = arith.constant dense<2147483647> : vector<2xi32>
    %408 = vector.multi_reduction <minsi>, %407, %cst_78 [1] : vector<2x8xi32> to vector<2xi32>
    %409 = vector.shape_cast %408 : vector<2xi32> to vector<2x1xi32>
    %410 = vector.broadcast %409 : vector<2x1xi32> to vector<2x8xi32>
    %411 = arith.cmpi eq, %16, %410 : vector<2x8xi32>
    %412 = arith.extui %411 : vector<2x8xi1> to vector<2x8xi32>
    %413 = arith.sitofp %412 : vector<2x8xi32> to vector<2x8xf32>
    %414 = arith.mulf %413, %403 : vector<2x8xf32>
    %cst_79 = arith.constant dense<0.000000e+00> : vector<2xf32>
    %415 = vector.multi_reduction <add>, %414, %cst_79 [1] : vector<2x8xf32> to vector<2xf32>
    %416 = vector.shape_cast %415 : vector<2xf32> to vector<2x1xf32>
    %417 = arith.addf %346, %416 : vector<2x1xf32>
    %cst_80 = arith.constant 0.000000e+00 : f32
    %418 = vector.broadcast %cst_80 : f32 to vector<2x8xf32>
    %419 = arith.subf %418, %398 : vector<2x8xf32>
    %420 = arith.mulf %419, %403 : vector<2x8xf32>
    %cst_81 = arith.constant 0.000000e+00 : f32
    %421 = vector.broadcast %cst_81 : f32 to vector<2x8xf32>
    %422 = arith.select %345, %420, %421 : vector<2x8xi1>, vector<2x8xf32>
    %cst_82 = arith.constant dense<0.000000e+00> : vector<2xf32>
    %423 = vector.multi_reduction <add>, %422, %cst_82 [1] : vector<2x8xf32> to vector<2xf32>
    %424 = vector.shape_cast %423 : vector<2xf32> to vector<2x1xf32>
    %425 = arith.addf %347, %424 : vector<2x1xf32>
    %426 = vector.shape_cast %398 : vector<2x8xf32> to vector<2x8x1xf32>
    %427 = vector.broadcast %426 : vector<2x8x1xf32> to vector<2x8x32xf32>
    %428 = arith.mulf %333, %427 : vector<2x8x32xf32>
    %cst_83 = arith.constant dense<0.000000e+00> : vector<2x32xf32>
    %429 = vector.multi_reduction <add>, %428, %cst_83 [1] : vector<2x8x32xf32> to vector<2x32xf32>
    %430 = arith.addf %429, %378 : vector<2x32xf32>
    %431 = vector.broadcast %8 : vector<1x32xf32> to vector<2x32xf32>
    %432 = arith.addf %430, %431 : vector<2x32xf32>
    %433 = math.tanh %432 : vector<2x32xf32>
    %c0_i32_84 = arith.constant 0 : i32
    %434 = vector.broadcast %c0_i32_84 : i32 to vector<2x8xi32>
    %435 = arith.cmpi eq, %16, %434 : vector<2x8xi32>
    %436 = vector.shape_cast %409 : vector<2x1xi32> to vector<2x1xi32>
    %437 = vector.broadcast %436 : vector<2x1xi32> to vector<2x8xi32>
    %438 = arith.select %435, %437, %348 : vector<2x8xi1>, vector<2x8xi32>
    %439 = vector.shape_cast %413 : vector<2x8xf32> to vector<2x8x1xf32>
    %440 = vector.broadcast %439 : vector<2x8x1xf32> to vector<2x8x128xf32>
    %441 = arith.mulf %340, %440 : vector<2x8x128xf32>
    %cst_85 = arith.constant dense<0.000000e+00> : vector<2x128xf32>
    %442 = vector.multi_reduction <add>, %441, %cst_85 [1] : vector<2x8x128xf32> to vector<2x128xf32>
    %cst_86 = arith.constant dense<true> : vector<2x8xi1>
    %443 = arith.xori %411, %cst_86 : vector<2x8xi1>
    %444 = arith.andi %345, %443 : vector<2x8xi1>
    %cst_87 = arith.constant dense<0.000000e+00> : vector<2x128xf32>
    %445 = tpu.matmul %433, %14, %cst_87 {dimension_numbers = #tpu.dot_dimension_numbers<[1], [0], [0], [1], [0, 0, 1, 1], [], []>} : vector<2x32xf32>, vector<32x128xf32>, vector<2x128xf32> -> vector<2x128xf32>
    %446 = arith.addf %442, %445 : vector<2x128xf32>
    %447 = vector.extract_strided_slice %446 {offsets = [0, 0], sizes = [2, 32], strides = [1, 1]} : vector<2x128xf32> to vector<2x32xf32>
    %448 = arith.negf %447 : vector<2x32xf32>
    %449 = math.exp %448 : vector<2x32xf32>
    %cst_88 = arith.constant 1.000000e+00 : f32
    %450 = vector.broadcast %cst_88 : f32 to vector<2x32xf32>
    %451 = arith.addf %450, %449 : vector<2x32xf32>
    %452 = arith.divf %450, %451 : vector<2x32xf32>
    %453 = vector.extract_strided_slice %446 {offsets = [0, 32], sizes = [2, 32], strides = [1, 1]} : vector<2x128xf32> to vector<2x32xf32>
    %454 = arith.negf %453 : vector<2x32xf32>
    %455 = math.exp %454 : vector<2x32xf32>
    %cst_89 = arith.constant 1.000000e+00 : f32
    %456 = vector.broadcast %cst_89 : f32 to vector<2x32xf32>
    %457 = arith.addf %456, %455 : vector<2x32xf32>
    %458 = arith.divf %456, %457 : vector<2x32xf32>
    %459 = vector.extract_strided_slice %446 {offsets = [0, 64], sizes = [2, 32], strides = [1, 1]} : vector<2x128xf32> to vector<2x32xf32>
    %460 = math.tanh %459 : vector<2x32xf32>
    %461 = vector.extract_strided_slice %446 {offsets = [0, 96], sizes = [2, 32], strides = [1, 1]} : vector<2x128xf32> to vector<2x32xf32>
    %462 = arith.negf %461 : vector<2x32xf32>
    %463 = math.exp %462 : vector<2x32xf32>
    %cst_90 = arith.constant 1.000000e+00 : f32
    %464 = vector.broadcast %cst_90 : f32 to vector<2x32xf32>
    %465 = arith.addf %464, %463 : vector<2x32xf32>
    %466 = arith.divf %464, %465 : vector<2x32xf32>
    %467 = arith.mulf %458, %373 : vector<2x32xf32>
    %468 = arith.mulf %452, %460 : vector<2x32xf32>
    %469 = arith.addf %467, %468 : vector<2x32xf32>
    %470 = math.tanh %469 : vector<2x32xf32>
    %471 = arith.mulf %466, %470 : vector<2x32xf32>
    %cst_91 = arith.constant dense<0.000000e+00> : vector<2x64xf32>
    %472 = tpu.matmul %471, %7, %cst_91 {dimension_numbers = #tpu.dot_dimension_numbers<[1], [0], [0], [1], [0, 0, 1, 1], [], []>} : vector<2x32xf32>, vector<32x64xf32>, vector<2x64xf32> -> vector<2x64xf32>
    %473 = vector.extract_strided_slice %472 {offsets = [0, 0], sizes = [2, 32], strides = [1, 1]} : vector<2x64xf32> to vector<2x32xf32>
    %474 = vector.extract_strided_slice %472 {offsets = [0, 32], sizes = [2, 32], strides = [1, 1]} : vector<2x64xf32> to vector<2x32xf32>
    %475 = vector.shape_cast %473 : vector<2x32xf32> to vector<2x1x32xf32>
    %476 = vector.broadcast %475 : vector<2x1x32xf32> to vector<2x8x32xf32>
    %477 = arith.addf %476, %336 : vector<2x8x32xf32>
    %478 = math.tanh %477 : vector<2x8x32xf32>
    %479 = vector.broadcast %12 : vector<1x1x32xf32> to vector<2x8x32xf32>
    %480 = arith.mulf %478, %479 : vector<2x8x32xf32>
    %cst_92 = arith.constant dense<0.000000e+00> : vector<2x8xf32>
    %481 = vector.multi_reduction <add>, %480, %cst_92 [2] : vector<2x8x32xf32> to vector<2x8xf32>
    %cst_93 = arith.constant -1.000000e+30 : f32
    %482 = vector.broadcast %cst_93 : f32 to vector<2x8xf32>
    %483 = arith.select %444, %481, %482 : vector<2x8xi1>, vector<2x8xf32>
    %cst_94 = arith.constant dense<0xFF800000> : vector<2xf32>
    %484 = vector.multi_reduction <maximumf>, %483, %cst_94 [1] : vector<2x8xf32> to vector<2xf32>
    %485 = vector.shape_cast %484 : vector<2xf32> to vector<2x1xf32>
    %486 = vector.broadcast %485 : vector<2x1xf32> to vector<2x8xf32>
    %487 = arith.subf %483, %486 : vector<2x8xf32>
    %488 = math.exp %487 : vector<2x8xf32>
    %cst_95 = arith.constant 0.000000e+00 : f32
    %489 = vector.broadcast %cst_95 : f32 to vector<2x8xf32>
    %490 = arith.select %444, %488, %489 : vector<2x8xi1>, vector<2x8xf32>
    %cst_96 = arith.constant dense<0.000000e+00> : vector<2xf32>
    %491 = vector.multi_reduction <add>, %490, %cst_96 [1] : vector<2x8xf32> to vector<2xf32>
    %492 = vector.shape_cast %491 : vector<2xf32> to vector<2x1xf32>
    %493 = vector.broadcast %492 : vector<2x1xf32> to vector<2x8xf32>
    %494 = arith.divf %490, %493 : vector<2x8xf32>
    %495 = vector.broadcast %485 : vector<2x1xf32> to vector<2x8xf32>
    %496 = arith.subf %483, %495 : vector<2x8xf32>
    %497 = math.log %492 : vector<2x1xf32>
    %498 = vector.broadcast %497 : vector<2x1xf32> to vector<2x8xf32>
    %499 = arith.subf %496, %498 : vector<2x8xf32>
    %500 = vector.broadcast %485 : vector<2x1xf32> to vector<2x8xf32>
    %501 = arith.cmpf oge, %483, %500 : vector<2x8xf32>
    %c8_i32_97 = arith.constant 8 : i32
    %502 = vector.broadcast %c8_i32_97 : i32 to vector<2x8xi32>
    %503 = arith.select %501, %16, %502 : vector<2x8xi1>, vector<2x8xi32>
    %cst_98 = arith.constant dense<2147483647> : vector<2xi32>
    %504 = vector.multi_reduction <minsi>, %503, %cst_98 [1] : vector<2x8xi32> to vector<2xi32>
    %505 = vector.shape_cast %504 : vector<2xi32> to vector<2x1xi32>
    %506 = vector.broadcast %505 : vector<2x1xi32> to vector<2x8xi32>
    %507 = arith.cmpi eq, %16, %506 : vector<2x8xi32>
    %508 = arith.extui %507 : vector<2x8xi1> to vector<2x8xi32>
    %509 = arith.sitofp %508 : vector<2x8xi32> to vector<2x8xf32>
    %510 = arith.mulf %509, %499 : vector<2x8xf32>
    %cst_99 = arith.constant dense<0.000000e+00> : vector<2xf32>
    %511 = vector.multi_reduction <add>, %510, %cst_99 [1] : vector<2x8xf32> to vector<2xf32>
    %512 = vector.shape_cast %511 : vector<2xf32> to vector<2x1xf32>
    %513 = arith.addf %417, %512 : vector<2x1xf32>
    %cst_100 = arith.constant 0.000000e+00 : f32
    %514 = vector.broadcast %cst_100 : f32 to vector<2x8xf32>
    %515 = arith.subf %514, %494 : vector<2x8xf32>
    %516 = arith.mulf %515, %499 : vector<2x8xf32>
    %cst_101 = arith.constant 0.000000e+00 : f32
    %517 = vector.broadcast %cst_101 : f32 to vector<2x8xf32>
    %518 = arith.select %444, %516, %517 : vector<2x8xi1>, vector<2x8xf32>
    %cst_102 = arith.constant dense<0.000000e+00> : vector<2xf32>
    %519 = vector.multi_reduction <add>, %518, %cst_102 [1] : vector<2x8xf32> to vector<2xf32>
    %520 = vector.shape_cast %519 : vector<2xf32> to vector<2x1xf32>
    %521 = arith.addf %425, %520 : vector<2x1xf32>
    %522 = vector.shape_cast %494 : vector<2x8xf32> to vector<2x8x1xf32>
    %523 = vector.broadcast %522 : vector<2x8x1xf32> to vector<2x8x32xf32>
    %524 = arith.mulf %333, %523 : vector<2x8x32xf32>
    %cst_103 = arith.constant dense<0.000000e+00> : vector<2x32xf32>
    %525 = vector.multi_reduction <add>, %524, %cst_103 [1] : vector<2x8x32xf32> to vector<2x32xf32>
    %526 = arith.addf %525, %474 : vector<2x32xf32>
    %527 = vector.broadcast %8 : vector<1x32xf32> to vector<2x32xf32>
    %528 = arith.addf %526, %527 : vector<2x32xf32>
    %529 = math.tanh %528 : vector<2x32xf32>
    %c1_i32_104 = arith.constant 1 : i32
    %530 = vector.broadcast %c1_i32_104 : i32 to vector<2x8xi32>
    %531 = arith.cmpi eq, %16, %530 : vector<2x8xi32>
    %532 = vector.shape_cast %505 : vector<2x1xi32> to vector<2x1xi32>
    %533 = vector.broadcast %532 : vector<2x1xi32> to vector<2x8xi32>
    %534 = arith.select %531, %533, %438 : vector<2x8xi1>, vector<2x8xi32>
    %535 = vector.shape_cast %509 : vector<2x8xf32> to vector<2x8x1xf32>
    %536 = vector.broadcast %535 : vector<2x8x1xf32> to vector<2x8x128xf32>
    %537 = arith.mulf %340, %536 : vector<2x8x128xf32>
    %cst_105 = arith.constant dense<0.000000e+00> : vector<2x128xf32>
    %538 = vector.multi_reduction <add>, %537, %cst_105 [1] : vector<2x8x128xf32> to vector<2x128xf32>
    %cst_106 = arith.constant dense<true> : vector<2x8xi1>
    %539 = arith.xori %507, %cst_106 : vector<2x8xi1>
    %540 = arith.andi %444, %539 : vector<2x8xi1>
    %cst_107 = arith.constant dense<0.000000e+00> : vector<2x128xf32>
    %541 = tpu.matmul %529, %14, %cst_107 {dimension_numbers = #tpu.dot_dimension_numbers<[1], [0], [0], [1], [0, 0, 1, 1], [], []>} : vector<2x32xf32>, vector<32x128xf32>, vector<2x128xf32> -> vector<2x128xf32>
    %542 = arith.addf %538, %541 : vector<2x128xf32>
    %543 = vector.extract_strided_slice %542 {offsets = [0, 0], sizes = [2, 32], strides = [1, 1]} : vector<2x128xf32> to vector<2x32xf32>
    %544 = arith.negf %543 : vector<2x32xf32>
    %545 = math.exp %544 : vector<2x32xf32>
    %cst_108 = arith.constant 1.000000e+00 : f32
    %546 = vector.broadcast %cst_108 : f32 to vector<2x32xf32>
    %547 = arith.addf %546, %545 : vector<2x32xf32>
    %548 = arith.divf %546, %547 : vector<2x32xf32>
    %549 = vector.extract_strided_slice %542 {offsets = [0, 32], sizes = [2, 32], strides = [1, 1]} : vector<2x128xf32> to vector<2x32xf32>
    %550 = arith.negf %549 : vector<2x32xf32>
    %551 = math.exp %550 : vector<2x32xf32>
    %cst_109 = arith.constant 1.000000e+00 : f32
    %552 = vector.broadcast %cst_109 : f32 to vector<2x32xf32>
    %553 = arith.addf %552, %551 : vector<2x32xf32>
    %554 = arith.divf %552, %553 : vector<2x32xf32>
    %555 = vector.extract_strided_slice %542 {offsets = [0, 64], sizes = [2, 32], strides = [1, 1]} : vector<2x128xf32> to vector<2x32xf32>
    %556 = math.tanh %555 : vector<2x32xf32>
    %557 = vector.extract_strided_slice %542 {offsets = [0, 96], sizes = [2, 32], strides = [1, 1]} : vector<2x128xf32> to vector<2x32xf32>
    %558 = arith.negf %557 : vector<2x32xf32>
    %559 = math.exp %558 : vector<2x32xf32>
    %cst_110 = arith.constant 1.000000e+00 : f32
    %560 = vector.broadcast %cst_110 : f32 to vector<2x32xf32>
    %561 = arith.addf %560, %559 : vector<2x32xf32>
    %562 = arith.divf %560, %561 : vector<2x32xf32>
    %563 = arith.mulf %554, %469 : vector<2x32xf32>
    %564 = arith.mulf %548, %556 : vector<2x32xf32>
    %565 = arith.addf %563, %564 : vector<2x32xf32>
    %566 = math.tanh %565 : vector<2x32xf32>
    %567 = arith.mulf %562, %566 : vector<2x32xf32>
    %cst_111 = arith.constant dense<0.000000e+00> : vector<2x64xf32>
    %568 = tpu.matmul %567, %7, %cst_111 {dimension_numbers = #tpu.dot_dimension_numbers<[1], [0], [0], [1], [0, 0, 1, 1], [], []>} : vector<2x32xf32>, vector<32x64xf32>, vector<2x64xf32> -> vector<2x64xf32>
    %569 = vector.extract_strided_slice %568 {offsets = [0, 0], sizes = [2, 32], strides = [1, 1]} : vector<2x64xf32> to vector<2x32xf32>
    %570 = vector.extract_strided_slice %568 {offsets = [0, 32], sizes = [2, 32], strides = [1, 1]} : vector<2x64xf32> to vector<2x32xf32>
    %571 = vector.shape_cast %569 : vector<2x32xf32> to vector<2x1x32xf32>
    %572 = vector.broadcast %571 : vector<2x1x32xf32> to vector<2x8x32xf32>
    %573 = arith.addf %572, %336 : vector<2x8x32xf32>
    %574 = math.tanh %573 : vector<2x8x32xf32>
    %575 = vector.broadcast %12 : vector<1x1x32xf32> to vector<2x8x32xf32>
    %576 = arith.mulf %574, %575 : vector<2x8x32xf32>
    %cst_112 = arith.constant dense<0.000000e+00> : vector<2x8xf32>
    %577 = vector.multi_reduction <add>, %576, %cst_112 [2] : vector<2x8x32xf32> to vector<2x8xf32>
    %cst_113 = arith.constant -1.000000e+30 : f32
    %578 = vector.broadcast %cst_113 : f32 to vector<2x8xf32>
    %579 = arith.select %540, %577, %578 : vector<2x8xi1>, vector<2x8xf32>
    %cst_114 = arith.constant dense<0xFF800000> : vector<2xf32>
    %580 = vector.multi_reduction <maximumf>, %579, %cst_114 [1] : vector<2x8xf32> to vector<2xf32>
    %581 = vector.shape_cast %580 : vector<2xf32> to vector<2x1xf32>
    %582 = vector.broadcast %581 : vector<2x1xf32> to vector<2x8xf32>
    %583 = arith.subf %579, %582 : vector<2x8xf32>
    %584 = math.exp %583 : vector<2x8xf32>
    %cst_115 = arith.constant 0.000000e+00 : f32
    %585 = vector.broadcast %cst_115 : f32 to vector<2x8xf32>
    %586 = arith.select %540, %584, %585 : vector<2x8xi1>, vector<2x8xf32>
    %cst_116 = arith.constant dense<0.000000e+00> : vector<2xf32>
    %587 = vector.multi_reduction <add>, %586, %cst_116 [1] : vector<2x8xf32> to vector<2xf32>
    %588 = vector.shape_cast %587 : vector<2xf32> to vector<2x1xf32>
    %589 = vector.broadcast %588 : vector<2x1xf32> to vector<2x8xf32>
    %590 = arith.divf %586, %589 : vector<2x8xf32>
    %591 = vector.broadcast %581 : vector<2x1xf32> to vector<2x8xf32>
    %592 = arith.subf %579, %591 : vector<2x8xf32>
    %593 = math.log %588 : vector<2x1xf32>
    %594 = vector.broadcast %593 : vector<2x1xf32> to vector<2x8xf32>
    %595 = arith.subf %592, %594 : vector<2x8xf32>
    %596 = vector.broadcast %581 : vector<2x1xf32> to vector<2x8xf32>
    %597 = arith.cmpf oge, %579, %596 : vector<2x8xf32>
    %c8_i32_117 = arith.constant 8 : i32
    %598 = vector.broadcast %c8_i32_117 : i32 to vector<2x8xi32>
    %599 = arith.select %597, %16, %598 : vector<2x8xi1>, vector<2x8xi32>
    %cst_118 = arith.constant dense<2147483647> : vector<2xi32>
    %600 = vector.multi_reduction <minsi>, %599, %cst_118 [1] : vector<2x8xi32> to vector<2xi32>
    %601 = vector.shape_cast %600 : vector<2xi32> to vector<2x1xi32>
    %602 = vector.broadcast %601 : vector<2x1xi32> to vector<2x8xi32>
    %603 = arith.cmpi eq, %16, %602 : vector<2x8xi32>
    %604 = arith.extui %603 : vector<2x8xi1> to vector<2x8xi32>
    %605 = arith.sitofp %604 : vector<2x8xi32> to vector<2x8xf32>
    %606 = arith.mulf %605, %595 : vector<2x8xf32>
    %cst_119 = arith.constant dense<0.000000e+00> : vector<2xf32>
    %607 = vector.multi_reduction <add>, %606, %cst_119 [1] : vector<2x8xf32> to vector<2xf32>
    %608 = vector.shape_cast %607 : vector<2xf32> to vector<2x1xf32>
    %609 = arith.addf %513, %608 : vector<2x1xf32>
    %cst_120 = arith.constant 0.000000e+00 : f32
    %610 = vector.broadcast %cst_120 : f32 to vector<2x8xf32>
    %611 = arith.subf %610, %590 : vector<2x8xf32>
    %612 = arith.mulf %611, %595 : vector<2x8xf32>
    %cst_121 = arith.constant 0.000000e+00 : f32
    %613 = vector.broadcast %cst_121 : f32 to vector<2x8xf32>
    %614 = arith.select %540, %612, %613 : vector<2x8xi1>, vector<2x8xf32>
    %cst_122 = arith.constant dense<0.000000e+00> : vector<2xf32>
    %615 = vector.multi_reduction <add>, %614, %cst_122 [1] : vector<2x8xf32> to vector<2xf32>
    %616 = vector.shape_cast %615 : vector<2xf32> to vector<2x1xf32>
    %617 = arith.addf %521, %616 : vector<2x1xf32>
    %618 = vector.shape_cast %590 : vector<2x8xf32> to vector<2x8x1xf32>
    %619 = vector.broadcast %618 : vector<2x8x1xf32> to vector<2x8x32xf32>
    %620 = arith.mulf %333, %619 : vector<2x8x32xf32>
    %cst_123 = arith.constant dense<0.000000e+00> : vector<2x32xf32>
    %621 = vector.multi_reduction <add>, %620, %cst_123 [1] : vector<2x8x32xf32> to vector<2x32xf32>
    %622 = arith.addf %621, %570 : vector<2x32xf32>
    %623 = vector.broadcast %8 : vector<1x32xf32> to vector<2x32xf32>
    %624 = arith.addf %622, %623 : vector<2x32xf32>
    %625 = math.tanh %624 : vector<2x32xf32>
    %c2_i32_124 = arith.constant 2 : i32
    %626 = vector.broadcast %c2_i32_124 : i32 to vector<2x8xi32>
    %627 = arith.cmpi eq, %16, %626 : vector<2x8xi32>
    %628 = vector.shape_cast %601 : vector<2x1xi32> to vector<2x1xi32>
    %629 = vector.broadcast %628 : vector<2x1xi32> to vector<2x8xi32>
    %630 = arith.select %627, %629, %534 : vector<2x8xi1>, vector<2x8xi32>
    %631 = vector.shape_cast %605 : vector<2x8xf32> to vector<2x8x1xf32>
    %632 = vector.broadcast %631 : vector<2x8x1xf32> to vector<2x8x128xf32>
    %633 = arith.mulf %340, %632 : vector<2x8x128xf32>
    %cst_125 = arith.constant dense<0.000000e+00> : vector<2x128xf32>
    %634 = vector.multi_reduction <add>, %633, %cst_125 [1] : vector<2x8x128xf32> to vector<2x128xf32>
    %cst_126 = arith.constant dense<true> : vector<2x8xi1>
    %635 = arith.xori %603, %cst_126 : vector<2x8xi1>
    %636 = arith.andi %540, %635 : vector<2x8xi1>
    %cst_127 = arith.constant dense<0.000000e+00> : vector<2x128xf32>
    %637 = tpu.matmul %625, %14, %cst_127 {dimension_numbers = #tpu.dot_dimension_numbers<[1], [0], [0], [1], [0, 0, 1, 1], [], []>} : vector<2x32xf32>, vector<32x128xf32>, vector<2x128xf32> -> vector<2x128xf32>
    %638 = arith.addf %634, %637 : vector<2x128xf32>
    %639 = vector.extract_strided_slice %638 {offsets = [0, 0], sizes = [2, 32], strides = [1, 1]} : vector<2x128xf32> to vector<2x32xf32>
    %640 = arith.negf %639 : vector<2x32xf32>
    %641 = math.exp %640 : vector<2x32xf32>
    %cst_128 = arith.constant 1.000000e+00 : f32
    %642 = vector.broadcast %cst_128 : f32 to vector<2x32xf32>
    %643 = arith.addf %642, %641 : vector<2x32xf32>
    %644 = arith.divf %642, %643 : vector<2x32xf32>
    %645 = vector.extract_strided_slice %638 {offsets = [0, 32], sizes = [2, 32], strides = [1, 1]} : vector<2x128xf32> to vector<2x32xf32>
    %646 = arith.negf %645 : vector<2x32xf32>
    %647 = math.exp %646 : vector<2x32xf32>
    %cst_129 = arith.constant 1.000000e+00 : f32
    %648 = vector.broadcast %cst_129 : f32 to vector<2x32xf32>
    %649 = arith.addf %648, %647 : vector<2x32xf32>
    %650 = arith.divf %648, %649 : vector<2x32xf32>
    %651 = vector.extract_strided_slice %638 {offsets = [0, 64], sizes = [2, 32], strides = [1, 1]} : vector<2x128xf32> to vector<2x32xf32>
    %652 = math.tanh %651 : vector<2x32xf32>
    %653 = vector.extract_strided_slice %638 {offsets = [0, 96], sizes = [2, 32], strides = [1, 1]} : vector<2x128xf32> to vector<2x32xf32>
    %654 = arith.negf %653 : vector<2x32xf32>
    %655 = math.exp %654 : vector<2x32xf32>
    %cst_130 = arith.constant 1.000000e+00 : f32
    %656 = vector.broadcast %cst_130 : f32 to vector<2x32xf32>
    %657 = arith.addf %656, %655 : vector<2x32xf32>
    %658 = arith.divf %656, %657 : vector<2x32xf32>
    %659 = arith.mulf %650, %565 : vector<2x32xf32>
    %660 = arith.mulf %644, %652 : vector<2x32xf32>
    %661 = arith.addf %659, %660 : vector<2x32xf32>
    %662 = math.tanh %661 : vector<2x32xf32>
    %663 = arith.mulf %658, %662 : vector<2x32xf32>
    %cst_131 = arith.constant dense<0.000000e+00> : vector<2x64xf32>
    %664 = tpu.matmul %663, %7, %cst_131 {dimension_numbers = #tpu.dot_dimension_numbers<[1], [0], [0], [1], [0, 0, 1, 1], [], []>} : vector<2x32xf32>, vector<32x64xf32>, vector<2x64xf32> -> vector<2x64xf32>
    %665 = vector.extract_strided_slice %664 {offsets = [0, 0], sizes = [2, 32], strides = [1, 1]} : vector<2x64xf32> to vector<2x32xf32>
    %666 = vector.extract_strided_slice %664 {offsets = [0, 32], sizes = [2, 32], strides = [1, 1]} : vector<2x64xf32> to vector<2x32xf32>
    %667 = vector.shape_cast %665 : vector<2x32xf32> to vector<2x1x32xf32>
    %668 = vector.broadcast %667 : vector<2x1x32xf32> to vector<2x8x32xf32>
    %669 = arith.addf %668, %336 : vector<2x8x32xf32>
    %670 = math.tanh %669 : vector<2x8x32xf32>
    %671 = vector.broadcast %12 : vector<1x1x32xf32> to vector<2x8x32xf32>
    %672 = arith.mulf %670, %671 : vector<2x8x32xf32>
    %cst_132 = arith.constant dense<0.000000e+00> : vector<2x8xf32>
    %673 = vector.multi_reduction <add>, %672, %cst_132 [2] : vector<2x8x32xf32> to vector<2x8xf32>
    %cst_133 = arith.constant -1.000000e+30 : f32
    %674 = vector.broadcast %cst_133 : f32 to vector<2x8xf32>
    %675 = arith.select %636, %673, %674 : vector<2x8xi1>, vector<2x8xf32>
    %cst_134 = arith.constant dense<0xFF800000> : vector<2xf32>
    %676 = vector.multi_reduction <maximumf>, %675, %cst_134 [1] : vector<2x8xf32> to vector<2xf32>
    %677 = vector.shape_cast %676 : vector<2xf32> to vector<2x1xf32>
    %678 = vector.broadcast %677 : vector<2x1xf32> to vector<2x8xf32>
    %679 = arith.subf %675, %678 : vector<2x8xf32>
    %680 = math.exp %679 : vector<2x8xf32>
    %cst_135 = arith.constant 0.000000e+00 : f32
    %681 = vector.broadcast %cst_135 : f32 to vector<2x8xf32>
    %682 = arith.select %636, %680, %681 : vector<2x8xi1>, vector<2x8xf32>
    %cst_136 = arith.constant dense<0.000000e+00> : vector<2xf32>
    %683 = vector.multi_reduction <add>, %682, %cst_136 [1] : vector<2x8xf32> to vector<2xf32>
    %684 = vector.shape_cast %683 : vector<2xf32> to vector<2x1xf32>
    %685 = vector.broadcast %684 : vector<2x1xf32> to vector<2x8xf32>
    %686 = arith.divf %682, %685 : vector<2x8xf32>
    %687 = vector.broadcast %677 : vector<2x1xf32> to vector<2x8xf32>
    %688 = arith.subf %675, %687 : vector<2x8xf32>
    %689 = math.log %684 : vector<2x1xf32>
    %690 = vector.broadcast %689 : vector<2x1xf32> to vector<2x8xf32>
    %691 = arith.subf %688, %690 : vector<2x8xf32>
    %692 = vector.broadcast %677 : vector<2x1xf32> to vector<2x8xf32>
    %693 = arith.cmpf oge, %675, %692 : vector<2x8xf32>
    %c8_i32_137 = arith.constant 8 : i32
    %694 = vector.broadcast %c8_i32_137 : i32 to vector<2x8xi32>
    %695 = arith.select %693, %16, %694 : vector<2x8xi1>, vector<2x8xi32>
    %cst_138 = arith.constant dense<2147483647> : vector<2xi32>
    %696 = vector.multi_reduction <minsi>, %695, %cst_138 [1] : vector<2x8xi32> to vector<2xi32>
    %697 = vector.shape_cast %696 : vector<2xi32> to vector<2x1xi32>
    %698 = vector.broadcast %697 : vector<2x1xi32> to vector<2x8xi32>
    %699 = arith.cmpi eq, %16, %698 : vector<2x8xi32>
    %700 = arith.extui %699 : vector<2x8xi1> to vector<2x8xi32>
    %701 = arith.sitofp %700 : vector<2x8xi32> to vector<2x8xf32>
    %702 = arith.mulf %701, %691 : vector<2x8xf32>
    %cst_139 = arith.constant dense<0.000000e+00> : vector<2xf32>
    %703 = vector.multi_reduction <add>, %702, %cst_139 [1] : vector<2x8xf32> to vector<2xf32>
    %704 = vector.shape_cast %703 : vector<2xf32> to vector<2x1xf32>
    %705 = arith.addf %609, %704 : vector<2x1xf32>
    %cst_140 = arith.constant 0.000000e+00 : f32
    %706 = vector.broadcast %cst_140 : f32 to vector<2x8xf32>
    %707 = arith.subf %706, %686 : vector<2x8xf32>
    %708 = arith.mulf %707, %691 : vector<2x8xf32>
    %cst_141 = arith.constant 0.000000e+00 : f32
    %709 = vector.broadcast %cst_141 : f32 to vector<2x8xf32>
    %710 = arith.select %636, %708, %709 : vector<2x8xi1>, vector<2x8xf32>
    %cst_142 = arith.constant dense<0.000000e+00> : vector<2xf32>
    %711 = vector.multi_reduction <add>, %710, %cst_142 [1] : vector<2x8xf32> to vector<2xf32>
    %712 = vector.shape_cast %711 : vector<2xf32> to vector<2x1xf32>
    %713 = arith.addf %617, %712 : vector<2x1xf32>
    %714 = vector.shape_cast %686 : vector<2x8xf32> to vector<2x8x1xf32>
    %715 = vector.broadcast %714 : vector<2x8x1xf32> to vector<2x8x32xf32>
    %716 = arith.mulf %333, %715 : vector<2x8x32xf32>
    %cst_143 = arith.constant dense<0.000000e+00> : vector<2x32xf32>
    %717 = vector.multi_reduction <add>, %716, %cst_143 [1] : vector<2x8x32xf32> to vector<2x32xf32>
    %718 = arith.addf %717, %666 : vector<2x32xf32>
    %719 = vector.broadcast %8 : vector<1x32xf32> to vector<2x32xf32>
    %720 = arith.addf %718, %719 : vector<2x32xf32>
    %721 = math.tanh %720 : vector<2x32xf32>
    %c3_i32_144 = arith.constant 3 : i32
    %722 = vector.broadcast %c3_i32_144 : i32 to vector<2x8xi32>
    %723 = arith.cmpi eq, %16, %722 : vector<2x8xi32>
    %724 = vector.shape_cast %697 : vector<2x1xi32> to vector<2x1xi32>
    %725 = vector.broadcast %724 : vector<2x1xi32> to vector<2x8xi32>
    %726 = arith.select %723, %725, %630 : vector<2x8xi1>, vector<2x8xi32>
    %727 = vector.shape_cast %701 : vector<2x8xf32> to vector<2x8x1xf32>
    %728 = vector.broadcast %727 : vector<2x8x1xf32> to vector<2x8x128xf32>
    %729 = arith.mulf %340, %728 : vector<2x8x128xf32>
    %cst_145 = arith.constant dense<0.000000e+00> : vector<2x128xf32>
    %730 = vector.multi_reduction <add>, %729, %cst_145 [1] : vector<2x8x128xf32> to vector<2x128xf32>
    %cst_146 = arith.constant dense<true> : vector<2x8xi1>
    %731 = arith.xori %699, %cst_146 : vector<2x8xi1>
    %732 = arith.andi %636, %731 : vector<2x8xi1>
    %cst_147 = arith.constant dense<0.000000e+00> : vector<2x128xf32>
    %733 = tpu.matmul %721, %14, %cst_147 {dimension_numbers = #tpu.dot_dimension_numbers<[1], [0], [0], [1], [0, 0, 1, 1], [], []>} : vector<2x32xf32>, vector<32x128xf32>, vector<2x128xf32> -> vector<2x128xf32>
    %734 = arith.addf %730, %733 : vector<2x128xf32>
    %735 = vector.extract_strided_slice %734 {offsets = [0, 0], sizes = [2, 32], strides = [1, 1]} : vector<2x128xf32> to vector<2x32xf32>
    %736 = arith.negf %735 : vector<2x32xf32>
    %737 = math.exp %736 : vector<2x32xf32>
    %cst_148 = arith.constant 1.000000e+00 : f32
    %738 = vector.broadcast %cst_148 : f32 to vector<2x32xf32>
    %739 = arith.addf %738, %737 : vector<2x32xf32>
    %740 = arith.divf %738, %739 : vector<2x32xf32>
    %741 = vector.extract_strided_slice %734 {offsets = [0, 32], sizes = [2, 32], strides = [1, 1]} : vector<2x128xf32> to vector<2x32xf32>
    %742 = arith.negf %741 : vector<2x32xf32>
    %743 = math.exp %742 : vector<2x32xf32>
    %cst_149 = arith.constant 1.000000e+00 : f32
    %744 = vector.broadcast %cst_149 : f32 to vector<2x32xf32>
    %745 = arith.addf %744, %743 : vector<2x32xf32>
    %746 = arith.divf %744, %745 : vector<2x32xf32>
    %747 = vector.extract_strided_slice %734 {offsets = [0, 64], sizes = [2, 32], strides = [1, 1]} : vector<2x128xf32> to vector<2x32xf32>
    %748 = math.tanh %747 : vector<2x32xf32>
    %749 = vector.extract_strided_slice %734 {offsets = [0, 96], sizes = [2, 32], strides = [1, 1]} : vector<2x128xf32> to vector<2x32xf32>
    %750 = arith.negf %749 : vector<2x32xf32>
    %751 = math.exp %750 : vector<2x32xf32>
    %cst_150 = arith.constant 1.000000e+00 : f32
    %752 = vector.broadcast %cst_150 : f32 to vector<2x32xf32>
    %753 = arith.addf %752, %751 : vector<2x32xf32>
    %754 = arith.divf %752, %753 : vector<2x32xf32>
    %755 = arith.mulf %746, %661 : vector<2x32xf32>
    %756 = arith.mulf %740, %748 : vector<2x32xf32>
    %757 = arith.addf %755, %756 : vector<2x32xf32>
    %758 = math.tanh %757 : vector<2x32xf32>
    %759 = arith.mulf %754, %758 : vector<2x32xf32>
    %cst_151 = arith.constant dense<0.000000e+00> : vector<2x64xf32>
    %760 = tpu.matmul %759, %7, %cst_151 {dimension_numbers = #tpu.dot_dimension_numbers<[1], [0], [0], [1], [0, 0, 1, 1], [], []>} : vector<2x32xf32>, vector<32x64xf32>, vector<2x64xf32> -> vector<2x64xf32>
    %761 = vector.extract_strided_slice %760 {offsets = [0, 0], sizes = [2, 32], strides = [1, 1]} : vector<2x64xf32> to vector<2x32xf32>
    %762 = vector.extract_strided_slice %760 {offsets = [0, 32], sizes = [2, 32], strides = [1, 1]} : vector<2x64xf32> to vector<2x32xf32>
    %763 = vector.shape_cast %761 : vector<2x32xf32> to vector<2x1x32xf32>
    %764 = vector.broadcast %763 : vector<2x1x32xf32> to vector<2x8x32xf32>
    %765 = arith.addf %764, %336 : vector<2x8x32xf32>
    %766 = math.tanh %765 : vector<2x8x32xf32>
    %767 = vector.broadcast %12 : vector<1x1x32xf32> to vector<2x8x32xf32>
    %768 = arith.mulf %766, %767 : vector<2x8x32xf32>
    %cst_152 = arith.constant dense<0.000000e+00> : vector<2x8xf32>
    %769 = vector.multi_reduction <add>, %768, %cst_152 [2] : vector<2x8x32xf32> to vector<2x8xf32>
    %cst_153 = arith.constant -1.000000e+30 : f32
    %770 = vector.broadcast %cst_153 : f32 to vector<2x8xf32>
    %771 = arith.select %732, %769, %770 : vector<2x8xi1>, vector<2x8xf32>
    %cst_154 = arith.constant dense<0xFF800000> : vector<2xf32>
    %772 = vector.multi_reduction <maximumf>, %771, %cst_154 [1] : vector<2x8xf32> to vector<2xf32>
    %773 = vector.shape_cast %772 : vector<2xf32> to vector<2x1xf32>
    %774 = vector.broadcast %773 : vector<2x1xf32> to vector<2x8xf32>
    %775 = arith.subf %771, %774 : vector<2x8xf32>
    %776 = math.exp %775 : vector<2x8xf32>
    %cst_155 = arith.constant 0.000000e+00 : f32
    %777 = vector.broadcast %cst_155 : f32 to vector<2x8xf32>
    %778 = arith.select %732, %776, %777 : vector<2x8xi1>, vector<2x8xf32>
    %cst_156 = arith.constant dense<0.000000e+00> : vector<2xf32>
    %779 = vector.multi_reduction <add>, %778, %cst_156 [1] : vector<2x8xf32> to vector<2xf32>
    %780 = vector.shape_cast %779 : vector<2xf32> to vector<2x1xf32>
    %781 = vector.broadcast %780 : vector<2x1xf32> to vector<2x8xf32>
    %782 = arith.divf %778, %781 : vector<2x8xf32>
    %783 = vector.broadcast %773 : vector<2x1xf32> to vector<2x8xf32>
    %784 = arith.subf %771, %783 : vector<2x8xf32>
    %785 = math.log %780 : vector<2x1xf32>
    %786 = vector.broadcast %785 : vector<2x1xf32> to vector<2x8xf32>
    %787 = arith.subf %784, %786 : vector<2x8xf32>
    %788 = vector.broadcast %773 : vector<2x1xf32> to vector<2x8xf32>
    %789 = arith.cmpf oge, %771, %788 : vector<2x8xf32>
    %c8_i32_157 = arith.constant 8 : i32
    %790 = vector.broadcast %c8_i32_157 : i32 to vector<2x8xi32>
    %791 = arith.select %789, %16, %790 : vector<2x8xi1>, vector<2x8xi32>
    %cst_158 = arith.constant dense<2147483647> : vector<2xi32>
    %792 = vector.multi_reduction <minsi>, %791, %cst_158 [1] : vector<2x8xi32> to vector<2xi32>
    %793 = vector.shape_cast %792 : vector<2xi32> to vector<2x1xi32>
    %794 = vector.broadcast %793 : vector<2x1xi32> to vector<2x8xi32>
    %795 = arith.cmpi eq, %16, %794 : vector<2x8xi32>
    %796 = arith.extui %795 : vector<2x8xi1> to vector<2x8xi32>
    %797 = arith.sitofp %796 : vector<2x8xi32> to vector<2x8xf32>
    %798 = arith.mulf %797, %787 : vector<2x8xf32>
    %cst_159 = arith.constant dense<0.000000e+00> : vector<2xf32>
    %799 = vector.multi_reduction <add>, %798, %cst_159 [1] : vector<2x8xf32> to vector<2xf32>
    %800 = vector.shape_cast %799 : vector<2xf32> to vector<2x1xf32>
    %801 = arith.addf %705, %800 : vector<2x1xf32>
    %cst_160 = arith.constant 0.000000e+00 : f32
    %802 = vector.broadcast %cst_160 : f32 to vector<2x8xf32>
    %803 = arith.subf %802, %782 : vector<2x8xf32>
    %804 = arith.mulf %803, %787 : vector<2x8xf32>
    %cst_161 = arith.constant 0.000000e+00 : f32
    %805 = vector.broadcast %cst_161 : f32 to vector<2x8xf32>
    %806 = arith.select %732, %804, %805 : vector<2x8xi1>, vector<2x8xf32>
    %cst_162 = arith.constant dense<0.000000e+00> : vector<2xf32>
    %807 = vector.multi_reduction <add>, %806, %cst_162 [1] : vector<2x8xf32> to vector<2xf32>
    %808 = vector.shape_cast %807 : vector<2xf32> to vector<2x1xf32>
    %809 = arith.addf %713, %808 : vector<2x1xf32>
    %810 = vector.shape_cast %782 : vector<2x8xf32> to vector<2x8x1xf32>
    %811 = vector.broadcast %810 : vector<2x8x1xf32> to vector<2x8x32xf32>
    %812 = arith.mulf %333, %811 : vector<2x8x32xf32>
    %cst_163 = arith.constant dense<0.000000e+00> : vector<2x32xf32>
    %813 = vector.multi_reduction <add>, %812, %cst_163 [1] : vector<2x8x32xf32> to vector<2x32xf32>
    %814 = arith.addf %813, %762 : vector<2x32xf32>
    %815 = vector.broadcast %8 : vector<1x32xf32> to vector<2x32xf32>
    %816 = arith.addf %814, %815 : vector<2x32xf32>
    %817 = math.tanh %816 : vector<2x32xf32>
    %c4_i32_164 = arith.constant 4 : i32
    %818 = vector.broadcast %c4_i32_164 : i32 to vector<2x8xi32>
    %819 = arith.cmpi eq, %16, %818 : vector<2x8xi32>
    %820 = vector.shape_cast %793 : vector<2x1xi32> to vector<2x1xi32>
    %821 = vector.broadcast %820 : vector<2x1xi32> to vector<2x8xi32>
    %822 = arith.select %819, %821, %726 : vector<2x8xi1>, vector<2x8xi32>
    %823 = vector.shape_cast %797 : vector<2x8xf32> to vector<2x8x1xf32>
    %824 = vector.broadcast %823 : vector<2x8x1xf32> to vector<2x8x128xf32>
    %825 = arith.mulf %340, %824 : vector<2x8x128xf32>
    %cst_165 = arith.constant dense<0.000000e+00> : vector<2x128xf32>
    %826 = vector.multi_reduction <add>, %825, %cst_165 [1] : vector<2x8x128xf32> to vector<2x128xf32>
    %cst_166 = arith.constant dense<true> : vector<2x8xi1>
    %827 = arith.xori %795, %cst_166 : vector<2x8xi1>
    %828 = arith.andi %732, %827 : vector<2x8xi1>
    %cst_167 = arith.constant dense<0.000000e+00> : vector<2x128xf32>
    %829 = tpu.matmul %817, %14, %cst_167 {dimension_numbers = #tpu.dot_dimension_numbers<[1], [0], [0], [1], [0, 0, 1, 1], [], []>} : vector<2x32xf32>, vector<32x128xf32>, vector<2x128xf32> -> vector<2x128xf32>
    %830 = arith.addf %826, %829 : vector<2x128xf32>
    %831 = vector.extract_strided_slice %830 {offsets = [0, 0], sizes = [2, 32], strides = [1, 1]} : vector<2x128xf32> to vector<2x32xf32>
    %832 = arith.negf %831 : vector<2x32xf32>
    %833 = math.exp %832 : vector<2x32xf32>
    %cst_168 = arith.constant 1.000000e+00 : f32
    %834 = vector.broadcast %cst_168 : f32 to vector<2x32xf32>
    %835 = arith.addf %834, %833 : vector<2x32xf32>
    %836 = arith.divf %834, %835 : vector<2x32xf32>
    %837 = vector.extract_strided_slice %830 {offsets = [0, 32], sizes = [2, 32], strides = [1, 1]} : vector<2x128xf32> to vector<2x32xf32>
    %838 = arith.negf %837 : vector<2x32xf32>
    %839 = math.exp %838 : vector<2x32xf32>
    %cst_169 = arith.constant 1.000000e+00 : f32
    %840 = vector.broadcast %cst_169 : f32 to vector<2x32xf32>
    %841 = arith.addf %840, %839 : vector<2x32xf32>
    %842 = arith.divf %840, %841 : vector<2x32xf32>
    %843 = vector.extract_strided_slice %830 {offsets = [0, 64], sizes = [2, 32], strides = [1, 1]} : vector<2x128xf32> to vector<2x32xf32>
    %844 = math.tanh %843 : vector<2x32xf32>
    %845 = vector.extract_strided_slice %830 {offsets = [0, 96], sizes = [2, 32], strides = [1, 1]} : vector<2x128xf32> to vector<2x32xf32>
    %846 = arith.negf %845 : vector<2x32xf32>
    %847 = math.exp %846 : vector<2x32xf32>
    %cst_170 = arith.constant 1.000000e+00 : f32
    %848 = vector.broadcast %cst_170 : f32 to vector<2x32xf32>
    %849 = arith.addf %848, %847 : vector<2x32xf32>
    %850 = arith.divf %848, %849 : vector<2x32xf32>
    %851 = arith.mulf %842, %757 : vector<2x32xf32>
    %852 = arith.mulf %836, %844 : vector<2x32xf32>
    %853 = arith.addf %851, %852 : vector<2x32xf32>
    %854 = math.tanh %853 : vector<2x32xf32>
    %855 = arith.mulf %850, %854 : vector<2x32xf32>
    %cst_171 = arith.constant dense<0.000000e+00> : vector<2x64xf32>
    %856 = tpu.matmul %855, %7, %cst_171 {dimension_numbers = #tpu.dot_dimension_numbers<[1], [0], [0], [1], [0, 0, 1, 1], [], []>} : vector<2x32xf32>, vector<32x64xf32>, vector<2x64xf32> -> vector<2x64xf32>
    %857 = vector.extract_strided_slice %856 {offsets = [0, 0], sizes = [2, 32], strides = [1, 1]} : vector<2x64xf32> to vector<2x32xf32>
    %858 = vector.extract_strided_slice %856 {offsets = [0, 32], sizes = [2, 32], strides = [1, 1]} : vector<2x64xf32> to vector<2x32xf32>
    %859 = vector.shape_cast %857 : vector<2x32xf32> to vector<2x1x32xf32>
    %860 = vector.broadcast %859 : vector<2x1x32xf32> to vector<2x8x32xf32>
    %861 = arith.addf %860, %336 : vector<2x8x32xf32>
    %862 = math.tanh %861 : vector<2x8x32xf32>
    %863 = vector.broadcast %12 : vector<1x1x32xf32> to vector<2x8x32xf32>
    %864 = arith.mulf %862, %863 : vector<2x8x32xf32>
    %cst_172 = arith.constant dense<0.000000e+00> : vector<2x8xf32>
    %865 = vector.multi_reduction <add>, %864, %cst_172 [2] : vector<2x8x32xf32> to vector<2x8xf32>
    %cst_173 = arith.constant -1.000000e+30 : f32
    %866 = vector.broadcast %cst_173 : f32 to vector<2x8xf32>
    %867 = arith.select %828, %865, %866 : vector<2x8xi1>, vector<2x8xf32>
    %cst_174 = arith.constant dense<0xFF800000> : vector<2xf32>
    %868 = vector.multi_reduction <maximumf>, %867, %cst_174 [1] : vector<2x8xf32> to vector<2xf32>
    %869 = vector.shape_cast %868 : vector<2xf32> to vector<2x1xf32>
    %870 = vector.broadcast %869 : vector<2x1xf32> to vector<2x8xf32>
    %871 = arith.subf %867, %870 : vector<2x8xf32>
    %872 = math.exp %871 : vector<2x8xf32>
    %cst_175 = arith.constant 0.000000e+00 : f32
    %873 = vector.broadcast %cst_175 : f32 to vector<2x8xf32>
    %874 = arith.select %828, %872, %873 : vector<2x8xi1>, vector<2x8xf32>
    %cst_176 = arith.constant dense<0.000000e+00> : vector<2xf32>
    %875 = vector.multi_reduction <add>, %874, %cst_176 [1] : vector<2x8xf32> to vector<2xf32>
    %876 = vector.shape_cast %875 : vector<2xf32> to vector<2x1xf32>
    %877 = vector.broadcast %876 : vector<2x1xf32> to vector<2x8xf32>
    %878 = arith.divf %874, %877 : vector<2x8xf32>
    %879 = vector.broadcast %869 : vector<2x1xf32> to vector<2x8xf32>
    %880 = arith.subf %867, %879 : vector<2x8xf32>
    %881 = math.log %876 : vector<2x1xf32>
    %882 = vector.broadcast %881 : vector<2x1xf32> to vector<2x8xf32>
    %883 = arith.subf %880, %882 : vector<2x8xf32>
    %884 = vector.broadcast %869 : vector<2x1xf32> to vector<2x8xf32>
    %885 = arith.cmpf oge, %867, %884 : vector<2x8xf32>
    %c8_i32_177 = arith.constant 8 : i32
    %886 = vector.broadcast %c8_i32_177 : i32 to vector<2x8xi32>
    %887 = arith.select %885, %16, %886 : vector<2x8xi1>, vector<2x8xi32>
    %cst_178 = arith.constant dense<2147483647> : vector<2xi32>
    %888 = vector.multi_reduction <minsi>, %887, %cst_178 [1] : vector<2x8xi32> to vector<2xi32>
    %889 = vector.shape_cast %888 : vector<2xi32> to vector<2x1xi32>
    %890 = vector.broadcast %889 : vector<2x1xi32> to vector<2x8xi32>
    %891 = arith.cmpi eq, %16, %890 : vector<2x8xi32>
    %892 = arith.extui %891 : vector<2x8xi1> to vector<2x8xi32>
    %893 = arith.sitofp %892 : vector<2x8xi32> to vector<2x8xf32>
    %894 = arith.mulf %893, %883 : vector<2x8xf32>
    %cst_179 = arith.constant dense<0.000000e+00> : vector<2xf32>
    %895 = vector.multi_reduction <add>, %894, %cst_179 [1] : vector<2x8xf32> to vector<2xf32>
    %896 = vector.shape_cast %895 : vector<2xf32> to vector<2x1xf32>
    %897 = arith.addf %801, %896 : vector<2x1xf32>
    %cst_180 = arith.constant 0.000000e+00 : f32
    %898 = vector.broadcast %cst_180 : f32 to vector<2x8xf32>
    %899 = arith.subf %898, %878 : vector<2x8xf32>
    %900 = arith.mulf %899, %883 : vector<2x8xf32>
    %cst_181 = arith.constant 0.000000e+00 : f32
    %901 = vector.broadcast %cst_181 : f32 to vector<2x8xf32>
    %902 = arith.select %828, %900, %901 : vector<2x8xi1>, vector<2x8xf32>
    %cst_182 = arith.constant dense<0.000000e+00> : vector<2xf32>
    %903 = vector.multi_reduction <add>, %902, %cst_182 [1] : vector<2x8xf32> to vector<2xf32>
    %904 = vector.shape_cast %903 : vector<2xf32> to vector<2x1xf32>
    %905 = arith.addf %809, %904 : vector<2x1xf32>
    %906 = vector.shape_cast %878 : vector<2x8xf32> to vector<2x8x1xf32>
    %907 = vector.broadcast %906 : vector<2x8x1xf32> to vector<2x8x32xf32>
    %908 = arith.mulf %333, %907 : vector<2x8x32xf32>
    %cst_183 = arith.constant dense<0.000000e+00> : vector<2x32xf32>
    %909 = vector.multi_reduction <add>, %908, %cst_183 [1] : vector<2x8x32xf32> to vector<2x32xf32>
    %910 = arith.addf %909, %858 : vector<2x32xf32>
    %911 = vector.broadcast %8 : vector<1x32xf32> to vector<2x32xf32>
    %912 = arith.addf %910, %911 : vector<2x32xf32>
    %913 = math.tanh %912 : vector<2x32xf32>
    %c5_i32_184 = arith.constant 5 : i32
    %914 = vector.broadcast %c5_i32_184 : i32 to vector<2x8xi32>
    %915 = arith.cmpi eq, %16, %914 : vector<2x8xi32>
    %916 = vector.shape_cast %889 : vector<2x1xi32> to vector<2x1xi32>
    %917 = vector.broadcast %916 : vector<2x1xi32> to vector<2x8xi32>
    %918 = arith.select %915, %917, %822 : vector<2x8xi1>, vector<2x8xi32>
    %919 = vector.shape_cast %893 : vector<2x8xf32> to vector<2x8x1xf32>
    %920 = vector.broadcast %919 : vector<2x8x1xf32> to vector<2x8x128xf32>
    %921 = arith.mulf %340, %920 : vector<2x8x128xf32>
    %cst_185 = arith.constant dense<0.000000e+00> : vector<2x128xf32>
    %922 = vector.multi_reduction <add>, %921, %cst_185 [1] : vector<2x8x128xf32> to vector<2x128xf32>
    %cst_186 = arith.constant dense<true> : vector<2x8xi1>
    %923 = arith.xori %891, %cst_186 : vector<2x8xi1>
    %924 = arith.andi %828, %923 : vector<2x8xi1>
    %cst_187 = arith.constant dense<0.000000e+00> : vector<2x128xf32>
    %925 = tpu.matmul %913, %14, %cst_187 {dimension_numbers = #tpu.dot_dimension_numbers<[1], [0], [0], [1], [0, 0, 1, 1], [], []>} : vector<2x32xf32>, vector<32x128xf32>, vector<2x128xf32> -> vector<2x128xf32>
    %926 = arith.addf %922, %925 : vector<2x128xf32>
    %927 = vector.extract_strided_slice %926 {offsets = [0, 0], sizes = [2, 32], strides = [1, 1]} : vector<2x128xf32> to vector<2x32xf32>
    %928 = arith.negf %927 : vector<2x32xf32>
    %929 = math.exp %928 : vector<2x32xf32>
    %cst_188 = arith.constant 1.000000e+00 : f32
    %930 = vector.broadcast %cst_188 : f32 to vector<2x32xf32>
    %931 = arith.addf %930, %929 : vector<2x32xf32>
    %932 = arith.divf %930, %931 : vector<2x32xf32>
    %933 = vector.extract_strided_slice %926 {offsets = [0, 32], sizes = [2, 32], strides = [1, 1]} : vector<2x128xf32> to vector<2x32xf32>
    %934 = arith.negf %933 : vector<2x32xf32>
    %935 = math.exp %934 : vector<2x32xf32>
    %cst_189 = arith.constant 1.000000e+00 : f32
    %936 = vector.broadcast %cst_189 : f32 to vector<2x32xf32>
    %937 = arith.addf %936, %935 : vector<2x32xf32>
    %938 = arith.divf %936, %937 : vector<2x32xf32>
    %939 = vector.extract_strided_slice %926 {offsets = [0, 64], sizes = [2, 32], strides = [1, 1]} : vector<2x128xf32> to vector<2x32xf32>
    %940 = math.tanh %939 : vector<2x32xf32>
    %941 = vector.extract_strided_slice %926 {offsets = [0, 96], sizes = [2, 32], strides = [1, 1]} : vector<2x128xf32> to vector<2x32xf32>
    %942 = arith.negf %941 : vector<2x32xf32>
    %943 = math.exp %942 : vector<2x32xf32>
    %cst_190 = arith.constant 1.000000e+00 : f32
    %944 = vector.broadcast %cst_190 : f32 to vector<2x32xf32>
    %945 = arith.addf %944, %943 : vector<2x32xf32>
    %946 = arith.divf %944, %945 : vector<2x32xf32>
    %947 = arith.mulf %938, %853 : vector<2x32xf32>
    %948 = arith.mulf %932, %940 : vector<2x32xf32>
    %949 = arith.addf %947, %948 : vector<2x32xf32>
    %950 = math.tanh %949 : vector<2x32xf32>
    %951 = arith.mulf %946, %950 : vector<2x32xf32>
    %cst_191 = arith.constant dense<0.000000e+00> : vector<2x64xf32>
    %952 = tpu.matmul %951, %7, %cst_191 {dimension_numbers = #tpu.dot_dimension_numbers<[1], [0], [0], [1], [0, 0, 1, 1], [], []>} : vector<2x32xf32>, vector<32x64xf32>, vector<2x64xf32> -> vector<2x64xf32>
    %953 = vector.extract_strided_slice %952 {offsets = [0, 0], sizes = [2, 32], strides = [1, 1]} : vector<2x64xf32> to vector<2x32xf32>
    %954 = vector.extract_strided_slice %952 {offsets = [0, 32], sizes = [2, 32], strides = [1, 1]} : vector<2x64xf32> to vector<2x32xf32>
    %955 = vector.shape_cast %953 : vector<2x32xf32> to vector<2x1x32xf32>
    %956 = vector.broadcast %955 : vector<2x1x32xf32> to vector<2x8x32xf32>
    %957 = arith.addf %956, %336 : vector<2x8x32xf32>
    %958 = math.tanh %957 : vector<2x8x32xf32>
    %959 = vector.broadcast %12 : vector<1x1x32xf32> to vector<2x8x32xf32>
    %960 = arith.mulf %958, %959 : vector<2x8x32xf32>
    %cst_192 = arith.constant dense<0.000000e+00> : vector<2x8xf32>
    %961 = vector.multi_reduction <add>, %960, %cst_192 [2] : vector<2x8x32xf32> to vector<2x8xf32>
    %cst_193 = arith.constant -1.000000e+30 : f32
    %962 = vector.broadcast %cst_193 : f32 to vector<2x8xf32>
    %963 = arith.select %924, %961, %962 : vector<2x8xi1>, vector<2x8xf32>
    %cst_194 = arith.constant dense<0xFF800000> : vector<2xf32>
    %964 = vector.multi_reduction <maximumf>, %963, %cst_194 [1] : vector<2x8xf32> to vector<2xf32>
    %965 = vector.shape_cast %964 : vector<2xf32> to vector<2x1xf32>
    %966 = vector.broadcast %965 : vector<2x1xf32> to vector<2x8xf32>
    %967 = arith.subf %963, %966 : vector<2x8xf32>
    %968 = math.exp %967 : vector<2x8xf32>
    %cst_195 = arith.constant 0.000000e+00 : f32
    %969 = vector.broadcast %cst_195 : f32 to vector<2x8xf32>
    %970 = arith.select %924, %968, %969 : vector<2x8xi1>, vector<2x8xf32>
    %cst_196 = arith.constant dense<0.000000e+00> : vector<2xf32>
    %971 = vector.multi_reduction <add>, %970, %cst_196 [1] : vector<2x8xf32> to vector<2xf32>
    %972 = vector.shape_cast %971 : vector<2xf32> to vector<2x1xf32>
    %973 = vector.broadcast %972 : vector<2x1xf32> to vector<2x8xf32>
    %974 = arith.divf %970, %973 : vector<2x8xf32>
    %975 = vector.broadcast %965 : vector<2x1xf32> to vector<2x8xf32>
    %976 = arith.subf %963, %975 : vector<2x8xf32>
    %977 = math.log %972 : vector<2x1xf32>
    %978 = vector.broadcast %977 : vector<2x1xf32> to vector<2x8xf32>
    %979 = arith.subf %976, %978 : vector<2x8xf32>
    %980 = vector.broadcast %965 : vector<2x1xf32> to vector<2x8xf32>
    %981 = arith.cmpf oge, %963, %980 : vector<2x8xf32>
    %c8_i32_197 = arith.constant 8 : i32
    %982 = vector.broadcast %c8_i32_197 : i32 to vector<2x8xi32>
    %983 = arith.select %981, %16, %982 : vector<2x8xi1>, vector<2x8xi32>
    %cst_198 = arith.constant dense<2147483647> : vector<2xi32>
    %984 = vector.multi_reduction <minsi>, %983, %cst_198 [1] : vector<2x8xi32> to vector<2xi32>
    %985 = vector.shape_cast %984 : vector<2xi32> to vector<2x1xi32>
    %986 = vector.broadcast %985 : vector<2x1xi32> to vector<2x8xi32>
    %987 = arith.cmpi eq, %16, %986 : vector<2x8xi32>
    %988 = arith.extui %987 : vector<2x8xi1> to vector<2x8xi32>
    %989 = arith.sitofp %988 : vector<2x8xi32> to vector<2x8xf32>
    %990 = arith.mulf %989, %979 : vector<2x8xf32>
    %cst_199 = arith.constant dense<0.000000e+00> : vector<2xf32>
    %991 = vector.multi_reduction <add>, %990, %cst_199 [1] : vector<2x8xf32> to vector<2xf32>
    %992 = vector.shape_cast %991 : vector<2xf32> to vector<2x1xf32>
    %993 = arith.addf %897, %992 : vector<2x1xf32>
    %cst_200 = arith.constant 0.000000e+00 : f32
    %994 = vector.broadcast %cst_200 : f32 to vector<2x8xf32>
    %995 = arith.subf %994, %974 : vector<2x8xf32>
    %996 = arith.mulf %995, %979 : vector<2x8xf32>
    %cst_201 = arith.constant 0.000000e+00 : f32
    %997 = vector.broadcast %cst_201 : f32 to vector<2x8xf32>
    %998 = arith.select %924, %996, %997 : vector<2x8xi1>, vector<2x8xf32>
    %cst_202 = arith.constant dense<0.000000e+00> : vector<2xf32>
    %999 = vector.multi_reduction <add>, %998, %cst_202 [1] : vector<2x8xf32> to vector<2xf32>
    %1000 = vector.shape_cast %999 : vector<2xf32> to vector<2x1xf32>
    %1001 = arith.addf %905, %1000 : vector<2x1xf32>
    %1002 = vector.shape_cast %974 : vector<2x8xf32> to vector<2x8x1xf32>
    %1003 = vector.broadcast %1002 : vector<2x8x1xf32> to vector<2x8x32xf32>
    %1004 = arith.mulf %333, %1003 : vector<2x8x32xf32>
    %cst_203 = arith.constant dense<0.000000e+00> : vector<2x32xf32>
    %1005 = vector.multi_reduction <add>, %1004, %cst_203 [1] : vector<2x8x32xf32> to vector<2x32xf32>
    %1006 = arith.addf %1005, %954 : vector<2x32xf32>
    %1007 = vector.broadcast %8 : vector<1x32xf32> to vector<2x32xf32>
    %1008 = arith.addf %1006, %1007 : vector<2x32xf32>
    %1009 = math.tanh %1008 : vector<2x32xf32>
    %c6_i32_204 = arith.constant 6 : i32
    %1010 = vector.broadcast %c6_i32_204 : i32 to vector<2x8xi32>
    %1011 = arith.cmpi eq, %16, %1010 : vector<2x8xi32>
    %1012 = vector.shape_cast %985 : vector<2x1xi32> to vector<2x1xi32>
    %1013 = vector.broadcast %1012 : vector<2x1xi32> to vector<2x8xi32>
    %1014 = arith.select %1011, %1013, %918 : vector<2x8xi1>, vector<2x8xi32>
    %1015 = vector.shape_cast %989 : vector<2x8xf32> to vector<2x8x1xf32>
    %1016 = vector.broadcast %1015 : vector<2x8x1xf32> to vector<2x8x128xf32>
    %1017 = arith.mulf %340, %1016 : vector<2x8x128xf32>
    %cst_205 = arith.constant dense<0.000000e+00> : vector<2x128xf32>
    %1018 = vector.multi_reduction <add>, %1017, %cst_205 [1] : vector<2x8x128xf32> to vector<2x128xf32>
    %cst_206 = arith.constant dense<true> : vector<2x8xi1>
    %1019 = arith.xori %987, %cst_206 : vector<2x8xi1>
    %1020 = arith.andi %924, %1019 : vector<2x8xi1>
    %cst_207 = arith.constant dense<0.000000e+00> : vector<2x128xf32>
    %1021 = tpu.matmul %1009, %14, %cst_207 {dimension_numbers = #tpu.dot_dimension_numbers<[1], [0], [0], [1], [0, 0, 1, 1], [], []>} : vector<2x32xf32>, vector<32x128xf32>, vector<2x128xf32> -> vector<2x128xf32>
    %1022 = arith.addf %1018, %1021 : vector<2x128xf32>
    %1023 = vector.extract_strided_slice %1022 {offsets = [0, 0], sizes = [2, 32], strides = [1, 1]} : vector<2x128xf32> to vector<2x32xf32>
    %1024 = arith.negf %1023 : vector<2x32xf32>
    %1025 = math.exp %1024 : vector<2x32xf32>
    %cst_208 = arith.constant 1.000000e+00 : f32
    %1026 = vector.broadcast %cst_208 : f32 to vector<2x32xf32>
    %1027 = arith.addf %1026, %1025 : vector<2x32xf32>
    %1028 = arith.divf %1026, %1027 : vector<2x32xf32>
    %1029 = vector.extract_strided_slice %1022 {offsets = [0, 32], sizes = [2, 32], strides = [1, 1]} : vector<2x128xf32> to vector<2x32xf32>
    %1030 = arith.negf %1029 : vector<2x32xf32>
    %1031 = math.exp %1030 : vector<2x32xf32>
    %cst_209 = arith.constant 1.000000e+00 : f32
    %1032 = vector.broadcast %cst_209 : f32 to vector<2x32xf32>
    %1033 = arith.addf %1032, %1031 : vector<2x32xf32>
    %1034 = arith.divf %1032, %1033 : vector<2x32xf32>
    %1035 = vector.extract_strided_slice %1022 {offsets = [0, 64], sizes = [2, 32], strides = [1, 1]} : vector<2x128xf32> to vector<2x32xf32>
    %1036 = math.tanh %1035 : vector<2x32xf32>
    %1037 = vector.extract_strided_slice %1022 {offsets = [0, 96], sizes = [2, 32], strides = [1, 1]} : vector<2x128xf32> to vector<2x32xf32>
    %1038 = arith.negf %1037 : vector<2x32xf32>
    %1039 = math.exp %1038 : vector<2x32xf32>
    %cst_210 = arith.constant 1.000000e+00 : f32
    %1040 = vector.broadcast %cst_210 : f32 to vector<2x32xf32>
    %1041 = arith.addf %1040, %1039 : vector<2x32xf32>
    %1042 = arith.divf %1040, %1041 : vector<2x32xf32>
    %1043 = arith.mulf %1034, %949 : vector<2x32xf32>
    %1044 = arith.mulf %1028, %1036 : vector<2x32xf32>
    %1045 = arith.addf %1043, %1044 : vector<2x32xf32>
    %1046 = math.tanh %1045 : vector<2x32xf32>
    %1047 = arith.mulf %1042, %1046 : vector<2x32xf32>
    %cst_211 = arith.constant dense<0.000000e+00> : vector<2x64xf32>
    %1048 = tpu.matmul %1047, %7, %cst_211 {dimension_numbers = #tpu.dot_dimension_numbers<[1], [0], [0], [1], [0, 0, 1, 1], [], []>} : vector<2x32xf32>, vector<32x64xf32>, vector<2x64xf32> -> vector<2x64xf32>
    %1049 = vector.extract_strided_slice %1048 {offsets = [0, 0], sizes = [2, 32], strides = [1, 1]} : vector<2x64xf32> to vector<2x32xf32>
    %1050 = vector.shape_cast %1049 : vector<2x32xf32> to vector<2x1x32xf32>
    %1051 = vector.broadcast %1050 : vector<2x1x32xf32> to vector<2x8x32xf32>
    %1052 = arith.addf %1051, %336 : vector<2x8x32xf32>
    %1053 = math.tanh %1052 : vector<2x8x32xf32>
    %1054 = vector.broadcast %12 : vector<1x1x32xf32> to vector<2x8x32xf32>
    %1055 = arith.mulf %1053, %1054 : vector<2x8x32xf32>
    %cst_212 = arith.constant dense<0.000000e+00> : vector<2x8xf32>
    %1056 = vector.multi_reduction <add>, %1055, %cst_212 [2] : vector<2x8x32xf32> to vector<2x8xf32>
    %cst_213 = arith.constant -1.000000e+30 : f32
    %1057 = vector.broadcast %cst_213 : f32 to vector<2x8xf32>
    %1058 = arith.select %1020, %1056, %1057 : vector<2x8xi1>, vector<2x8xf32>
    %cst_214 = arith.constant dense<0xFF800000> : vector<2xf32>
    %1059 = vector.multi_reduction <maximumf>, %1058, %cst_214 [1] : vector<2x8xf32> to vector<2xf32>
    %1060 = vector.shape_cast %1059 : vector<2xf32> to vector<2x1xf32>
    %1061 = vector.broadcast %1060 : vector<2x1xf32> to vector<2x8xf32>
    %1062 = arith.subf %1058, %1061 : vector<2x8xf32>
    %1063 = math.exp %1062 : vector<2x8xf32>
    %cst_215 = arith.constant 0.000000e+00 : f32
    %1064 = vector.broadcast %cst_215 : f32 to vector<2x8xf32>
    %1065 = arith.select %1020, %1063, %1064 : vector<2x8xi1>, vector<2x8xf32>
    %cst_216 = arith.constant dense<0.000000e+00> : vector<2xf32>
    %1066 = vector.multi_reduction <add>, %1065, %cst_216 [1] : vector<2x8xf32> to vector<2xf32>
    %1067 = vector.shape_cast %1066 : vector<2xf32> to vector<2x1xf32>
    %1068 = vector.broadcast %1067 : vector<2x1xf32> to vector<2x8xf32>
    %1069 = arith.divf %1065, %1068 : vector<2x8xf32>
    %1070 = vector.broadcast %1060 : vector<2x1xf32> to vector<2x8xf32>
    %1071 = arith.subf %1058, %1070 : vector<2x8xf32>
    %1072 = math.log %1067 : vector<2x1xf32>
    %1073 = vector.broadcast %1072 : vector<2x1xf32> to vector<2x8xf32>
    %1074 = arith.subf %1071, %1073 : vector<2x8xf32>
    %1075 = vector.broadcast %1060 : vector<2x1xf32> to vector<2x8xf32>
    %1076 = arith.cmpf oge, %1058, %1075 : vector<2x8xf32>
    %c8_i32_217 = arith.constant 8 : i32
    %1077 = vector.broadcast %c8_i32_217 : i32 to vector<2x8xi32>
    %1078 = arith.select %1076, %16, %1077 : vector<2x8xi1>, vector<2x8xi32>
    %cst_218 = arith.constant dense<2147483647> : vector<2xi32>
    %1079 = vector.multi_reduction <minsi>, %1078, %cst_218 [1] : vector<2x8xi32> to vector<2xi32>
    %1080 = vector.shape_cast %1079 : vector<2xi32> to vector<2x1xi32>
    %1081 = vector.broadcast %1080 : vector<2x1xi32> to vector<2x8xi32>
    %1082 = arith.cmpi eq, %16, %1081 : vector<2x8xi32>
    %1083 = arith.extui %1082 : vector<2x8xi1> to vector<2x8xi32>
    %1084 = arith.sitofp %1083 : vector<2x8xi32> to vector<2x8xf32>
    %1085 = arith.mulf %1084, %1074 : vector<2x8xf32>
    %cst_219 = arith.constant dense<0.000000e+00> : vector<2xf32>
    %1086 = vector.multi_reduction <add>, %1085, %cst_219 [1] : vector<2x8xf32> to vector<2xf32>
    %1087 = vector.shape_cast %1086 : vector<2xf32> to vector<2x1xf32>
    %1088 = arith.addf %993, %1087 : vector<2x1xf32>
    %cst_220 = arith.constant 0.000000e+00 : f32
    %1089 = vector.broadcast %cst_220 : f32 to vector<2x8xf32>
    %1090 = arith.subf %1089, %1069 : vector<2x8xf32>
    %1091 = arith.mulf %1090, %1074 : vector<2x8xf32>
    %cst_221 = arith.constant 0.000000e+00 : f32
    %1092 = vector.broadcast %cst_221 : f32 to vector<2x8xf32>
    %1093 = arith.select %1020, %1091, %1092 : vector<2x8xi1>, vector<2x8xf32>
    %cst_222 = arith.constant dense<0.000000e+00> : vector<2xf32>
    %1094 = vector.multi_reduction <add>, %1093, %cst_222 [1] : vector<2x8xf32> to vector<2xf32>
    %1095 = vector.shape_cast %1094 : vector<2xf32> to vector<2x1xf32>
    %1096 = arith.addf %1001, %1095 : vector<2x1xf32>
    %c7_i32_223 = arith.constant 7 : i32
    %1097 = vector.broadcast %c7_i32_223 : i32 to vector<2x8xi32>
    %1098 = arith.cmpi eq, %16, %1097 : vector<2x8xi32>
    %1099 = vector.shape_cast %1080 : vector<2x1xi32> to vector<2x1xi32>
    %1100 = vector.broadcast %1099 : vector<2x1xi32> to vector<2x8xi32>
    %1101 = arith.select %1098, %1100, %1014 : vector<2x8xi1>, vector<2x8xi32>
    %c0_224 = arith.constant 0 : index
    %c0_225 = arith.constant 0 : index
    %1102 = vector.load %arg8[%c0_224, %c0_225] : memref<2x8xi32, #tpu.memory_space<vmem>>, vector<2x8xi32>
    tpu.vector_store %arg8[%c0_224, %c0_225], %1101 {strides = array<i32>} : memref<2x8xi32, #tpu.memory_space<vmem>>, vector<2x8xi32>,
    %c0_226 = arith.constant 0 : index
    %c0_227 = arith.constant 0 : index
    %1103 = vector.load %arg9[%c0_226, %c0_227] : memref<2x1xf32, #tpu.memory_space<vmem>>, vector<2x1xf32>
    tpu.vector_store %arg9[%c0_226, %c0_227], %1088 {strides = array<i32>} : memref<2x1xf32, #tpu.memory_space<vmem>>, vector<2x1xf32>,
    %c0_228 = arith.constant 0 : index
    %c0_229 = arith.constant 0 : index
    %1104 = vector.load %arg10[%c0_228, %c0_229] : memref<2x1xf32, #tpu.memory_space<vmem>>, vector<2x1xf32>
    tpu.vector_store %arg10[%c0_228, %c0_229], %1096 {strides = array<i32>} : memref<2x1xf32, #tpu.memory_space<vmem>>, vector<2x1xf32>,
    return
  }
  func.func @transform_0(%arg0: i32) -> (i32, i32, i32) {
    %c0_i32 = arith.constant 0 : i32
    %c0_i32_0 = arith.constant 0 : i32
    %c0_i32_1 = arith.constant 0 : i32
    return %arg0, %c0_i32, %c0_i32_0 : i32, i32, i32
  }
  func.func @transform_1(%arg0: i32) -> (i32, i32) {
    %c0_i32 = arith.constant 0 : i32
    %c0_i32_0 = arith.constant 0 : i32
    %c0_i32_1 = arith.constant 0 : i32
    return %c0_i32, %c0_i32_0 : i32, i32
  }
  func.func @transform_2(%arg0: i32) -> (i32, i32) {
    %c0_i32 = arith.constant 0 : i32
    %c0_i32_0 = arith.constant 0 : i32
    %c0_i32_1 = arith.constant 0 : i32
    return %c0_i32, %c0_i32_0 : i32, i32
  }
  func.func @transform_3(%arg0: i32) -> (i32, i32) {
    %c0_i32 = arith.constant 0 : i32
    %c0_i32_0 = arith.constant 0 : i32
    %c0_i32_1 = arith.constant 0 : i32
    return %c0_i32, %c0_i32_0 : i32, i32
  }
  func.func @transform_4(%arg0: i32) -> (i32, i32) {
    %c0_i32 = arith.constant 0 : i32
    %c0_i32_0 = arith.constant 0 : i32
    %c0_i32_1 = arith.constant 0 : i32
    return %c0_i32, %c0_i32_0 : i32, i32
  }
  func.func @transform_5(%arg0: i32) -> (i32, i32) {
    %c0_i32 = arith.constant 0 : i32
    %c0_i32_0 = arith.constant 0 : i32
    %c0_i32_1 = arith.constant 0 : i32
    return %c0_i32, %c0_i32_0 : i32, i32
  }
  func.func @transform_6(%arg0: i32) -> (i32, i32) {
    %c0_i32 = arith.constant 0 : i32
    %c0_i32_0 = arith.constant 0 : i32
    %c0_i32_1 = arith.constant 0 : i32
    return %c0_i32, %c0_i32_0 : i32, i32
  }
  func.func @transform_7(%arg0: i32) -> (i32, i32) {
    %c0_i32 = arith.constant 0 : i32
    %c0_i32_0 = arith.constant 0 : i32
    return %arg0, %c0_i32 : i32, i32
  }
  func.func @transform_8(%arg0: i32) -> (i32, i32) {
    %c0_i32 = arith.constant 0 : i32
    %c0_i32_0 = arith.constant 0 : i32
    return %arg0, %c0_i32 : i32, i32
  }
  func.func @transform_9(%arg0: i32) -> (i32, i32) {
    %c0_i32 = arith.constant 0 : i32
    %c0_i32_0 = arith.constant 0 : i32
    return %arg0, %c0_i32 : i32, i32
  }
}

</mosaic_0001>

<bundles_post_ra>
// kernel: tpu_custom_call.1
= control target key start
LH: loop header
LB: loop body
LE: loop exit
PB: predicated region body
PF: predicated region fallthrough
CT: control target
= control target key end

     0   :  { %15 = vsyncpa [#allocation3], 0  ;;  %s7477_s0 = inlined_call_operand.vmem [shape: f32[2,8,4], index: 0, kind: input, shape index: {}]   ;;  %s7478_s1 = inlined_call_operand.vmem [shape: f32[4,16], index: 1, kind: input, shape index: {}]   ;;  %s7479_s2 = inlined_call_operand.hbm [shape: f32[96,128], index: 2, kind: input, shape index: {}]   ;;  %s7480_s3 = inlined_call_operand.vmem [shape: f32[2,128], index: 3, kind: input, shape index: {}]   ;;  %s7481_s4 = inlined_call_operand.hbm [shape: f32[64,64], index: 4, kind: input, shape index: {}]   ;;  %s7482_s5 = inlined_call_operand.vmem [shape: f32[4,32], index: 5, kind: input, shape index: {}]   ;;  %s7483_s6 = inlined_call_operand.vmem [shape: f32[2,16], index: 6, kind: input, shape index: {}]   ;;  %s7484_s7 = inlined_call_operand.hbm [shape: s32[2,8], index: 7, kind: output, shape index: {0}]   ;;  %s7485_s8 = inlined_call_operand.vmem [shape: f32[2,1], index: 8, kind: output, shape index: {1}]   ;;  %s7486_s9 = inlined_call_operand.vmem [shape: f32[2,1], index: 9, kind: output, shape index: {2}]  }
   0x1   :  { %16 = vsyncpa [#allocation6], 0 }
   0x2   :  { %17 = vsyncpa [#allocation4], 0  ;;  %s6154_s30 = smov [#allocation2]   ;;  %s6082_s13 = scalar_lea.hbm %s7479_s2, 1536 }
   0x3   :  { %s27_s10 = sshll.u32 %s6154_s30, 4  ;;  %p6083_p0 = scmp.ne.s32.totalorder %s7479_s2, %s6082_s13  ;;  %s28_s10 = int_to_ptr.vmem [resolvable:$true] %s27_s10 }
   0x4   :  { %p6086_p1 = scmp.lt.u32.totalorder %s6082_s13, %s7479_s2 }
   0x6   :  { %p6088_p2 = pnand %p6086_p1, %p6083_p0 }
   0x8   :  { %6091 = shalt.err (!%p6088_p2)
}
   0x9   :  { %s6092_s18 = scalar_lea.vmem %s28_s10, 1536  ;;  %p6097_p4 = scmp.lt.s32.totalorder %s28_s10, %s28_s10 }
   0xa   :  { %p6093_p3 = scmp.ne.s32.totalorder %s28_s10, %s6092_s18  ;;  %p6098_p5 = scmp.lt.s32.totalorder %s6092_s18, %s6092_s18 }
   0xc   :  { %p6099_p6 = por %p6098_p5, %p6097_p4 }
   0xe   :  { %p6100_p7 = pnand %p6099_p6, %p6093_p3 }
  0x10   :  { %6103 = shalt.err (!%p6100_p7)
}
  0x11   :  { %s6155_s19 = smov 128   ;;  %s6156_s20 = smov 8  }
  0x12   :  { %33 = dma.hbm_to_vmem [thread:$0]  %s7479_s2, 1536, %s28_s10, [#allocation3], %s6155_s19, %s6155_s19, %s6156_s20  }
  0x13   :  { %s6157_s23 = smov [#allocation5]   ;;  %s6104_s27 = scalar_lea.hbm %s7481_s4, 1024 }
  0x14   :  { %s41_s24 = sshll.u32 %s6157_s23, 4  ;;  %p6105_p8 = scmp.ne.s32.totalorder %s7481_s4, %s6104_s27  ;;  %s42_s24 = int_to_ptr.vmem [resolvable:$true] %s41_s24 }
  0x15   :  { %p6108_p9 = scmp.lt.u32.totalorder %s6104_s27, %s7481_s4 }
  0x17   :  { %p6110_p10 = pnand %p6108_p9, %p6105_p8 }
  0x19   :  { %6113 = shalt.err (!%p6110_p10)
}
  0x1a   :  { %s6114_s12 = scalar_lea.vmem %s42_s24, 1024  ;;  %p6119_p12 = scmp.lt.s32.totalorder %s42_s24, %s42_s24 }
  0x1b   :  { %p6115_p11 = scmp.ne.s32.totalorder %s42_s24, %s6114_s12  ;;  %p6120_p13 = scmp.lt.s32.totalorder %s6114_s12, %s6114_s12 }
  0x1d   :  { %p6121_p0 = por %p6120_p13, %p6119_p12 }
  0x1f   :  { %p6122_p1 = pnand %p6121_p0, %p6115_p11 }
  0x21   :  { %6125 = shalt.err (!%p6122_p1)
}
  0x22   :  { %47 = dma.hbm_to_vmem [thread:$0]  %s7481_s4, 1024, %s42_s24, [#allocation6], %s6155_s19, %s6155_s19, %s6156_s20  }
  0x23   :  { %6148 = dma.done.wait [#allocation3], 1536  }
  0x24   :  { %6149 = vsyncadd [#allocation3], 4294965760 }
  0x25   :  { %6150 = dma.done.wait [#allocation6], 1024  }
  0x26   :  { %6151 = vsyncadd [#allocation6], 4294966272  ;;  %vm97_vm0 = vcmask 1043456   ;;  %vm90_vm1 = vcmask 31744   ;;  %v60_v0 = vld [vmem:[%s7478_s1] sm:$0xf] }
  0x27   :  { %v58_v1 = vld [vmem:[%s7477_s0] sm:$0xff]  ;;  %v59_v2 = vld [vmem:[%s7477_s0 + $0x8] sm:$0xff]  ;;  %5209 = vmatprep.subr.msk.mxu0 %vm97_vm0, %v60_v0  ;;  %v178_v3 = vld [vmem:[#allocation2 + $0x10] sm:$0xff]  ;;  %v7487_v6 = vmov 0.0|0.0   ;;  %vm6159_vm2 = vmmov 0   ;;  %v7489_v13 = vmov 0.0  }
  0x28   :  { %5211 = vmatprep.mubr.msk.f32.mxu0 %vm90_vm1, %v58_v1  ;;  %v179_v4 = vld [vmem:[#allocation2 + $0x18] sm:$0xff]  ;;  %5210 = vmatpush3.msk.msra.mxu0 %vm97_vm0, %v60_v0  ;;  %v176_v7 = vld [vmem:[#allocation2] sm:$0xff]  ;;  %v177_v8 = vld [vmem:[#allocation2 + $0x8] sm:$0xff]  ;;  %vm187_vm3 = vcmask 130048   ;;  %s6161_s20 = smov 64   ;;  %s6162_s21 = smov 32  }
  0x29   :  { %v6251_v5 = vpack.c.bf16 %v179_v4, %v178_v3  ;;  %5212 = vmatmul.mubr.msk.f32.vlgmr.msra.gmra.mrb[0].mxu0 %vm90_vm1, %v59_v2  ;;  %5525 = vmatprep.subr.bf16.mxu0 %v7487_v6  ;;  %v180_v9 = vld [vmem:[#allocation2 + $0x20] sm:$0xff]  ;;  %v5521_v10 = vpack.c.bf16 %v177_v8, %v176_v7  ;;  %v181_v11 = vld [vmem:[#allocation2 + $0x28] sm:$0xff]  ;;  %vm413_vm4 = vcmask 1041409   ;;  %vm269_vm5 = vcmask 261120   ;;  %s6163_s22 = smov 96  }
  0x2a   :  { %v6256_v12 = vpack.c.bf16 %v181_v11, %v180_v9  ;;  %5229 = vmatprep.mubr.msk.f32.mxu0 %vm6159_vm2, %v7489_v13  ;;  %v4983_v14 = vld [vmem:[%s7483_s6] ss:$0 sm:$0xff]  ;;  %vm2073_vm14 = vcmask 58368  }
  0x2b   :  { %5527 = vmatpush3.bf16.msra.mxu0 %v6251_v5  ;;  %5522 = vmatprep.subr.bf16.mxu1 %v5521_v10  ;;  %v4987_v21 = vld [vmem:[%s7480_s3] ss:$0 sm:$0xff] }
  0x2c   :  { %5528 = vmatprep.subr.bf16.mxu0 %v7487_v6  ;;  %5524 = vmatpush3.bf16.msra.mxu1 %v5521_v10 }
  0x2d   :  { %5531 = vmatprep.subr.bf16.mxu1 %v7487_v6 }
  0x2f   :  { %5530 = vmatpush3.bf16.msra.mxu0 %v6256_v12 }
  0x30   :  { %5537 = vmatprep.subr.bf16.mxu0 %v7487_v6 }
  0x32   :  { %5230 = vmatmul.mubr.f32.vlgmr.msra.gmra.mrb[2].mxu0 %v7489_v13 }
  0x33   :  { %5539 = vmatpush3.bf16.msra.mxu0 %v6251_v5  ;;  %5251 = vmatprep.mubr.msk.f32.mxu0 %vm6159_vm2, %v7489_v13 }
  0x34   :  { %5540 = vmatprep.subr.bf16.mxu0 %v7487_v6 }
  0x37   :  { %5542 = vmatpush3.bf16.msra.mxu0 %v6256_v12 }
  0x38   :  { %5549 = vmatprep.subr.bf16.mxu0 %v7487_v6 }
  0xfc   :  { %v5213_v15 = vpop.f32.mrb[0].mxu0 }
  0xfd   :  { %v167_v16 = vpop.f32.mrb[1].mxu0  ;;  %v6275_v18 = vadd.f32 %v5213_v15, %v4983_v14 }
  0xfe   :  { %v6273_v17 = vadd.f32 %v4983_v14, %v167_v16 }
 0x100   :  { %5218 = vmatprep.mubr.msk.f32.mxu1 %vm187_vm3, %v6273_v17 }
 0x101   :  { %5219 = vmatmul.mubr.msk.f32.vlgmr.msra.gmra.mrb[0].mxu1 %vm187_vm3, %v6275_v18 }
 0x102   :  { %5533 = vmatpush3.bf16.msra.mxu1 %v6251_v5  ;;  %5240 = vmatprep.mubr.msk.f32.mxu1 %vm6159_vm2, %v7489_v13 }
 0x103   :  { %5534 = vmatprep.subr.bf16.mxu1 %v7487_v6 }
 0x105   :  { %v339_v19 = vpop.f32.mrb[2].mxu0 }
 0x106   :  { %5536 = vmatpush3.bf16.msra.mxu1 %v6256_v12  ;;  %v5231_v20 = vpop.f32.mrb[3].mxu0  ;;  %v344_v22 = vrot.slane %v339_v19, 1 }
 0x107   :  { %5543 = vmatprep.subr.bf16.mxu1 %v7487_v6 }
 0x1d4   :  { %v5220_v23 = vpop.f32.mrb[0].mxu1 }
 0x1d5   :  { %v6290_v24 = vadd.f32 %v5220_v23, %v4987_v21  ;;  %v260_v25 = vpop.f32.mrb[1].mxu1 }
 0x1d6   :  { %v6292_v26 = vadd.f32 %v4987_v21, %v260_v25 }
 0x1d7   :  { %v348_v27 = vadd.f32 %v344_v22, %v6290_v24 }
 0x1d8   :  { %v347_v28 = vadd.f32 %v339_v19, %v6292_v26 }
 0x1d9   :  { %5718 = vtanh.f32 %v348_v27  ;;  %v4991_v31 = vmul.f32 -1.442695, %v348_v27 }
 0x1da   :  { %5720 = vtanh.f32 %v347_v28  ;;  %v4990_v32 = vmul.f32 -1.442695, %v347_v28 }
 0x1db   :  { %5722 = vpow2.f32 %v4991_v31  ;;  %v82_v31 = vlaneseq }
 0x1dc   :  { %5724 = vpow2.f32 %v4990_v32 }
 0x1dd   :  { %v6332_v32 = vshrl.u32 %v82_v31, 7 }
 0x1df   :  { %vm397_vm6 = vcmp.eq.s32.totalorder %v6332_v32, 0  ;;  %vm549_vm7 = vcmp.eq.s32.totalorder %v6332_v32, 1  ;;  %vm701_vm8 = vcmp.eq.s32.totalorder %v6332_v32, 2  ;;  %vm854_vm9 = vcmp.eq.s32.totalorder %v6332_v32, 3 }
 0x1e0   :  { %vm1007_vm10 = vcmp.eq.s32.totalorder %v6332_v32, 4  ;;  %vm1160_vm11 = vcmp.eq.s32.totalorder %v6332_v32, 5  ;;  %vm1313_vm12 = vcmp.eq.s32.totalorder %v6332_v32, 6  ;;  %vm1466_vm13 = vcmp.eq.s32.totalorder %v6332_v32, 7 }
 0x1e3   :  { %v5719_v29 = vpop.eup %5718 }
 0x1e4   :  { %369 = vrot.lane.b32.xlu0 %v5719_v29, %s6161_s20  ;;  %v5721_v30 = vpop.eup %5720 }
 0x1e5   :  { %v5723_v33 = vpop.eup %5722 }
 0x1e6   :  { %v356_v34 = vadd.f32 1.0, %v5723_v33  ;;  %v5725_v35 = vpop.eup %5724  ;;  %v6335_v33 = vsub.s32 0, %v6332_v32 }
 0x1e7   :  { %v355_v36 = vadd.f32 1.0, %v5725_v35 }
 0x1e8   :  { %367 = vrot.lane.b32.xlu0 %v5721_v30, %s6161_s20  ;;  %5726 = vrcp.f32 %v356_v34  ;;  %v6338_v34 = vsub.s32 1, %v6332_v32 }
 0x1e9   :  { %5728 = vrcp.f32 %v355_v36 }
 0x1f2   :  { %v5727_v37 = vpop.eup %5726 }
 0x1f3   :  { %v5729_v40 = vpop.eup %5728  ;;  %v364_v43 = vmul.f32 0.0, %v5727_v37 }
 0x1f4   :  { %v363_v46 = vmul.f32 0.0, %v5729_v40 }
 0x256   :  { %v370_v38 = vpop.permute.xlu0 %369 }
 0x257   :  { %v374_v39 = vmul.f32 %v5727_v37, %v370_v38 }
 0x259   :  { %379 = vrot.lane.b32.xlu1 %v374_v39, %s6162_s21 }
 0x25a   :  { %v368_v41 = vpop.permute.xlu0 %367 }
 0x25b   :  { %v373_v42 = vmul.f32 %v5729_v40, %v368_v41 }
 0x25d   :  { %377 = vrot.lane.b32.xlu1 %v373_v42, %s6162_s21 }
 0x2cb   :  { %v380_v44 = vpop.permute.xlu1 %379 }
 0x2cc   :  { %v384_v45 = vadd.f32 %v380_v44, %v364_v43 }
 0x2ce   :  { %5730 = vtanh.f32 %v384_v45  ;;  %v512_v19 = vrot.slane %v384_v45, 7 }
 0x2cf   :  { %v378_v47 = vpop.permute.xlu1 %377 }
 0x2d0   :  { %v383_v48 = vadd.f32 %v378_v47, %v363_v46 }
 0x2d2   :  { %5732 = vtanh.f32 %v383_v48  ;;  %v511_v21 = vrot.slane %v383_v48, 7 }
 0x2d8   :  { %v5731_v49 = vpop.eup %5730 }
 0x2d9   :  { %391 = vrot.lane.b32.xlu0 %v5731_v49, %s6161_s20 }
 0x2dc   :  { %v5733_v50 = vpop.eup %5732 }
 0x2dd   :  { %389 = vrot.lane.b32.xlu1 %v5733_v50, %s6161_s20 }
 0x34b   :  { %v392_v51 = vpop.permute.xlu0 %391 }
 0x34c   :  { %v6302_v52 = vmul.f32 %v5727_v37, %v392_v51 }
 0x34e   :  { %v412_v54 = vrot.slane %v6302_v52, 7  ;;  %v407_v35 = vrot.slane %v6302_v52, %v6335_v33 }
 0x34f   :  { %v390_v53 = vpop.permute.xlu1 %389 }
 0x350   :  { %v6305_v55 = vmul.f32 %v5729_v40, %v390_v53  ;;  %v409_v41 = vsel %vm397_vm6, %v407_v35, 0.0 }
 0x352   :  { %v414_v56 = vsel %vm413_vm4, %v412_v54, %v6305_v55  ;;  %v403_v38 = vrot.slane %v6305_v55, %v6335_v33 }
 0x353   :  { %415 = vrot.lane.b32.xlu0 %v414_v56, %s6162_s21 }
 0x354   :  { %v408_v46 = vsel %vm397_vm6, %v403_v38, 0.0  ;;  %vm6166_vm6 = vmmov 1  }
 0x3c5   :  { %v416_v57 = vpop.permute.xlu0 %415 }
 0x3c6   :  { %5241 = vmatmul.mubr.msk.f32.vlgmr.msra.gmra.mrb[2].mxu1 %vm269_vm5, %v416_v57 }
 0x3c7   :  { %5545 = vmatpush3.bf16.msra.mxu1 %v6251_v5  ;;  %5262 = vmatprep.mubr.msk.f32.mxu1 %vm6159_vm2, %v7489_v13 }
 0x3c8   :  { %5546 = vmatprep.subr.bf16.mxu1 %v7487_v6 }
 0x3cb   :  { %5548 = vmatpush3.bf16.msra.mxu1 %v6256_v12 }
 0x3cc   :  { %5555 = vmatprep.subr.bf16.mxu1 %v7487_v6 }
 0x499   :  { %v485_v58 = vpop.f32.mrb[2].mxu1 }
 0x49a   :  { %v490_v59 = vrot.slane %v485_v58, 7  ;;  %v494_v60 = vadd.f32 %v485_v58, %v6290_v24  ;;  %v5242_v61 = vpop.f32.mrb[3].mxu1 }
 0x49c   :  { %v493_v62 = vadd.f32 %v490_v59, %v6292_v26  ;;  %5734 = vtanh.f32 %v494_v60  ;;  %v4994_v1 = vmul.f32 -1.442695, %v494_v60 }
 0x49e   :  { %5736 = vtanh.f32 %v493_v62  ;;  %v4993_v2 = vmul.f32 -1.442695, %v493_v62 }
 0x49f   :  { %5738 = vpow2.f32 %v4994_v1 }
 0x4a0   :  { %5740 = vpow2.f32 %v4993_v2 }
 0x4a6   :  { %v5735_v63 = vpop.eup %5734 }
 0x4a7   :  { %521 = vrot.lane.b32.xlu0 %v5735_v63, %s6161_s20 }
 0x4a8   :  { %v5737_v0 = vpop.eup %5736 }
 0x4a9   :  { %519 = vrot.lane.b32.xlu1 %v5737_v0, %s6161_s20  ;;  %v5739_v3 = vpop.eup %5738 }
 0x4aa   :  { %v5741_v4 = vpop.eup %5740  ;;  %v502_v7 = vadd.f32 1.0, %v5739_v3 }
 0x4ab   :  { %v501_v8 = vadd.f32 1.0, %v5741_v4 }
 0x4ac   :  { %5742 = vrcp.f32 %v502_v7 }
 0x4ad   :  { %5744 = vrcp.f32 %v501_v8 }
 0x4b6   :  { %v5743_v9 = vpop.eup %5742 }
 0x4b7   :  { %v5745_v14 = vpop.eup %5744  ;;  %v516_v20 = vmul.f32 %v5743_v9, %v512_v19 }
 0x4b8   :  { %v515_v25 = vmul.f32 %v5745_v14, %v511_v21 }
 0x519   :  { %v522_v10 = vpop.permute.xlu0 %521 }
 0x51a   :  { %v526_v11 = vmul.f32 %v5743_v9, %v522_v10 }
 0x51b   :  { %v520_v15 = vpop.permute.xlu1 %519 }
 0x51c   :  { %531 = vrot.lane.b32.xlu0 %v526_v11, %s6162_s21  ;;  %v525_v16 = vmul.f32 %v5745_v14, %v520_v15 }
 0x51e   :  { %529 = vrot.lane.b32.xlu1 %v525_v16, %s6162_s21 }
 0x58e   :  { %v532_v22 = vpop.permute.xlu0 %531 }
 0x58f   :  { %v6323_v23 = vadd.f32 %v532_v22, %v516_v20  ;;  %v706_v22 = vsub.s32 2, %v6332_v32 }
 0x590   :  { %v530_v27 = vpop.permute.xlu1 %529 }
 0x591   :  { %5746 = vtanh.f32 %v6323_v23  ;;  %v6326_v28 = vadd.f32 %v530_v27, %v515_v25 }
 0x593   :  { %5748 = vtanh.f32 %v6326_v28  ;;  %v663_v8 = vrot.slane %v6326_v28, 7 }
 0x59b   :  { %v5747_v29 = vpop.eup %5746 }
 0x59c   :  { %543 = vrot.lane.b32.xlu0 %v5747_v29, %s6161_s20 }
 0x59d   :  { %v5749_v30 = vpop.eup %5748 }
 0x59e   :  { %541 = vrot.lane.b32.xlu1 %v5749_v30, %s6161_s20 }
 0x60e   :  { %v544_v36 = vpop.permute.xlu0 %543 }
 0x60f   :  { %v548_v37 = vmul.f32 %v5743_v9, %v544_v36  ;;  %v664_v9 = vrot.slane %v6323_v23, 7 }
 0x610   :  { %v542_v40 = vpop.permute.xlu1 %541 }
 0x611   :  { %v559_v39 = vrot.slane %v548_v37, %v6338_v34  ;;  %v547_v42 = vmul.f32 %v5745_v14, %v542_v40 }
 0x613   :  { %v6347_v43 = vsel %vm549_vm7, %v559_v39, %v409_v41  ;;  %v555_v44 = vrot.slane %v547_v42, %v6338_v34  ;;  %v564_v45 = vrot.slane %v547_v42, 1 }
 0x615   :  { %v6350_v47 = vsel %vm549_vm7, %v555_v44, %v408_v46  ;;  %v565_v48 = vsel %vm413_vm4, %v548_v37, %v564_v45 }
 0x616   :  { %566 = vrot.lane.b32.xlu1 %v565_v48, %s6162_s21 }
 0x688   :  { %v567_v49 = vpop.permute.xlu1 %566 }
 0x689   :  { %5252 = vmatmul.mubr.msk.f32.vlgmr.msra.gmra.mrb[4].mxu0 %vm269_vm5, %v567_v49 }
 0x68a   :  { %5551 = vmatpush3.bf16.msra.mxu0 %v6251_v5  ;;  %5273 = vmatprep.mubr.msk.f32.mxu0 %vm6159_vm2, %v7489_v13 }
 0x68b   :  { %5552 = vmatprep.subr.bf16.mxu0 %v7487_v6 }
 0x68e   :  { %5554 = vmatpush3.bf16.msra.mxu0 %v6256_v12 }
 0x68f   :  { %5561 = vmatprep.subr.bf16.mxu0 %v7487_v6 }
 0x75c   :  { %v636_v50 = vpop.f32.mrb[4].mxu0 }
 0x75d   :  { %v641_v51 = vrot.slane %v636_v50, 6  ;;  %v642_v52 = vrot.slane %v636_v50, 7  ;;  %v5253_v53 = vpop.f32.mrb[5].mxu0 }
 0x75f   :  { %v645_v54 = vadd.f32 %v641_v51, %v6292_v26  ;;  %v646_v55 = vadd.f32 %v642_v52, %v6290_v24 }
 0x761   :  { %5750 = vtanh.f32 %v645_v54  ;;  %v4996_v58 = vmul.f32 -1.442695, %v645_v54  ;;  %v4997_v59 = vmul.f32 -1.442695, %v646_v55 }
 0x762   :  { %5752 = vtanh.f32 %v646_v55 }
 0x763   :  { %5754 = vpow2.f32 %v4996_v58 }
 0x764   :  { %5756 = vpow2.f32 %v4997_v59 }
 0x76b   :  { %v5751_v56 = vpop.eup %5750 }
 0x76c   :  { %v5753_v57 = vpop.eup %5752  ;;  %671 = vrot.lane.b32.xlu0 %v5751_v56, %s6161_s20 }
 0x76d   :  { %673 = vrot.lane.b32.xlu1 %v5753_v57, %s6161_s20  ;;  %v5755_v60 = vpop.eup %5754 }
 0x76e   :  { %v5757_v61 = vpop.eup %5756  ;;  %v653_v62 = vadd.f32 1.0, %v5755_v60 }
 0x76f   :  { %v654_v63 = vadd.f32 1.0, %v5757_v61 }
 0x770   :  { %5758 = vrcp.f32 %v653_v62 }
 0x771   :  { %5760 = vrcp.f32 %v654_v63 }
 0x77a   :  { %v5759_v0 = vpop.eup %5758 }
 0x77b   :  { %v5761_v2 = vpop.eup %5760  ;;  %v667_v10 = vmul.f32 %v5759_v0, %v663_v8 }
 0x77c   :  { %v668_v11 = vmul.f32 %v5761_v2, %v664_v9  ;;  %v859_v9 = vsub.s32 3, %v6332_v32 }
 0x7de   :  { %v672_v1 = vpop.permute.xlu0 %671 }
 0x7df   :  { %v674_v3 = vpop.permute.xlu1 %673  ;;  %v677_v4 = vmul.f32 %v5759_v0, %v672_v1 }
 0x7e0   :  { %v678_v7 = vmul.f32 %v5761_v2, %v674_v3 }
 0x7e1   :  { %681 = vrot.lane.b32.xlu0 %v677_v4, %s6162_s21 }
 0x7e2   :  { %683 = vrot.lane.b32.xlu1 %v678_v7, %s6162_s21 }
 0x853   :  { %v682_v14 = vpop.permute.xlu0 %681 }
 0x854   :  { %v684_v15 = vpop.permute.xlu1 %683  ;;  %v687_v16 = vadd.f32 %v682_v14, %v667_v10 }
 0x855   :  { %v688_v19 = vadd.f32 %v684_v15, %v668_v11 }
 0x856   :  { %5762 = vtanh.f32 %v687_v16  ;;  %v816_v61 = vrot.slane %v687_v16, 7 }
 0x857   :  { %5764 = vtanh.f32 %v688_v19  ;;  %v817_v62 = vrot.slane %v688_v19, 7 }
 0x860   :  { %v5763_v20 = vpop.eup %5762 }
 0x861   :  { %v5765_v21 = vpop.eup %5764  ;;  %693 = vrot.lane.b32.xlu0 %v5763_v20, %s6161_s20 }
 0x862   :  { %695 = vrot.lane.b32.xlu1 %v5765_v21, %s6161_s20 }
 0x8d3   :  { %v694_v25 = vpop.permute.xlu0 %693 }
 0x8d4   :  { %v696_v27 = vpop.permute.xlu1 %695  ;;  %v699_v28 = vmul.f32 %v5759_v0, %v694_v25 }
 0x8d5   :  { %v700_v23 = vmul.f32 %v5761_v2, %v696_v27 }
 0x8d6   :  { %v707_v29 = vrot.slane %v699_v28, %v706_v22  ;;  %v716_v30 = vrot.slane %v699_v28, 2 }
 0x8d7   :  { %v711_v35 = vrot.slane %v700_v23, %v706_v22  ;;  %v717_v36 = vrot.slane %v700_v23, 1 }
 0x8d8   :  { %v6374_v37 = vsel %vm701_vm8, %v707_v29, %v6350_v47 }
 0x8d9   :  { %v6377_v38 = vsel %vm701_vm8, %v711_v35, %v6347_v43  ;;  %v718_v39 = vsel %vm413_vm4, %v717_v36, %v716_v30 }
 0x8da   :  { %719 = vrot.lane.b32.xlu0 %v718_v39, %s6162_s21 }
 0x94c   :  { %v720_v40 = vpop.permute.xlu0 %719 }
 0x94d   :  { %5263 = vmatmul.mubr.msk.f32.vlgmr.msra.gmra.mrb[4].mxu1 %vm269_vm5, %v720_v40 }
 0x94e   :  { %5557 = vmatpush3.bf16.msra.mxu1 %v6251_v5  ;;  %5284 = vmatprep.mubr.msk.f32.mxu1 %vm6159_vm2, %v7489_v13 }
 0x94f   :  { %5558 = vmatprep.subr.bf16.mxu1 %v7487_v6 }
 0x952   :  { %5560 = vmatpush3.bf16.msra.mxu1 %v6256_v12 }
 0x953   :  { %5567 = vmatprep.subr.bf16.mxu1 %v7487_v6 }
 0xa20   :  { %v789_v41 = vpop.f32.mrb[4].mxu1 }
 0xa21   :  { %v794_v42 = vrot.slane %v789_v41, 5  ;;  %v795_v43 = vrot.slane %v789_v41, 6  ;;  %v5264_v44 = vpop.f32.mrb[5].mxu1 }
 0xa23   :  { %v798_v45 = vadd.f32 %v794_v42, %v6292_v26  ;;  %v799_v46 = vadd.f32 %v795_v43, %v6290_v24 }
 0xa25   :  { %5766 = vtanh.f32 %v798_v45  ;;  %v4999_v49 = vmul.f32 -1.442695, %v798_v45  ;;  %v5000_v50 = vmul.f32 -1.442695, %v799_v46 }
 0xa26   :  { %5768 = vtanh.f32 %v799_v46 }
 0xa27   :  { %5770 = vpow2.f32 %v4999_v49 }
 0xa28   :  { %5772 = vpow2.f32 %v5000_v50 }
 0xa2f   :  { %v5767_v47 = vpop.eup %5766 }
 0xa30   :  { %v5769_v48 = vpop.eup %5768  ;;  %824 = vrot.lane.b32.xlu1 %v5767_v47, %s6161_s20 }
 0xa31   :  { %826 = vrot.lane.b32.xlu0 %v5769_v48, %s6161_s20  ;;  %v5771_v51 = vpop.eup %5770 }
 0xa32   :  { %v5773_v52 = vpop.eup %5772  ;;  %v806_v53 = vadd.f32 1.0, %v5771_v51 }
 0xa33   :  { %v807_v54 = vadd.f32 1.0, %v5773_v52 }
 0xa34   :  { %5774 = vrcp.f32 %v806_v53 }
 0xa35   :  { %5776 = vrcp.f32 %v807_v54 }
 0xa3e   :  { %v5775_v55 = vpop.eup %5774 }
 0xa3f   :  { %v5777_v57 = vpop.eup %5776  ;;  %v820_v63 = vmul.f32 %v5775_v55, %v816_v61 }
 0xa40   :  { %v821_v0 = vmul.f32 %v5777_v57, %v817_v62  ;;  %v1012_v62 = vsub.s32 4, %v6332_v32 }
 0xaa2   :  { %v825_v56 = vpop.permute.xlu1 %824 }
 0xaa3   :  { %v827_v58 = vpop.permute.xlu0 %826  ;;  %v830_v59 = vmul.f32 %v5775_v55, %v825_v56 }
 0xaa4   :  { %v831_v60 = vmul.f32 %v5777_v57, %v827_v58 }
 0xaa5   :  { %834 = vrot.lane.b32.xlu1 %v830_v59, %s6162_s21 }
 0xaa6   :  { %836 = vrot.lane.b32.xlu0 %v831_v60, %s6162_s21 }
 0xb17   :  { %v835_v1 = vpop.permute.xlu1 %834 }
 0xb18   :  { %v837_v2 = vpop.permute.xlu0 %836  ;;  %v840_v3 = vadd.f32 %v835_v1, %v820_v63 }
 0xb19   :  { %v841_v4 = vadd.f32 %v837_v2, %v821_v0 }
 0xb1a   :  { %5778 = vtanh.f32 %v840_v3  ;;  %v969_v52 = vrot.slane %v840_v3, 7 }
 0xb1b   :  { %5780 = vtanh.f32 %v841_v4  ;;  %v970_v53 = vrot.slane %v841_v4, 7 }
 0xb24   :  { %v5779_v7 = vpop.eup %5778 }
 0xb25   :  { %v5781_v8 = vpop.eup %5780  ;;  %846 = vrot.lane.b32.xlu1 %v5779_v7, %s6161_s20 }
 0xb26   :  { %848 = vrot.lane.b32.xlu0 %v5781_v8, %s6161_s20 }
 0xb97   :  { %v847_v10 = vpop.permute.xlu1 %846 }
 0xb98   :  { %v849_v11 = vpop.permute.xlu0 %848  ;;  %v852_v14 = vmul.f32 %v5775_v55, %v847_v10 }
 0xb99   :  { %v853_v15 = vmul.f32 %v5777_v57, %v849_v11 }
 0xb9a   :  { %v860_v16 = vrot.slane %v852_v14, %v859_v9  ;;  %v869_v19 = vrot.slane %v852_v14, 3 }
 0xb9b   :  { %v864_v20 = vrot.slane %v853_v15, %v859_v9  ;;  %v870_v21 = vrot.slane %v853_v15, 2 }
 0xb9c   :  { %v6399_v22 = vsel %vm854_vm9, %v860_v16, %v6374_v37 }
 0xb9d   :  { %v6402_v25 = vsel %vm854_vm9, %v864_v20, %v6377_v38  ;;  %v871_v27 = vsel %vm413_vm4, %v870_v21, %v869_v19 }
 0xb9e   :  { %872 = vrot.lane.b32.xlu1 %v871_v27, %s6162_s21 }
 0xc10   :  { %v873_v28 = vpop.permute.xlu1 %872 }
 0xc11   :  { %5274 = vmatmul.mubr.msk.f32.vlgmr.msra.gmra.mrb[6].mxu0 %vm269_vm5, %v873_v28 }
 0xc12   :  { %5563 = vmatpush3.bf16.msra.mxu0 %v6251_v5  ;;  %5295 = vmatprep.mubr.msk.f32.mxu0 %vm6159_vm2, %v7489_v13 }
 0xc13   :  { %5564 = vmatprep.subr.bf16.mxu0 %v7487_v6 }
 0xc16   :  { %5566 = vmatpush3.bf16.msra.mxu0 %v6256_v12 }
 0xce4   :  { %v942_v23 = vpop.f32.mrb[6].mxu0 }
 0xce5   :  { %v947_v29 = vrot.slane %v942_v23, 4  ;;  %v948_v30 = vrot.slane %v942_v23, 5  ;;  %v5275_v35 = vpop.f32.mrb[7].mxu0 }
 0xce7   :  { %v951_v36 = vadd.f32 %v947_v29, %v6292_v26  ;;  %v952_v37 = vadd.f32 %v948_v30, %v6290_v24 }
 0xce9   :  { %5782 = vtanh.f32 %v951_v36  ;;  %v5002_v40 = vmul.f32 -1.442695, %v951_v36  ;;  %v5003_v41 = vmul.f32 -1.442695, %v952_v37 }
 0xcea   :  { %5784 = vtanh.f32 %v952_v37 }
 0xceb   :  { %5786 = vpow2.f32 %v5002_v40 }
 0xcec   :  { %5788 = vpow2.f32 %v5003_v41 }
 0xcf3   :  { %v5783_v38 = vpop.eup %5782 }
 0xcf4   :  { %v5785_v39 = vpop.eup %5784  ;;  %977 = vrot.lane.b32.xlu0 %v5783_v38, %s6161_s20 }
 0xcf5   :  { %979 = vrot.lane.b32.xlu1 %v5785_v39, %s6161_s20  ;;  %v5787_v42 = vpop.eup %5786 }
 0xcf6   :  { %v5789_v43 = vpop.eup %5788  ;;  %v959_v44 = vadd.f32 1.0, %v5787_v42 }
 0xcf7   :  { %v960_v45 = vadd.f32 1.0, %v5789_v43 }
 0xcf8   :  { %5790 = vrcp.f32 %v959_v44 }
 0xcf9   :  { %5792 = vrcp.f32 %v960_v45 }
 0xd02   :  { %v5791_v46 = vpop.eup %5790 }
 0xd03   :  { %v5793_v48 = vpop.eup %5792  ;;  %v973_v54 = vmul.f32 %v5791_v46, %v969_v52 }
 0xd04   :  { %v974_v55 = vmul.f32 %v5793_v48, %v970_v53 }
 0xd66   :  { %v978_v47 = vpop.permute.xlu0 %977 }
 0xd67   :  { %v980_v49 = vpop.permute.xlu1 %979  ;;  %v983_v50 = vmul.f32 %v5791_v46, %v978_v47 }
 0xd68   :  { %v984_v51 = vmul.f32 %v5793_v48, %v980_v49 }
 0xd69   :  { %987 = vrot.lane.b32.xlu0 %v983_v50, %s6162_s21 }
 0xd6a   :  { %989 = vrot.lane.b32.xlu1 %v984_v51, %s6162_s21  ;;  %v1165_v51 = vsub.s32 5, %v6332_v32 }
 0xddb   :  { %v988_v56 = vpop.permute.xlu0 %987 }
 0xddc   :  { %v990_v57 = vpop.permute.xlu1 %989  ;;  %v993_v58 = vadd.f32 %v988_v56, %v973_v54 }
 0xddd   :  { %v994_v59 = vadd.f32 %v990_v57, %v974_v55 }
 0xdde   :  { %5794 = vtanh.f32 %v993_v58  ;;  %v1122_v41 = vrot.slane %v993_v58, 7 }
 0xddf   :  { %5796 = vtanh.f32 %v994_v59  ;;  %v1123_v42 = vrot.slane %v994_v59, 7 }
 0xde8   :  { %v5795_v60 = vpop.eup %5794 }
 0xde9   :  { %v5797_v61 = vpop.eup %5796  ;;  %999 = vrot.lane.b32.xlu0 %v5795_v60, %s6161_s20 }
 0xdea   :  { %1001 = vrot.lane.b32.xlu1 %v5797_v61, %s6161_s20 }
 0xe5b   :  { %v1000_v63 = vpop.permute.xlu0 %999 }
 0xe5c   :  { %v1002_v0 = vpop.permute.xlu1 %1001  ;;  %v1005_v1 = vmul.f32 %v5791_v46, %v1000_v63 }
 0xe5d   :  { %v1006_v2 = vmul.f32 %v5793_v48, %v1002_v0 }
 0xe5e   :  { %v1013_v3 = vrot.slane %v1005_v1, %v1012_v62  ;;  %v1022_v4 = vrot.slane %v1005_v1, 4 }
 0xe5f   :  { %v1017_v7 = vrot.slane %v1006_v2, %v1012_v62  ;;  %v1023_v8 = vrot.slane %v1006_v2, 3 }
 0xe60   :  { %v6423_v9 = vsel %vm1007_vm10, %v1013_v3, %v6399_v22 }
 0xe61   :  { %v6426_v10 = vsel %vm1007_vm10, %v1017_v7, %v6402_v25  ;;  %v1024_v11 = vsel %vm413_vm4, %v1023_v8, %v1022_v4 }
 0xe62   :  { %1025 = vrot.lane.b32.xlu0 %v1024_v11, %s6162_s21 }
 0xed4   :  { %v1026_v14 = vpop.permute.xlu0 %1025 }
 0xed5   :  { %5285 = vmatmul.mubr.msk.f32.vlgmr.msra.gmra.mrb[6].mxu1 %vm269_vm5, %v1026_v14 }
 0xed6   :  { %5569 = vmatpush3.bf16.msra.mxu1 %v6251_v5  ;;  %5306 = vmatprep.mubr.msk.f32.mxu1 %vm6159_vm2, %v7489_v13 }
 0xed7   :  { %5570 = vmatprep.subr.bf16.mxu1 %v7487_v6 }
 0xeda   :  { %5572 = vmatpush3.bf16.msra.mxu1 %v6256_v12 }
 0xfa8   :  { %v1095_v15 = vpop.f32.mrb[6].mxu1 }
 0xfa9   :  { %v1100_v16 = vrot.slane %v1095_v15, 3  ;;  %v1101_v19 = vrot.slane %v1095_v15, 4  ;;  %v5286_v20 = vpop.f32.mrb[7].mxu1 }
 0xfab   :  { %v1104_v21 = vadd.f32 %v1100_v16, %v6292_v26  ;;  %v1105_v22 = vadd.f32 %v1101_v19, %v6290_v24 }
 0xfad   :  { %5798 = vtanh.f32 %v1104_v21  ;;  %v5005_v5 = vmul.f32 -1.442695, %v1104_v21  ;;  %v5006_v28 = vmul.f32 -1.442695, %v1105_v22 }
 0xfae   :  { %5800 = vtanh.f32 %v1105_v22 }
 0xfaf   :  { %5802 = vpow2.f32 %v5005_v5 }
 0xfb0   :  { %5804 = vpow2.f32 %v5006_v28 }
 0xfb7   :  { %v5799_v25 = vpop.eup %5798 }
 0xfb8   :  { %v5801_v27 = vpop.eup %5800  ;;  %1130 = vrot.lane.b32.xlu1 %v5799_v25, %s6161_s20 }
 0xfb9   :  { %1132 = vrot.lane.b32.xlu0 %v5801_v27, %s6161_s20  ;;  %v5803_v12 = vpop.eup %5802 }
 0xfba   :  { %v5805_v23 = vpop.eup %5804  ;;  %v1112_v29 = vadd.f32 1.0, %v5803_v12 }
 0xfbb   :  { %v1113_v30 = vadd.f32 1.0, %v5805_v23 }
 0xfbc   :  { %5806 = vrcp.f32 %v1112_v29 }
 0xfbd   :  { %5808 = vrcp.f32 %v1113_v30 }
 0xfc6   :  { %v5807_v35 = vpop.eup %5806 }
 0xfc7   :  { %v5809_v37 = vpop.eup %5808  ;;  %v1126_v43 = vmul.f32 %v5807_v35, %v1122_v41 }
 0xfc8   :  { %v1127_v44 = vmul.f32 %v5809_v37, %v1123_v42 }
0x102a   :  { %v1131_v36 = vpop.permute.xlu1 %1130 }
0x102b   :  { %v1133_v38 = vpop.permute.xlu0 %1132  ;;  %v1136_v39 = vmul.f32 %v5807_v35, %v1131_v36 }
0x102c   :  { %v1137_v40 = vmul.f32 %v5809_v37, %v1133_v38 }
0x102d   :  { %1140 = vrot.lane.b32.xlu1 %v1136_v39, %s6162_s21 }
0x102e   :  { %1142 = vrot.lane.b32.xlu0 %v1137_v40, %s6162_s21  ;;  %v1318_v40 = vsub.s32 6, %v6332_v32 }
0x109f   :  { %v1141_v45 = vpop.permute.xlu1 %1140 }
0x10a0   :  { %v1143_v46 = vpop.permute.xlu0 %1142  ;;  %v1146_v47 = vadd.f32 %v1141_v45, %v1126_v43 }
0x10a1   :  { %v1147_v48 = vadd.f32 %v1143_v46, %v1127_v44 }
0x10a2   :  { %5810 = vtanh.f32 %v1146_v47  ;;  %v1275_v28 = vrot.slane %v1146_v47, 7 }
0x10a3   :  { %5812 = vtanh.f32 %v1147_v48  ;;  %v1276_v12 = vrot.slane %v1147_v48, 7 }
0x10ac   :  { %v5811_v49 = vpop.eup %5810 }
0x10ad   :  { %v5813_v50 = vpop.eup %5812  ;;  %1152 = vrot.lane.b32.xlu1 %v5811_v49, %s6161_s20 }
0x10ae   :  { %1154 = vrot.lane.b32.xlu0 %v5813_v50, %s6161_s20 }
0x111f   :  { %v1153_v52 = vpop.permute.xlu1 %1152 }
0x1120   :  { %v1155_v53 = vpop.permute.xlu0 %1154  ;;  %v1158_v54 = vmul.f32 %v5807_v35, %v1153_v52 }
0x1121   :  { %v1159_v55 = vmul.f32 %v5809_v37, %v1155_v53 }
0x1122   :  { %v1166_v56 = vrot.slane %v1158_v54, %v1165_v51  ;;  %v1175_v57 = vrot.slane %v1158_v54, 5 }
0x1123   :  { %v1170_v58 = vrot.slane %v1159_v55, %v1165_v51  ;;  %v1176_v59 = vrot.slane %v1159_v55, 4 }
0x1124   :  { %v1171_v60 = vsel %vm1160_vm11, %v1166_v56, %v6423_v9 }
0x1125   :  { %v1177_v61 = vsel %vm413_vm4, %v1176_v59, %v1175_v57  ;;  %v1172_v62 = vsel %vm1160_vm11, %v1170_v58, %v6426_v10 }
0x1126   :  { %1178 = vrot.lane.b32.xlu1 %v1177_v61, %s6162_s21 }
0x1198   :  { %v1179_v63 = vpop.permute.xlu1 %1178 }
0x1199   :  { %5296 = vmatmul.mubr.msk.f32.vlgmr.msra.gmra.mrb[8].mxu0 %vm269_vm5, %v1179_v63 }
0x126c   :  { %v1248_v0 = vpop.f32.mrb[8].mxu0 }
0x126d   :  { %v1253_v1 = vrot.slane %v1248_v0, 2  ;;  %v1254_v2 = vrot.slane %v1248_v0, 3  ;;  %v5297_v3 = vpop.f32.mrb[9].mxu0 }
0x126f   :  { %v1257_v4 = vadd.f32 %v1253_v1, %v6292_v26  ;;  %v1258_v7 = vadd.f32 %v1254_v2, %v6290_v24 }
0x1271   :  { %5814 = vtanh.f32 %v1257_v4  ;;  %v5008_v10 = vmul.f32 -1.442695, %v1257_v4  ;;  %v5009_v11 = vmul.f32 -1.442695, %v1258_v7 }
0x1272   :  { %5816 = vtanh.f32 %v1258_v7 }
0x1273   :  { %5818 = vpow2.f32 %v5008_v10 }
0x1274   :  { %5820 = vpow2.f32 %v5009_v11 }
0x127b   :  { %v5815_v8 = vpop.eup %5814 }
0x127c   :  { %v5817_v9 = vpop.eup %5816  ;;  %1283 = vrot.lane.b32.xlu0 %v5815_v8, %s6161_s20 }
0x127d   :  { %1285 = vrot.lane.b32.xlu1 %v5817_v9, %s6161_s20  ;;  %v5819_v14 = vpop.eup %5818 }
0x127e   :  { %v5821_v15 = vpop.eup %5820  ;;  %v1265_v16 = vadd.f32 1.0, %v5819_v14 }
0x127f   :  { %v1266_v19 = vadd.f32 1.0, %v5821_v15 }
0x1280   :  { %5822 = vrcp.f32 %v1265_v16 }
0x1281   :  { %5824 = vrcp.f32 %v1266_v19 }
0x128a   :  { %v5823_v20 = vpop.eup %5822 }
0x128b   :  { %v5825_v22 = vpop.eup %5824  ;;  %v1279_v23 = vmul.f32 %v5823_v20, %v1275_v28  ;;  %v6477_v28 = vld [vmem:[#allocation5 + $0x10] sm:$0xff] }
0x128c   :  { %v1280_v29 = vmul.f32 %v5825_v22, %v1276_v12  ;;  %v6479_v12 = vld [vmem:[#allocation5 + $0x18] sm:$0xff] }
0x12ee   :  { %v1284_v21 = vpop.permute.xlu0 %1283 }
0x12ef   :  { %v1286_v25 = vpop.permute.xlu1 %1285  ;;  %v1289_v27 = vmul.f32 %v5823_v20, %v1284_v21 }
0x12f0   :  { %v1290_v5 = vmul.f32 %v5825_v22, %v1286_v25 }
0x12f1   :  { %1293 = vrot.lane.b32.xlu0 %v1289_v27, %s6162_s21  ;;  %v63_v27 = vld [vmem:[#allocation5] sm:$0xff] }
0x12f2   :  { %1295 = vrot.lane.b32.xlu1 %v1290_v5, %s6162_s21  ;;  %v64_v5 = vld [vmem:[#allocation5 + $0x8] sm:$0xff] }
0x1363   :  { %v1294_v30 = vpop.permute.xlu0 %1293 }
0x1364   :  { %v1296_v35 = vpop.permute.xlu1 %1295  ;;  %v1299_v36 = vadd.f32 %v1294_v30, %v1279_v23  ;;  %v5706_v30 = vpack.i.bf16 %v64_v5, %v63_v27 }
0x1365   :  { %v1300_v37 = vadd.f32 %v1296_v35, %v1280_v29  ;;  %v5711_v35 = vpack.i.bf16 %v6479_v12, %v6477_v28 }
0x1366   :  { %5826 = vtanh.f32 %v1299_v36  ;;  %v1428_v9 = vrot.slane %v1299_v36, 7  ;;  %v1471_v36 = vsub.s32 7, %v6332_v32 }
0x1367   :  { %5828 = vtanh.f32 %v1300_v37  ;;  %v1429_v10 = vrot.slane %v1300_v37, 7 }
0x1370   :  { %v5827_v38 = vpop.eup %5826 }
0x1371   :  { %v5829_v39 = vpop.eup %5828  ;;  %1305 = vrot.lane.b32.xlu0 %v5827_v38, %s6161_s20 }
0x1372   :  { %1307 = vrot.lane.b32.xlu1 %v5829_v39, %s6161_s20 }
0x13e3   :  { %v1306_v41 = vpop.permute.xlu0 %1305 }
0x13e4   :  { %v1308_v42 = vpop.permute.xlu1 %1307  ;;  %v1311_v43 = vmul.f32 %v5823_v20, %v1306_v41 }
0x13e5   :  { %v1312_v44 = vmul.f32 %v5825_v22, %v1308_v42 }
0x13e6   :  { %v1319_v45 = vrot.slane %v1311_v43, %v1318_v40  ;;  %v1328_v46 = vrot.slane %v1311_v43, 6 }
0x13e7   :  { %v1323_v47 = vrot.slane %v1312_v44, %v1318_v40  ;;  %v1329_v48 = vrot.slane %v1312_v44, 5 }
0x13e8   :  { %v6461_v49 = vsel %vm1313_vm12, %v1319_v45, %v1171_v60 }
0x13e9   :  { %v1330_v50 = vsel %vm413_vm4, %v1329_v48, %v1328_v46  ;;  %v6464_v51 = vsel %vm1313_vm12, %v1323_v47, %v1172_v62 }
0x13ea   :  { %1331 = vrot.lane.b32.xlu0 %v1330_v50, %s6162_s21 }
0x145c   :  { %v1332_v52 = vpop.permute.xlu0 %1331 }
0x145d   :  { %5307 = vmatmul.mubr.msk.f32.vlgmr.msra.gmra.mrb[8].mxu1 %vm269_vm5, %v1332_v52 }
0x1530   :  { %v1401_v53 = vpop.f32.mrb[8].mxu1 }
0x1531   :  { %v1406_v54 = vrot.slane %v1401_v53, 1  ;;  %v1407_v55 = vrot.slane %v1401_v53, 2  ;;  %v5308_v56 = vpop.f32.mrb[9].mxu1 }
0x1532   :  { %v5581_v56 = vpack.c.bf16 %v64_v5, %v63_v27 }
0x1533   :  { %v1410_v57 = vadd.f32 %v1406_v54, %v6292_v26  ;;  %v1411_v58 = vadd.f32 %v1407_v55, %v6290_v24 }
0x1534   :  { %5582 = vmatprep.subr.bf16.mxu1 %v5581_v56 }
0x1535   :  { %5830 = vtanh.f32 %v1410_v57  ;;  %v5011_v61 = vmul.f32 -1.442695, %v1410_v57  ;;  %v5012_v62 = vmul.f32 -1.442695, %v1411_v58  ;;  %5584 = vmatpush3.bf16.msra.mxu1 %v5581_v56 }
0x1536   :  { %5832 = vtanh.f32 %v1411_v58  ;;  %v75_v58 = vld [vmem:[#allocation2 + $0x30] sm:$0xff] }
0x1537   :  { %5834 = vpow2.f32 %v5011_v61  ;;  %v77_v61 = vld [vmem:[#allocation2 + $0x40] sm:$0xff] }
0x1538   :  { %5836 = vpow2.f32 %v5012_v62  ;;  %v78_v62 = vld [vmem:[#allocation2 + $0x48] sm:$0xff] }
0x153f   :  { %v5831_v59 = vpop.eup %5830 }
0x1540   :  { %v5833_v60 = vpop.eup %5832  ;;  %1436 = vrot.lane.b32.xlu1 %v5831_v59, %s6161_s20  ;;  %v76_v59 = vld [vmem:[#allocation2 + $0x38] sm:$0xff] }
0x1541   :  { %1438 = vrot.lane.b32.xlu0 %v5833_v60, %s6161_s20  ;;  %v5835_v63 = vpop.eup %5834 }
0x1542   :  { %v5837_v0 = vpop.eup %5836  ;;  %v1418_v1 = vadd.f32 1.0, %v5835_v63 }
0x1543   :  { %v1419_v2 = vadd.f32 1.0, %v5837_v0  ;;  %v6499_v0 = vpack.c.bf16 %v78_v62, %v77_v61 }
0x1544   :  { %5838 = vrcp.f32 %v1418_v1  ;;  %v79_v1 = vld [vmem:[#allocation2 + $0x50] sm:$0xff] }
0x1545   :  { %5840 = vrcp.f32 %v1419_v2  ;;  %v80_v2 = vld [vmem:[#allocation2 + $0x58] sm:$0xff] }
0x154e   :  { %v5839_v26 = vpop.eup %5838 }
0x154f   :  { %v5841_v3 = vpop.eup %5840  ;;  %v1432_v11 = vmul.f32 %v5839_v26, %v1428_v9 }
0x1550   :  { %v1433_v14 = vmul.f32 %v5841_v3, %v1429_v10 }
0x15b2   :  { %v1437_v24 = vpop.permute.xlu1 %1436 }
0x15b3   :  { %v1439_v4 = vpop.permute.xlu0 %1438  ;;  %v1442_v7 = vmul.f32 %v5839_v26, %v1437_v24  ;;  %v5013_v24 = vld [vmem:[%s7482_s5 + $0x2] ss:$0 sm:$0xff] }
0x15b4   :  { %v1443_v8 = vmul.f32 %v5841_v3, %v1439_v4 }
0x15b5   :  { %1446 = vrot.lane.b32.xlu1 %v1442_v7, %s6162_s21 }
0x15b6   :  { %1448 = vrot.lane.b32.xlu0 %v1443_v8, %s6162_s21 }
0x1627   :  { %v1447_v15 = vpop.permute.xlu1 %1446 }
0x1628   :  { %v1449_v16 = vpop.permute.xlu0 %1448  ;;  %v1452_v19 = vadd.f32 %v1447_v15, %v1432_v11  ;;  %v62_v11 = vld [vmem:[%s7483_s6 + $0x1] sm:$0x1] }
0x1629   :  { %v1453_v20 = vadd.f32 %v1449_v16, %v1433_v14 }
0x162a   :  { %5842 = vtanh.f32 %v1452_v19  ;;  %v1916_v21 = vrot.slane %v1452_v19, 7 }
0x162b   :  { %5844 = vtanh.f32 %v1453_v20  ;;  %v1917_v22 = vrot.slane %v1453_v20, 6  ;;  %v6553_v20 = vld [vmem:[%s7480_s3 + $0x1] sm:$0x1] }
0x162d   :  { %v6475_v25 = vsel %vm413_vm4, %v1917_v22, %v1916_v21 }
0x1634   :  { %v5843_v23 = vpop.eup %5842 }
0x1635   :  { %v5845_v29 = vpop.eup %5844  ;;  %1458 = vrot.lane.b32.xlu1 %v5843_v23, %s6161_s20 }
0x1636   :  { %1460 = vrot.lane.b32.xlu0 %v5845_v29, %s6161_s20 }
0x1639   :  { %5707 = vrot.lane.b32.xlu1 %v5706_v30, %s6163_s22 }
0x163a   :  { %5712 = vrot.lane.b32.xlu0 %v5711_v35, %s6163_s22 }
0x16a7   :  { %v1459_v37 = vpop.permute.xlu1 %1458 }
0x16a8   :  { %v1461_v38 = vpop.permute.xlu0 %1460  ;;  %v1464_v39 = vmul.f32 %v5839_v26, %v1459_v37  ;;  %v6505_v26 = vpack.c.bf16 %v80_v2, %v79_v1 }
0x16a9   :  { %v1465_v40 = vmul.f32 %v5841_v3, %v1461_v38 }
0x16aa   :  { %v1472_v41 = vrot.slane %v1464_v39, %v1471_v36  ;;  %v1829_v43 = vrot.slane %v1464_v39, 7 }
0x16ab   :  { %v1476_v42 = vrot.slane %v1465_v40, %v1471_v36  ;;  %v5708_v44 = vpop.permute.xlu1 %5707  ;;  %v1830_v45 = vrot.slane %v1465_v40, 6 }
0x16ac   :  { %v1477_v46 = vsel %vm1466_vm13, %v1472_v41, %v6461_v49  ;;  %v5710_v47 = vunpack.i.h.bf16 %v5708_v44  ;;  %v5709_v48 = vunpack.i.l.bf16 %v5708_v44  ;;  %v5713_v50 = vpop.permute.xlu0 %5712  ;;  %v5589_v49 = vpack.c.bf16 %v76_v59, %v75_v58  ;;  %v67_v41 = vld [vmem:[#allocation5 + $0x20] sm:$0xff] }
0x16ad   :  { %v1478_v52 = vsel %vm1466_vm13, %v1476_v42, %v6464_v51  ;;  %1485 = vrot.lane.b32.xlu1 %v1477_v46, %s6162_s21  ;;  %v5715_v53 = vunpack.i.h.bf16 %v5713_v50  ;;  %v5714_v54 = vunpack.i.l.bf16 %v5713_v50  ;;  %v1831_v60 = vsel %vm413_vm4, %v1830_v45, %v1829_v43  ;;  %v68_v42 = vld [vmem:[#allocation5 + $0x28] sm:$0xff]  ;;  %v69_v43 = vld [vmem:[#allocation5 + $0x30] sm:$0xff]  ;;  %v70_v45 = vld [vmem:[#allocation5 + $0x38] sm:$0xff] }
0x16ae   :  { %1487 = vrot.lane.b32.xlu0 %v1478_v52, %s6162_s21  ;;  %v5573_v55 = vpack.c.bf16 %v5710_v47, %v5709_v48  ;;  %v6563_v44 = vpack.c.bf16 %v68_v42, %v67_v41  ;;  %v6566_v46 = vpack.c.bf16 %v70_v45, %v69_v43  ;;  %v6164_v52 = vmov 1966171168   ;;  %v5018_v59 = vld [vmem:[%s7482_s5 + $0x1] ss:$0 sm:$0xff] }
0x16af   :  { %v5577_v57 = vpack.c.bf16 %v5715_v53, %v5714_v54  ;;  %v2014_v53 = vunpack.c.l.s4 %v6164_v52 }
0x16b0   :  { %5574 = vmatprep.subr.bf16.mxu0 %v5573_v55 }
0x16b1   :  { %1832 = vrot.lane.b32.xlu1 %v1831_v60, %s6162_s21  ;;  %5576 = vmatpush3.bf16.msra.mxu0 %v5573_v55  ;;  %v2015_v54 = vunpack.c.0.s8 %v2014_v53 }
0x16b2   :  { %5578 = vmatprep.subr.bf16.mxu0 %v5577_v57 }
0x16b3   :  { %v6581_v55 = vsub.s32 %v2015_v54, %v6332_v32 }
0x16b5   :  { %5580 = vmatpush3.bf16.msra.mxu0 %v5577_v57 }
0x16b6   :  { %5590 = vmatprep.subr.bf16.mxu0 %v5589_v49 }
0x171f   :  { %v1486_v51 = vpop.permute.xlu1 %1485 }
0x1720   :  { %v1488_v63 = vpop.permute.xlu0 %1487  ;;  %5317 = vmatprep.mubr.msk.f32.mxu0 %vm269_vm5, %v1486_v51 }
0x1721   :  { %5318 = vmatmul.mubr.msk.f32.vlgmr.msra.gmra.mrb[10].mxu0 %vm269_vm5, %v1488_v63 }
0x1722   :  { %5592 = vmatpush3.bf16.msra.mxu0 %v5589_v49  ;;  %5335 = vmatprep.mubr.msk.f32.mxu0 %vm187_vm3, %v6273_v17 }
0x1723   :  { %5596 = vmatprep.subr.bf16.mxu0 %v7487_v6  ;;  %v1833_v17 = vpop.permute.xlu1 %1832 }
0x1725   :  { %5336 = vmatmul.mubr.msk.f32.vlgmr.msra.gmra.mrb[12].mxu0 %vm187_vm3, %v6275_v18  ;;  %v5585_v18 = vpack.c.bf16 %v6479_v12, %v6477_v28 }
0x1726   :  { %5598 = vmatpush3.bf16.msra.mxu0 %v6499_v0  ;;  %5353 = vmatprep.mubr.msk.f32.mxu0 %vm6159_vm2, %v7489_v13 }
0x1727   :  { %5599 = vmatprep.subr.bf16.mxu0 %v7487_v6  ;;  %5586 = vmatprep.subr.bf16.mxu1 %v5585_v18 }
0x1728   :  { %5588 = vmatpush3.bf16.msra.mxu1 %v5585_v18  ;;  %v6605_v18 = vld [vmem:[%s7482_s5 + $0x3] ss:$0 sm:$0xff] }
0x1729   :  { %5593 = vmatprep.subr.bf16.mxu1 %v7487_v6 }
0x172a   :  { %5601 = vmatpush3.bf16.msra.mxu0 %v6505_v26 }
0x172b   :  { %5608 = vmatprep.subr.bf16.mxu0 %v7487_v6 }
0x172d   :  { %5354 = vmatmul.mubr.msk.f32.vlgmr.msra.gmra.mrb[14].mxu0 %vm269_vm5, %v1833_v17 }
0x172e   :  { %5610 = vmatpush3.bf16.msra.mxu0 %v6499_v0  ;;  %5375 = vmatprep.mubr.msk.f32.mxu0 %vm6159_vm2, %v7489_v13 }
0x172f   :  { %5611 = vmatprep.subr.bf16.mxu0 %v7487_v6 }
0x1732   :  { %5613 = vmatpush3.bf16.msra.mxu0 %v6505_v26 }
0x1733   :  { %5620 = vmatprep.subr.bf16.mxu0 %v7487_v6 }
0x17f4   :  { %v5319_v3 = vpop.f32.mrb[10].mxu0 }
0x17f5   :  { %v1575_v4 = vpop.f32.mrb[11].mxu0  ;;  %v6527_v8 = vadd.f32 %v5319_v3, %v5013_v24 }
0x17f6   :  { %v6525_v7 = vadd.f32 %v5013_v24, %v1575_v4 }
0x17f7   :  { %v6597_v63 = vadd.f32 %v5018_v59, %v6527_v8 }
0x17f8   :  { %5328 = vmatprep.mubr.msk.f32.mxu1 %vm269_vm5, %v6525_v7  ;;  %v6531_v9 = vpop.f32.mrb[12].mxu0  ;;  %v6592_v51 = vadd.f32 %v5018_v59, %v6525_v7 }
0x17f9   :  { %5329 = vmatmul.mubr.msk.f32.vlgmr.msra.gmra.mrb[10].mxu1 %vm269_vm5, %v6527_v8  ;;  %v6535_v10 = vpop.f32.mrb[13].mxu0 }
0x17fa   :  { %5595 = vmatpush3.bf16.msra.mxu1 %v5589_v49  ;;  %5342 = vmatprep.mubr.msk.f32.mxu1 %vm6159_vm2, %v7489_v13 }
0x17fb   :  { %5602 = vmatprep.subr.bf16.mxu1 %v7487_v6 }
0x17fd   :  { %5343 = vmatmul.mubr.msk.f32.vlgmr.msra.gmra.mrb[12].mxu1 %vm187_vm3, %v62_v11 }
0x17fe   :  { %5364 = vmatprep.mubr.msk.f32.mxu1 %vm6159_vm2, %v7489_v13  ;;  %5604 = vmatpush3.bf16.msra.mxu1 %v6563_v44 }
0x17ff   :  { %5605 = vmatprep.subr.bf16.mxu1 %v7487_v6 }
0x1800   :  { %v1902_v14 = vpop.f32.mrb[14].mxu0 }
0x1801   :  { %v5355_v15 = vpop.f32.mrb[15].mxu0 }
0x1802   :  { %5607 = vmatpush3.bf16.msra.mxu1 %v6566_v46 }
0x1803   :  { %5614 = vmatprep.subr.bf16.mxu1 %v7487_v6 }
0x18cc   :  { %v6546_v16 = vpop.f32.mrb[10].mxu1 }
0x18cd   :  { %v6548_v19 = vpop.f32.mrb[11].mxu1 }
0x18d0   :  { %v1819_v21 = vpop.f32.mrb[12].mxu1 }
0x18d1   :  { %v1820_v22 = vadd.f32 %v1819_v21, %v6553_v20  ;;  %v5344_v27 = vpop.f32.mrb[13].mxu1 }
0x18d3   :  { %v1826_v5 = vrot.slane %v1820_v22, %v6335_v33 }
0x18d5   :  { %v1906_v28 = vadd.f32 %v1902_v14, %v1826_v5  ;;  %v6612_v14 = vand.u32 127, %v82_v31 }
0x18d7   :  { %5846 = vtanh.f32 %v1906_v28  ;;  %v5023_v23 = vmul.f32 -1.442695, %v1906_v28  ;;  %v6616_v15 = vsub.s32 %v6612_v14, %v6332_v32  ;;  %vm2277_vm10 = vcmp.eq.s32.totalorder %v6612_v14, 0 }
0x18d8   :  { %vm2668_vm11 = vcmp.eq.s32.totalorder %v6612_v14, 1 }
0x18d9   :  { %5848 = vpow2.f32 %v5023_v23  ;;  %v6165_v23 = vmov 0  }
0x18da   :  { %5717 = vset.pattern.permute.xlu1 %v6165_v23  ;;  %5716 = vset.pattern.permute.xlu0 %v6165_v23 }
0x18e1   :  { %v5847_v12 = vpop.eup %5846 }
0x18e2   :  { %1922 = vrot.lane.b32.xlu0 %v5847_v12, %s6161_s20 }
0x18e3   :  { %v5849_v29 = vpop.eup %5848 }
0x18e4   :  { %v1910_v30 = vadd.f32 1.0, %v5849_v29 }
0x18e6   :  { %5850 = vrcp.f32 %v1910_v30 }
0x18f0   :  { %v5851_v35 = vpop.eup %5850 }
0x18f1   :  { %v1920_v38 = vmul.f32 %v5851_v35, %v6475_v25 }
0x1954   :  { %v1923_v36 = vpop.permute.xlu0 %1922 }
0x1955   :  { %v1925_v37 = vmul.f32 %v5851_v35, %v1923_v36 }
0x1957   :  { %1927 = vrot.lane.b32.xlu1 %v1925_v37, %s6162_s21 }
0x19c9   :  { %v1928_v39 = vpop.permute.xlu1 %1927 }
0x19ca   :  { %v6560_v40 = vadd.f32 %v1928_v39, %v1920_v38 }
0x19cc   :  { %5852 = vtanh.f32 %v6560_v40 }
0x19d6   :  { %v5853_v25 = vpop.eup %5852 }
0x19d7   :  { %1933 = vrot.lane.b32.xlu0 %v5853_v25, %s6161_s20 }
0x1a49   :  { %v1934_v47 = vpop.permute.xlu0 %1933 }
0x1a4a   :  { %v1936_v48 = vmul.f32 %v5851_v35, %v1934_v47 }
0x1a4c   :  { %1938 = vrot.lane.b32.xlu1 %v1936_v48, %s6162_s21 }
0x1abe   :  { %v1939_v50 = vpop.permute.xlu1 %1938 }
0x1abf   :  { %5365 = vmatmul.mubr.msk.f32.vlgmr.msra.gmra.mrb[14].mxu1 %vm269_vm5, %v1939_v50 }
0x1ac0   :  { %5616 = vmatpush3.bf16.msra.mxu1 %v6563_v44  ;;  %5386 = vmatprep.mubr.msk.f32.mxu1 %vm6159_vm2, %v7489_v13 }
0x1ac1   :  { %5617 = vmatprep.subr.bf16.mxu1 %v7487_v6 }
0x1ac4   :  { %5619 = vmatpush3.bf16.msra.mxu1 %v6566_v46 }
0x1ac5   :  { %5626 = vmatprep.subr.bf16.mxu1 %v7487_v6 }
0x1b92   :  { %v6583_v56 = vpop.f32.mrb[14].mxu1 }
0x1b93   :  { %v2019_v57 = vrot.slane %v6583_v56, %v6581_v55  ;;  %v5366_v58 = vpop.f32.mrb[15].mxu1 }
0x1b95   :  { %v2020_v60 = vcombine.high %v2019_v57, %v2019_v57  ;;  %v2027_v49 = vrot.slane %v2019_v57, %v6581_v55 }
0x1b97   :  { %v2034_v61 = vrot.slane %v2020_v60, %v6581_v55  ;;  %v2038_v62 = vrot.slane %v2027_v49, %v6335_v33 }
0x1b99   :  { %v2042_v1 = vrot.slane %v2034_v61, %v6335_v33  ;;  %v2045_v2 = vadd.f32 %v2038_v62, %v6592_v51  ;;  %v2260_v61 = vrot.slane %v6583_v56, 1 }
0x1b9b   :  { %v2046_v17 = vadd.f32 %v2042_v1, %v6597_v63  ;;  %5854 = vtanh.f32 %v2045_v2 }
0x1b9d   :  { %5856 = vtanh.f32 %v2046_v17 }
0x1ba5   :  { %v5855_v24 = vpop.eup %5854 }
0x1ba6   :  { %v2053_v3 = vmul.f32 %v5855_v24, %v6605_v18 }
0x1ba7   :  { %v5857_v4 = vpop.eup %5856 }
0x1ba8   :  { %v2055_v7 = vsel %vm269_vm5, %v2053_v3, 0.0  ;;  %v2054_v8 = vmul.f32 %v5857_v4, %v6605_v18 }
0x1ba9   :  { %2056 = vadd.xlane.f32.xlu0 %v2055_v7 }
0x1baa   :  { %v2058_v11 = vsel %vm269_vm5, %v2054_v8, 0.0 }
0x1bab   :  { %2059 = vadd.xlane.f32.xlu1 %v2058_v11 }
0x1c36   :  { %v2057_v21 = vpop.xlane.xlu0 %2056 }
0x1c37   :  { %v2066_v27 = vrot.slane %v2057_v21, %v6616_v15 }
0x1c38   :  { %v2060_v22 = vpop.xlane.xlu1 %2059 }
0x1c39   :  { %v2070_v5 = vrot.slane %v2060_v22, %v6616_v15 }
0x1c3b   :  { %v2071_v28 = vsel %vm413_vm4, %v2070_v5, %v2066_v27 }
0x1c3c   :  { %v2074_v12 = vsel %vm2073_vm14, %v2071_v28, -inf }
0x1c3d   :  { %2075 = vmax.xlane.f32.xlu0 %v2074_v12 }
0x1cca   :  { %v2076_v31 = vpop.xlane.xlu0 %2075 }
0x1ccb   :  { %v2081_v29 = vrot.slane %v2076_v31, %v6335_v33  ;;  %v2085_v32 = vrot.slane %v2076_v31, %v6338_v34 }
0x1ccd   :  { %v6624_v30 = vsub.f32 %v2057_v21, %v2081_v29  ;;  %v6626_v35 = vsub.f32 %v2060_v22, %v2085_v32  ;;  %vm2145_vm15 = vcmp.ge.f32.partialorder %v2057_v21, %v2081_v29  ;;  %vm2146_vm0 = vcmp.ge.f32.partialorder %v2060_v22, %v2085_v32 }
0x1ccf   :  { %v2090_v36 = vmul.f32 1.442695, %v6624_v30  ;;  %v2092_v37 = vmul.f32 1.442695, %v6626_v35 }
0x1cd1   :  { %5858 = vpow2.f32 %v2090_v36 }
0x1cd2   :  { %5860 = vpow2.f32 %v2092_v37 }
0x1cdb   :  { %v5859_v38 = vpop.eup %5858 }
0x1cdc   :  { %v5861_v39 = vpop.eup %5860  ;;  %2097 = vperm.xlu0 %5716, %v5859_v38  }
0x1cdd   :  { %2100 = vperm.xlu1 %5717, %v5861_v39  }
0x1ce0   :  { %2148 = vbcast.lane.b32.xlu0 %v6612_v14, 256 }
0x1d5b   :  { %v2098_v41 = vpop.permute.xlu0 %2097 }
0x1d5c   :  { %v2101_v42 = vpop.permute.xlu1 %2100  ;;  %v2105_v43 = vrot.slane %v2098_v41, %v6616_v15 }
0x1d5d   :  { %v2109_v45 = vrot.slane %v2101_v42, %v6616_v15 }
0x1d5f   :  { %v2110_v25 = vsel %vm413_vm4, %v2109_v45, %v2105_v43  ;;  %v2149_v48 = vpop.permute.xlu0 %2148 }
0x1d60   :  { %v2112_v47 = vsel %vm2073_vm14, %v2110_v25, 0.0  ;;  %v2150_v50 = vsel %vm2145_vm15, %v2149_v48, 8  ;;  %v2151_v49 = vsel %vm2146_vm0, %v2149_v48, 8 }
0x1d61   :  { %2113 = vadd.xlane.f32.xlu1 %v2112_v47 }
0x1d72   :  { %2153 = vperm.xlu1 %5717, %v2150_v50  }
0x1dee   :  { %v6635_v52 = vpop.xlane.xlu1 %2113 }
0x1def   :  { %v2123_v53 = vrot.slane %v6635_v52, %v6338_v34  ;;  %v2119_v54 = vrot.slane %v6635_v52, %v6335_v33 }
0x1df1   :  { %5862 = vrcp.f32 %v2123_v53 }
0x1df2   :  { %5864 = vrcp.f32 %v2119_v54  ;;  %v2154_v4 = vpop.permute.xlu1 %2153 }
0x1df3   :  { %v2161_v27 = vrot.slane %v2154_v4, %v6616_v15 }
0x1dfb   :  { %v5863_v57 = vpop.eup %5862 }
0x1dfc   :  { %v6641_v58 = vmul.f32 %v5863_v57, %v5861_v39  ;;  %v5865_v59 = vpop.eup %5864  ;;  %v6662_v39 = vld [vmem:[%s7482_s5] ss:$0 sm:$0xff] }
0x1dfd   :  { %v6644_v60 = vmul.f32 %v5865_v59, %v5859_v38 }
0x1dfe   :  { %2241 = vperm.xlu0 %5716, %v6641_v58  }
0x1e02   :  { %2236 = vperm.xlu0 %5716, %v6644_v60  }
0x1e06   :  { %2156 = vperm.xlu0 %5716, %v2151_v49  }
0x1e0a   :  { %2263 = vrot.lane.b32.xlu0 %v2260_v61, %s6163_s22 }
0x1e0e   :  { %2261 = vrot.lane.b32.xlu0 %v6583_v56, %s6163_s22 }
0x1e7d   :  { %v2242_v62 = vpop.permute.xlu0 %2241 }
0x1e7e   :  { %v2245_v1 = vmul.f32 %v6546_v16, %v2242_v62 }
0x1e80   :  { %v2253_v2 = vsel %vm269_vm5, %v2245_v1, 0.0 }
0x1e81   :  { %v2254_v17 = vrot.slane %v2253_v2, 4  ;;  %v2237_v24 = vpop.permute.xlu0 %2236 }
0x1e82   :  { %v2244_v3 = vmul.f32 %v2237_v24, %v6548_v19 }
0x1e83   :  { %v2255_v7 = vadd.f32 %v2254_v17, %v2253_v2 }
0x1e84   :  { %v2246_v8 = vsel %vm269_vm5, %v2244_v3, 0.0 }
0x1e85   :  { %v2256_v11 = vrot.slane %v2255_v7, 2  ;;  %v2247_v21 = vrot.slane %v2246_v8, 4  ;;  %v2157_v22 = vpop.permute.xlu0 %2156 }
0x1e86   :  { %v2165_v56 = vrot.slane %v2157_v22, %v6616_v15 }
0x1e87   :  { %v2248_v5 = vadd.f32 %v2247_v21, %v2246_v8  ;;  %v2257_v28 = vadd.f32 %v2256_v11, %v2255_v7 }
0x1e88   :  { %v2166_v12 = vsel %vm413_vm4, %v2165_v56, %v2161_v27  ;;  %v1674_v27 = vrot.slane %v6553_v20, %v6335_v33 }
0x1e89   :  { %v2249_v23 = vrot.slane %v2248_v5, 2  ;;  %v2258_v31 = vrot.slane %v2257_v28, 1  ;;  %v2167_v29 = vsel %vm2073_vm14, %v2166_v12, 2147483647  ;;  %v2264_v32 = vpop.permute.xlu0 %2263 }
0x1e8a   :  { %v2169_v36 = vshra.s32 %v2167_v29, 16  ;;  %v2168_v49 = vand.u32 65535, %v2167_v29  ;;  %v6691_v56 = vadd.f32 %v6531_v9, %v1674_v27 }
0x1e8b   :  { %v2259_v37 = vadd.f32 %v2258_v31, %v2257_v28  ;;  %v2250_v38 = vadd.f32 %v2249_v23, %v2248_v5  ;;  %v6694_v5 = vadd.f32 %v6535_v10, %v1674_v27 }
0x1e8c   :  { %v2171_v41 = vcvt.s32.f32 %v2169_v36  ;;  %v2170_v62 = vcvt.s32.f32 %v2168_v49 }
0x1e8d   :  { %v2268_v42 = vadd.f32 %v2264_v32, %v2259_v37  ;;  %v2251_v43 = vrot.slane %v2250_v38, 1  ;;  %v2262_v47 = vpop.permute.xlu0 %2261 }
0x1e8e   :  { %2172 = vmin.xlane.f32.xlu0 %v2171_v41 }
0x1e8f   :  { %v2274_v45 = vadd.f32 %v6662_v39, %v2268_v42  ;;  %v2252_v25 = vadd.f32 %v2251_v43, %v2250_v38 }
0x1e91   :  { %5866 = vtanh.f32 %v2274_v45  ;;  %v2267_v48 = vadd.f32 %v2262_v47, %v2252_v25 }
0x1e93   :  { %v2273_v50 = vadd.f32 %v6662_v39, %v2267_v48 }
0x1e95   :  { %5868 = vtanh.f32 %v2273_v50 }
0x1e9b   :  { %v5867_v53 = vpop.eup %5866 }
0x1e9c   :  { %v2310_v54 = vrot.slane %v5867_v53, 7 }
0x1e9f   :  { %v5869_v57 = vpop.eup %5868 }
0x1ea0   :  { %v2311_v59 = vsel %vm413_vm4, %v2310_v54, %v5869_v57 }
0x1ea1   :  { %5376 = vmatmul.mubr.msk.f32.vlgmr.msra.gmra.mrb[16].mxu0 %vm269_vm5, %v2311_v59 }
0x1ea2   :  { %5622 = vmatpush3.bf16.msra.mxu0 %v6499_v0  ;;  %5397 = vmatprep.mubr.msk.f32.mxu0 %vm6159_vm2, %v7489_v13 }
0x1ea3   :  { %5623 = vmatprep.subr.bf16.mxu0 %v7487_v6 }
0x1ea6   :  { %5625 = vmatpush3.bf16.msra.mxu0 %v6505_v26 }
0x1ea7   :  { %5632 = vmatprep.subr.bf16.mxu0 %v7487_v6 }
0x1f1b   :  { %v2173_v61 = vpop.xlane.xlu0 %2172 }
0x1f1c   :  { %vm2174_vm1 = vcmp.eq.f32.partialorder %v2171_v41, %v2173_v61  ;;  %v2179_v24 = vcvt.f32.s32 %v2173_v61 }
0x1f1d   :  { %v2175_v1 = vsel %vm2174_vm1, %v2170_v62, inf }
0x1f1e   :  { %2176 = vmin.xlane.f32.xlu1 %v2175_v1  ;;  %v2180_v4 = vshll.u32 %v2179_v24, 16 }
0x1f74   :  { %v2380_v2 = vpop.f32.mrb[16].mxu0 }
0x1f75   :  { %v5377_v17 = vpop.f32.mrb[17].mxu0  ;;  %v2385_v45 = vrot.slane %v2380_v2, 1 }
0x1fab   :  { %v2177_v3 = vpop.xlane.xlu1 %2176 }
0x1fac   :  { %v2178_v7 = vcvt.f32.s32 %v2177_v3 }
0x1fae   :  { %v6674_v8 = vadd.s32 %v2180_v4, %v2178_v7  ;;  %v2405_v7 = vrot.slane %v6560_v40, 1 }
0x1fb0   :  { %vm2182_vm3 = vcmp.eq.s32.totalorder %v6612_v14, %v6674_v8 }
0x1fb1   :  { %v6682_v11 = vsel %vm2182_vm3, 1.0, %v7489_v13  ;;  %vm6738_vm7 = vmxor %vm2182_vm3, %vm6166_vm6  ;;  %vm3056_vm3 = vcmp.eq.s32.totalorder %v6612_v14, 2 }
0x1fb2   :  { %v2289_v21 = vrot.slane %v6682_v11, %v6338_v34  ;;  %v2282_v22 = vrot.slane %v6682_v11, %v6335_v33 }
0x1fb4   :  { %2291 = vbcast.lane.b32.xlu0 %v2289_v21, 256  ;;  %2284 = vbcast.lane.b32.xlu1 %v2282_v22, 256 }
0x2026   :  { %v2292_v28 = vpop.permute.xlu0 %2291  ;;  %v2285_v12 = vpop.permute.xlu1 %2284 }
0x2027   :  { %v2294_v23 = vmul.f32 %v2292_v28, %v6691_v56  ;;  %v2293_v31 = vmul.f32 %v2285_v12, %v6694_v5 }
0x2029   :  { %v2301_v29 = vrot.slane %v2294_v23, 4  ;;  %v2295_v32 = vrot.slane %v2293_v31, 4 }
0x202b   :  { %v2302_v36 = vadd.f32 %v2301_v29, %v2294_v23  ;;  %v2296_v37 = vadd.f32 %v2295_v32, %v2293_v31 }
0x202d   :  { %v2303_v38 = vrot.slane %v2302_v36, 2  ;;  %v2297_v41 = vrot.slane %v2296_v37, 2 }
0x202f   :  { %v2304_v42 = vadd.f32 %v2303_v38, %v2302_v36  ;;  %v2298_v20 = vadd.f32 %v2297_v41, %v2296_v37 }
0x2031   :  { %v2305_v43 = vrot.slane %v2304_v42, 1  ;;  %v2299_v9 = vrot.slane %v2298_v20, 1 }
0x2033   :  { %v2306_v25 = vadd.f32 %v2305_v43, %v2304_v42  ;;  %v2300_v10 = vadd.f32 %v2299_v9, %v2298_v20 }
0x2035   :  { %v2389_v47 = vadd.f32 %v2385_v45, %v2306_v25  ;;  %v2388_v48 = vadd.f32 %v2380_v2, %v2300_v10 }
0x2037   :  { %5870 = vtanh.f32 %v2389_v47  ;;  %v5030_v54 = vmul.f32 -1.442695, %v2389_v47  ;;  %v5029_v57 = vmul.f32 -1.442695, %v2388_v48 }
0x2038   :  { %5872 = vtanh.f32 %v2388_v48 }
0x2039   :  { %5874 = vpow2.f32 %v5030_v54 }
0x203a   :  { %5876 = vpow2.f32 %v5029_v57 }
0x2041   :  { %v5871_v50 = vpop.eup %5870 }
0x2042   :  { %v5873_v53 = vpop.eup %5872  ;;  %2414 = vrot.lane.b32.xlu0 %v5871_v50, %s6161_s20 }
0x2043   :  { %2412 = vrot.lane.b32.xlu1 %v5873_v53, %s6161_s20  ;;  %v5875_v59 = vpop.eup %5874 }
0x2044   :  { %v5877_v49 = vpop.eup %5876  ;;  %v2397_v61 = vadd.f32 1.0, %v5875_v59 }
0x2045   :  { %v2396_v62 = vadd.f32 1.0, %v5877_v49 }
0x2046   :  { %5878 = vrcp.f32 %v2397_v61 }
0x2047   :  { %5880 = vrcp.f32 %v2396_v62 }
0x2050   :  { %v5879_v1 = vpop.eup %5878 }
0x2051   :  { %v5881_v17 = vpop.eup %5880  ;;  %v2409_v21 = vmul.f32 %v5879_v1, %v2405_v7 }
0x2052   :  { %v2408_v22 = vmul.f32 %v5881_v17, %v6560_v40 }
0x20b4   :  { %v2415_v2 = vpop.permute.xlu0 %2414 }
0x20b5   :  { %v2413_v24 = vpop.permute.xlu1 %2412  ;;  %v2419_v3 = vmul.f32 %v5879_v1, %v2415_v2 }
0x20b6   :  { %v2418_v4 = vmul.f32 %v5881_v17, %v2413_v24 }
0x20b7   :  { %2424 = vrot.lane.b32.xlu0 %v2419_v3, %s6162_s21  ;;  %v7500_v3 = vmov 0 }
0x20b8   :  { %2422 = vrot.lane.b32.xlu1 %v2418_v4, %s6162_s21  ;;  %v7501_v3 = vsel %vm6738_vm7, 4294967295, %v7500_v3 }
0x20b9   :  { %7502 = vst [vmem:[#allocation11_spill] sm:$0xff] %v7501_v3 }
0x2129   :  { %v2425_v27 = vpop.permute.xlu0 %2424 }
0x212a   :  { %v2423_v28 = vpop.permute.xlu1 %2422  ;;  %v6704_v12 = vadd.f32 %v2425_v27, %v2409_v21 }
0x212b   :  { %v6706_v23 = vadd.f32 %v2423_v28, %v2408_v22 }
0x212c   :  { %5882 = vtanh.f32 %v6704_v12 }
0x212d   :  { %5884 = vtanh.f32 %v6706_v23 }
0x2136   :  { %v5883_v31 = vpop.eup %5882 }
0x2137   :  { %v5885_v29 = vpop.eup %5884  ;;  %2436 = vrot.lane.b32.xlu0 %v5883_v31, %s6161_s20 }
0x2138   :  { %2434 = vrot.lane.b32.xlu1 %v5885_v29, %s6161_s20 }
0x21a9   :  { %v2437_v32 = vpop.permute.xlu0 %2436 }
0x21aa   :  { %v2435_v36 = vpop.permute.xlu1 %2434  ;;  %v2441_v37 = vmul.f32 %v5879_v1, %v2437_v32 }
0x21ab   :  { %v2440_v40 = vmul.f32 %v5881_v17, %v2435_v36 }
0x21ac   :  { %v2444_v38 = vrot.slane %v2441_v37, 7 }
0x21ae   :  { %v2445_v41 = vsel %vm413_vm4, %v2444_v38, %v2440_v40 }
0x21af   :  { %2446 = vrot.lane.b32.xlu0 %v2445_v41, %s6162_s21 }
0x2221   :  { %v2447_v42 = vpop.permute.xlu0 %2446 }
0x2222   :  { %5387 = vmatmul.mubr.msk.f32.vlgmr.msra.gmra.mrb[16].mxu1 %vm269_vm5, %v2447_v42 }
0x2223   :  { %5628 = vmatpush3.bf16.msra.mxu1 %v6563_v44  ;;  %5408 = vmatprep.mubr.msk.f32.mxu1 %vm6159_vm2, %v7489_v13 }
0x2224   :  { %5629 = vmatprep.subr.bf16.mxu1 %v7487_v6 }
0x2227   :  { %5631 = vmatpush3.bf16.msra.mxu1 %v6566_v46 }
0x2228   :  { %5638 = vmatprep.subr.bf16.mxu1 %v7487_v6 }
0x22f5   :  { %v2516_v20 = vpop.f32.mrb[16].mxu1 }
0x22f6   :  { %v2527_v43 = vrot.slane %v2516_v20, %v6581_v55  ;;  %v5388_v9 = vpop.f32.mrb[17].mxu1  ;;  %v2655_v42 = vrot.slane %v2516_v20, 1 }
0x22f8   :  { %v2528_v45 = vcombine.high %v2527_v43, %v2527_v43  ;;  %v2535_v25 = vrot.slane %v2527_v43, %v6581_v55 }
0x22fa   :  { %v2542_v10 = vrot.slane %v2528_v45, %v6581_v55  ;;  %v2546_v47 = vrot.slane %v2535_v25, %v6335_v33 }
0x22fc   :  { %v2550_v48 = vrot.slane %v2542_v10, %v6335_v33  ;;  %v2553_v50 = vadd.f32 %v2546_v47, %v6592_v51 }
0x22fe   :  { %v2554_v53 = vadd.f32 %v2550_v48, %v6597_v63  ;;  %5886 = vtanh.f32 %v2553_v50 }
0x2300   :  { %5888 = vtanh.f32 %v2554_v53 }
0x2308   :  { %v5887_v54 = vpop.eup %5886 }
0x2309   :  { %v2557_v57 = vmul.f32 %v5887_v54, %v6605_v18 }
0x230a   :  { %v5889_v59 = vpop.eup %5888 }
0x230b   :  { %v2559_v49 = vsel %vm269_vm5, %v2557_v57, 0.0  ;;  %v2558_v61 = vmul.f32 %v5889_v59, %v6605_v18 }
0x230c   :  { %2560 = vadd.xlane.f32.xlu1 %v2559_v49 }
0x230d   :  { %v2562_v62 = vsel %vm269_vm5, %v2558_v61, 0.0 }
0x230e   :  { %2563 = vadd.xlane.f32.xlu0 %v2562_v62 }
0x2399   :  { %v2561_v1 = vpop.xlane.xlu1 %2560 }
0x239a   :  { %v2570_v17 = vrot.slane %v2561_v1, %v6616_v15 }
0x239b   :  { %v2564_v2 = vpop.xlane.xlu0 %2563 }
0x239c   :  { %v2574_v24 = vrot.slane %v2564_v2, %v6616_v15 }
0x239e   :  { %v2575_v4 = vsel %vm413_vm4, %v2574_v24, %v2570_v17 }
0x239f   :  { %v2577_v7 = vsel %vm6738_vm7, %v2575_v4, -1e+30 }
0x23a0   :  { %v2578_v21 = vsel %vm2073_vm14, %v2577_v7, -inf }
0x23a1   :  { %2579 = vmax.xlane.f32.xlu0 %v2578_v21 }
0x242e   :  { %v2580_v22 = vpop.xlane.xlu0 %2579 }
0x242f   :  { %v6746_v27 = vsub.f32 %v2577_v7, %v2580_v22  ;;  %vm2593_vm8 = vcmp.ge.f32.partialorder %v2577_v7, %v2580_v22 }
0x2430   :  { %v2594_v43 = vsel %vm2593_vm8, %v6612_v14, 8 }
0x2431   :  { %v2582_v28 = vmul.f32 1.442695, %v6746_v27  ;;  %v2595_v9 = vsel %vm2073_vm14, %v2594_v43, 2147483647 }
0x2432   :  { %v2597_v45 = vshra.s32 %v2595_v9, 16  ;;  %v2596_v43 = vand.u32 65535, %v2595_v9 }
0x2433   :  { %5890 = vpow2.f32 %v2582_v28 }
0x2434   :  { %v2599_v25 = vcvt.s32.f32 %v2597_v45 }
0x243d   :  { %v5891_v31 = vpop.eup %5890 }
0x243e   :  { %v2584_v29 = vsel %vm6738_vm7, %v5891_v31, 0.0 }
0x243f   :  { %v2585_v32 = vsel %vm2073_vm14, %v2584_v29, 0.0 }
0x2440   :  { %2586 = vadd.xlane.f32.xlu0 %v2585_v32 }
0x24cd   :  { %v6752_v36 = vpop.xlane.xlu0 %2586 }
0x24ce   :  { %5892 = vrcp.f32 %v6752_v36 }
0x24d8   :  { %v5893_v37 = vpop.eup %5892 }
0x24d9   :  { %v6755_v40 = vmul.f32 %v5893_v37, %v2584_v29 }
0x24db   :  { %v2635_v38 = vrot.slane %v6755_v40, %v6338_v34  ;;  %v2628_v41 = vrot.slane %v6755_v40, %v6335_v33 }
0x24dd   :  { %2637 = vbcast.lane.b32.xlu1 %v2635_v38, 256  ;;  %2630 = vbcast.lane.b32.xlu0 %v2628_v41, 256 }
0x24e1   :  { %2658 = vrot.lane.b32.xlu1 %v2655_v42, %s6163_s22 }
0x24e5   :  { %2656 = vrot.lane.b32.xlu1 %v2516_v20, %s6163_s22 }
0x2509   :  { %2600 = vmin.xlane.f32.xlu1 %v2599_v25 }
0x254f   :  { %v2638_v10 = vpop.permute.xlu1 %2637  ;;  %v2631_v47 = vpop.permute.xlu0 %2630 }
0x2550   :  { %v2640_v48 = vmul.f32 %v6546_v16, %v2638_v10  ;;  %v2639_v50 = vmul.f32 %v2631_v47, %v6548_v19  ;;  %v2598_v10 = vcvt.s32.f32 %v2596_v43 }
0x2552   :  { %v2648_v53 = vsel %vm269_vm5, %v2640_v48, 0.0  ;;  %v2641_v54 = vsel %vm269_vm5, %v2639_v50, 0.0 }
0x2553   :  { %v2649_v57 = vrot.slane %v2648_v53, 4  ;;  %v2642_v20 = vrot.slane %v2641_v54, 4  ;;  %v2659_v1 = vpop.permute.xlu1 %2658 }
0x2555   :  { %v2650_v59 = vadd.f32 %v2649_v57, %v2648_v53  ;;  %v2643_v49 = vadd.f32 %v2642_v20, %v2641_v54  ;;  %v2278_v20 = vsel %vm2277_vm10, %v6674_v8, 0 }
0x2557   :  { %v2651_v61 = vrot.slane %v2650_v59, 2  ;;  %v2644_v62 = vrot.slane %v2643_v49, 2  ;;  %v2657_v22 = vpop.permute.xlu1 %2656 }
0x2559   :  { %v2652_v2 = vadd.f32 %v2651_v61, %v2650_v59  ;;  %v2645_v17 = vadd.f32 %v2644_v62, %v2643_v49 }
0x255b   :  { %v2653_v24 = vrot.slane %v2652_v2, 1  ;;  %v2646_v4 = vrot.slane %v2645_v17, 1 }
0x255d   :  { %v2654_v7 = vadd.f32 %v2653_v24, %v2652_v2  ;;  %v2647_v21 = vadd.f32 %v2646_v4, %v2645_v17 }
0x255f   :  { %v2663_v28 = vadd.f32 %v2659_v1, %v2654_v7  ;;  %v2662_v31 = vadd.f32 %v2657_v22, %v2647_v21 }
0x2561   :  { %v2665_v29 = vadd.f32 %v6662_v39, %v2663_v28  ;;  %v2664_v32 = vadd.f32 %v6662_v39, %v2662_v31 }
0x2563   :  { %5894 = vtanh.f32 %v2665_v29 }
0x2564   :  { %5896 = vtanh.f32 %v2664_v32 }
0x256d   :  { %v5895_v37 = vpop.eup %5894 }
0x256e   :  { %v2702_v38 = vrot.slane %v5895_v37, 7  ;;  %v5897_v41 = vpop.eup %5896 }
0x2570   :  { %v2703_v42 = vsel %vm413_vm4, %v2702_v38, %v5897_v41 }
0x2571   :  { %5398 = vmatmul.mubr.msk.f32.vlgmr.msra.gmra.mrb[18].mxu0 %vm269_vm5, %v2703_v42 }
0x2572   :  { %5634 = vmatpush3.bf16.msra.mxu0 %v6499_v0  ;;  %5419 = vmatprep.mubr.msk.f32.mxu0 %vm6159_vm2, %v7489_v13 }
0x2573   :  { %5635 = vmatprep.subr.bf16.mxu0 %v7487_v6 }
0x2576   :  { %5637 = vmatpush3.bf16.msra.mxu0 %v6505_v26 }
0x2577   :  { %5644 = vmatprep.subr.bf16.mxu0 %v7487_v6 }
0x2596   :  { %v2601_v45 = vpop.xlane.xlu1 %2600 }
0x2597   :  { %vm2602_vm9 = vcmp.eq.f32.partialorder %v2599_v25, %v2601_v45  ;;  %v2607_v48 = vcvt.f32.s32 %v2601_v45 }
0x2598   :  { %v2603_v47 = vsel %vm2602_vm9, %v2598_v10, inf }
0x2599   :  { %2604 = vmin.xlane.f32.xlu0 %v2603_v47  ;;  %v2608_v53 = vshll.u32 %v2607_v48, 16 }
0x2626   :  { %v2605_v50 = vpop.xlane.xlu0 %2604 }
0x2627   :  { %v2606_v54 = vcvt.f32.s32 %v2605_v50 }
0x2629   :  { %v6781_v57 = vadd.s32 %v2608_v53, %v2606_v54 }
0x262b   :  { %vm2610_vm12 = vcmp.eq.s32.totalorder %v6612_v14, %v6781_v57  ;;  %v6787_v9 = vsel %vm2668_vm11, %v6781_v57, %v2278_v20 }
0x262c   :  { %v6793_v25 = vsel %vm2610_vm12, 1.0, %v7489_v13  ;;  %vm2698_vm13 = vmxor %vm2610_vm12, %vm6166_vm6 }
0x262d   :  { %v2680_v59 = vrot.slane %v6793_v25, %v6338_v34  ;;  %v2673_v49 = vrot.slane %v6793_v25, %v6335_v33  ;;  %vm6843_vm15 = vmand %vm6738_vm7, %vm2698_vm13  ;;  %vm3444_vm13 = vcmp.eq.s32.totalorder %v6612_v14, 3 }
0x262f   :  { %2682 = vbcast.lane.b32.xlu0 %v2680_v59, 256  ;;  %2675 = vbcast.lane.b32.xlu1 %v2673_v49, 256 }
0x2644   :  { %v2772_v8 = vpop.f32.mrb[18].mxu0 }
0x2645   :  { %v5399_v61 = vpop.f32.mrb[19].mxu0  ;;  %v2777_v38 = vrot.slane %v2772_v8, 1 }
0x26a1   :  { %v2683_v62 = vpop.permute.xlu0 %2682  ;;  %v2676_v1 = vpop.permute.xlu1 %2675 }
0x26a2   :  { %v2685_v2 = vmul.f32 %v2683_v62, %v6691_v56  ;;  %v2684_v17 = vmul.f32 %v2676_v1, %v6694_v5 }
0x26a4   :  { %v2692_v24 = vrot.slane %v2685_v2, 4  ;;  %v2686_v4 = vrot.slane %v2684_v17, 4 }
0x26a6   :  { %v2693_v7 = vadd.f32 %v2692_v24, %v2685_v2  ;;  %v2687_v21 = vadd.f32 %v2686_v4, %v2684_v17 }
0x26a8   :  { %v2694_v22 = vrot.slane %v2693_v7, 2  ;;  %v2688_v28 = vrot.slane %v2687_v21, 2 }
0x26aa   :  { %v2695_v31 = vadd.f32 %v2694_v22, %v2693_v7  ;;  %v2689_v29 = vadd.f32 %v2688_v28, %v2687_v21 }
0x26ac   :  { %v2696_v32 = vrot.slane %v2695_v31, 1  ;;  %v2690_v37 = vrot.slane %v2689_v29, 1 }
0x26ae   :  { %v2697_v41 = vadd.f32 %v2696_v32, %v2695_v31  ;;  %v2691_v42 = vadd.f32 %v2690_v37, %v2689_v29 }
0x26b0   :  { %v2781_v43 = vadd.f32 %v2777_v38, %v2697_v41  ;;  %v2780_v45 = vadd.f32 %v2772_v8, %v2691_v42 }
0x26b2   :  { %5898 = vtanh.f32 %v2781_v43  ;;  %v5035_v48 = vmul.f32 -1.442695, %v2781_v43  ;;  %v5034_v50 = vmul.f32 -1.442695, %v2780_v45 }
0x26b3   :  { %5900 = vtanh.f32 %v2780_v45 }
0x26b4   :  { %5902 = vpow2.f32 %v5035_v48 }
0x26b5   :  { %5904 = vpow2.f32 %v5034_v50 }
0x26bc   :  { %v5899_v10 = vpop.eup %5898 }
0x26bd   :  { %v5901_v47 = vpop.eup %5900  ;;  %2802 = vrot.lane.b32.xlu1 %v5899_v10, %s6161_s20 }
0x26be   :  { %2800 = vrot.lane.b32.xlu0 %v5901_v47, %s6161_s20  ;;  %v5903_v53 = vpop.eup %5902 }
0x26bf   :  { %v5905_v54 = vpop.eup %5904  ;;  %v2789_v20 = vadd.f32 1.0, %v5903_v53 }
0x26c0   :  { %v2788_v59 = vadd.f32 1.0, %v5905_v54 }
0x26c1   :  { %5906 = vrcp.f32 %v2789_v20 }
0x26c2   :  { %5908 = vrcp.f32 %v2788_v59 }
0x26cb   :  { %v5907_v49 = vpop.eup %5906 }
0x26cc   :  { %v5909_v61 = vpop.eup %5908  ;;  %v2797_v17 = vmul.f32 %v5907_v49, %v6704_v12 }
0x26cd   :  { %v2796_v24 = vmul.f32 %v5909_v61, %v6706_v23 }
0x272f   :  { %v2803_v8 = vpop.permute.xlu1 %2802 }
0x2730   :  { %v2801_v62 = vpop.permute.xlu0 %2800  ;;  %v2807_v1 = vmul.f32 %v5907_v49, %v2803_v8 }
0x2731   :  { %v2806_v2 = vmul.f32 %v5909_v61, %v2801_v62 }
0x2732   :  { %2812 = vrot.lane.b32.xlu1 %v2807_v1, %s6162_s21 }
0x2733   :  { %2810 = vrot.lane.b32.xlu0 %v2806_v2, %s6162_s21 }
0x27a4   :  { %v2813_v4 = vpop.permute.xlu1 %2812 }
0x27a5   :  { %v2811_v7 = vpop.permute.xlu0 %2810  ;;  %v6807_v21 = vadd.f32 %v2813_v4, %v2797_v17 }
0x27a6   :  { %v6809_v22 = vadd.f32 %v2811_v7, %v2796_v24  ;;  %v7503_v7 = vmov 0 }
0x27a7   :  { %5910 = vtanh.f32 %v6807_v21  ;;  %v7504_v7 = vsel %vm6843_vm15, 4294967295, %v7503_v7 }
0x27a8   :  { %5912 = vtanh.f32 %v6809_v22  ;;  %7505 = vst [vmem:[#allocation12_spill] sm:$0xff] %v7504_v7 }
0x27b1   :  { %v5911_v28 = vpop.eup %5910 }
0x27b2   :  { %v5913_v31 = vpop.eup %5912  ;;  %2824 = vrot.lane.b32.xlu1 %v5911_v28, %s6161_s20 }
0x27b3   :  { %2822 = vrot.lane.b32.xlu0 %v5913_v31, %s6161_s20 }
0x2824   :  { %v2825_v29 = vpop.permute.xlu1 %2824 }
0x2825   :  { %v2823_v12 = vpop.permute.xlu0 %2822  ;;  %v2829_v32 = vmul.f32 %v5907_v49, %v2825_v29 }
0x2826   :  { %v2828_v23 = vmul.f32 %v5909_v61, %v2823_v12 }
0x2827   :  { %v2832_v37 = vrot.slane %v2829_v32, 7 }
0x2829   :  { %v2833_v38 = vsel %vm413_vm4, %v2832_v37, %v2828_v23 }
0x282a   :  { %2834 = vrot.lane.b32.xlu1 %v2833_v38, %s6162_s21 }
0x289c   :  { %v2835_v41 = vpop.permute.xlu1 %2834 }
0x289d   :  { %5409 = vmatmul.mubr.msk.f32.vlgmr.msra.gmra.mrb[18].mxu1 %vm269_vm5, %v2835_v41 }
0x289e   :  { %5640 = vmatpush3.bf16.msra.mxu1 %v6563_v44  ;;  %5430 = vmatprep.mubr.msk.f32.mxu1 %vm6159_vm2, %v7489_v13 }
0x289f   :  { %5641 = vmatprep.subr.bf16.mxu1 %v7487_v6 }
0x28a2   :  { %5643 = vmatpush3.bf16.msra.mxu1 %v6566_v46 }
0x28a3   :  { %5650 = vmatprep.subr.bf16.mxu1 %v7487_v6 }
0x2970   :  { %v2904_v42 = vpop.f32.mrb[18].mxu1 }
0x2971   :  { %v2915_v43 = vrot.slane %v2904_v42, %v6581_v55  ;;  %v5410_v45 = vpop.f32.mrb[19].mxu1 }
0x2973   :  { %v2916_v10 = vcombine.high %v2915_v43, %v2915_v43  ;;  %v2923_v47 = vrot.slane %v2915_v43, %v6581_v55 }
0x2975   :  { %v2930_v48 = vrot.slane %v2916_v10, %v6581_v55  ;;  %v2934_v50 = vrot.slane %v2923_v47, %v6335_v33  ;;  %v3043_v47 = vrot.slane %v2904_v42, 1 }
0x2977   :  { %v2938_v53 = vrot.slane %v2930_v48, %v6335_v33  ;;  %v2941_v54 = vadd.f32 %v2934_v50, %v6592_v51 }
0x2979   :  { %v2942_v20 = vadd.f32 %v2938_v53, %v6597_v63  ;;  %5914 = vtanh.f32 %v2941_v54 }
0x297b   :  { %5916 = vtanh.f32 %v2942_v20 }
0x2983   :  { %v5915_v59 = vpop.eup %5914 }
0x2984   :  { %v2945_v49 = vmul.f32 %v5915_v59, %v6605_v18 }
0x2985   :  { %v5917_v8 = vpop.eup %5916 }
0x2986   :  { %v2947_v61 = vsel %vm269_vm5, %v2945_v49, 0.0  ;;  %v2946_v62 = vmul.f32 %v5917_v8, %v6605_v18 }
0x2987   :  { %2948 = vadd.xlane.f32.xlu0 %v2947_v61 }
0x2988   :  { %v2950_v1 = vsel %vm269_vm5, %v2946_v62, 0.0 }
0x2989   :  { %2951 = vadd.xlane.f32.xlu1 %v2950_v1 }
0x2a14   :  { %v2949_v2 = vpop.xlane.xlu0 %2948 }
0x2a15   :  { %v2958_v24 = vrot.slane %v2949_v2, %v6616_v15 }
0x2a16   :  { %v2952_v17 = vpop.xlane.xlu1 %2951 }
0x2a17   :  { %v2962_v4 = vrot.slane %v2952_v17, %v6616_v15 }
0x2a19   :  { %v2963_v18 = vsel %vm413_vm4, %v2962_v4, %v2958_v24 }
0x2a1a   :  { %v2965_v28 = vsel %vm6843_vm15, %v2963_v18, -1e+30 }
0x2a1b   :  { %v2966_v31 = vsel %vm2073_vm14, %v2965_v28, -inf }
0x2a1c   :  { %2967 = vmax.xlane.f32.xlu0 %v2966_v31 }
0x2aa9   :  { %v2968_v57 = vpop.xlane.xlu0 %2967 }
0x2aaa   :  { %v6851_v29 = vsub.f32 %v2965_v28, %v2968_v57  ;;  %vm2981_vm0 = vcmp.ge.f32.partialorder %v2965_v28, %v2968_v57 }
0x2aab   :  { %v2982_v48 = vsel %vm2981_vm0, %v6612_v14, 8 }
0x2aac   :  { %v2970_v12 = vmul.f32 1.442695, %v6851_v29  ;;  %v2983_v50 = vsel %vm2073_vm14, %v2982_v48, 2147483647 }
0x2aad   :  { %v2985_v53 = vshra.s32 %v2983_v50, 16 }
0x2aae   :  { %5918 = vpow2.f32 %v2970_v12 }
0x2aaf   :  { %v2987_v54 = vcvt.s32.f32 %v2985_v53 }
0x2ab8   :  { %v5919_v32 = vpop.eup %5918 }
0x2ab9   :  { %v2972_v23 = vsel %vm6843_vm15, %v5919_v32, 0.0 }
0x2aba   :  { %v2973_v37 = vsel %vm2073_vm14, %v2972_v23, 0.0 }
0x2abb   :  { %2974 = vadd.xlane.f32.xlu0 %v2973_v37 }
0x2b48   :  { %v6857_v38 = vpop.xlane.xlu0 %2974 }
0x2b49   :  { %5920 = vrcp.f32 %v6857_v38 }
0x2b53   :  { %v5921_v41 = vpop.eup %5920 }
0x2b54   :  { %v6860_v43 = vmul.f32 %v5921_v41, %v2972_v23 }
0x2b56   :  { %v3023_v45 = vrot.slane %v6860_v43, %v6338_v34  ;;  %v3016_v10 = vrot.slane %v6860_v43, %v6335_v33 }
0x2b58   :  { %3025 = vbcast.lane.b32.xlu0 %v3023_v45, 256  ;;  %3018 = vbcast.lane.b32.xlu1 %v3016_v10, 256 }
0x2b5c   :  { %3046 = vrot.lane.b32.xlu1 %v3043_v47, %s6163_s22 }
0x2b60   :  { %3044 = vrot.lane.b32.xlu1 %v2904_v42, %s6163_s22 }
0x2b77   :  { %2988 = vmin.xlane.f32.xlu0 %v2987_v54 }
0x2bca   :  { %v3026_v20 = vpop.permute.xlu0 %3025  ;;  %v3019_v59 = vpop.permute.xlu1 %3018 }
0x2bcb   :  { %v3028_v49 = vmul.f32 %v6546_v16, %v3026_v20  ;;  %v3027_v8 = vmul.f32 %v3019_v59, %v6548_v19 }
0x2bcd   :  { %v3036_v61 = vsel %vm269_vm5, %v3028_v49, 0.0  ;;  %v3029_v62 = vsel %vm269_vm5, %v3027_v8, 0.0 }
0x2bce   :  { %v3037_v1 = vrot.slane %v3036_v61, 4  ;;  %v3030_v42 = vrot.slane %v3029_v62, 4  ;;  %v3047_v18 = vpop.permute.xlu1 %3046 }
0x2bd0   :  { %v3038_v2 = vadd.f32 %v3037_v1, %v3036_v61  ;;  %v3031_v17 = vadd.f32 %v3030_v42, %v3029_v62 }
0x2bd2   :  { %v3039_v24 = vrot.slane %v3038_v2, 2  ;;  %v3032_v4 = vrot.slane %v3031_v17, 2  ;;  %v3045_v37 = vpop.permute.xlu1 %3044 }
0x2bd4   :  { %v3040_v28 = vadd.f32 %v3039_v24, %v3038_v2  ;;  %v3033_v31 = vadd.f32 %v3032_v4, %v3031_v17 }
0x2bd6   :  { %v3041_v57 = vrot.slane %v3040_v28, 1  ;;  %v3034_v12 = vrot.slane %v3033_v31, 1 }
0x2bd8   :  { %v3042_v32 = vadd.f32 %v3041_v57, %v3040_v28  ;;  %v3035_v23 = vadd.f32 %v3034_v12, %v3033_v31 }
0x2bda   :  { %v3051_v41 = vadd.f32 %v3047_v18, %v3042_v32  ;;  %v3050_v45 = vadd.f32 %v3045_v37, %v3035_v23 }
0x2bdc   :  { %v3053_v10 = vadd.f32 %v6662_v39, %v3051_v41  ;;  %v3052_v47 = vadd.f32 %v6662_v39, %v3050_v45  ;;  %v2984_v39 = vand.u32 65535, %v2983_v50 }
0x2bde   :  { %5922 = vtanh.f32 %v3053_v10  ;;  %v2986_v8 = vcvt.s32.f32 %v2984_v39 }
0x2bdf   :  { %5924 = vtanh.f32 %v3052_v47 }
0x2be8   :  { %v5923_v48 = vpop.eup %5922 }
0x2be9   :  { %v3090_v53 = vrot.slane %v5923_v48, 7  ;;  %v5925_v20 = vpop.eup %5924 }
0x2beb   :  { %v3091_v59 = vsel %vm413_vm4, %v3090_v53, %v5925_v20 }
0x2bec   :  { %5420 = vmatmul.mubr.msk.f32.vlgmr.msra.gmra.mrb[20].mxu0 %vm269_vm5, %v3091_v59 }
0x2bed   :  { %5646 = vmatpush3.bf16.msra.mxu0 %v6499_v0  ;;  %5441 = vmatprep.mubr.msk.f32.mxu0 %vm6159_vm2, %v7489_v13 }
0x2bee   :  { %5647 = vmatprep.subr.bf16.mxu0 %v7487_v6 }
0x2bf1   :  { %5649 = vmatpush3.bf16.msra.mxu0 %v6505_v26 }
0x2bf2   :  { %5656 = vmatprep.subr.bf16.mxu0 %v7487_v6 }
0x2c04   :  { %v2989_v49 = vpop.xlane.xlu0 %2988 }
0x2c05   :  { %vm2990_vm1 = vcmp.eq.f32.partialorder %v2987_v54, %v2989_v49  ;;  %v2995_v62 = vcvt.f32.s32 %v2989_v49 }
0x2c06   :  { %v2991_v61 = vsel %vm2990_vm1, %v2986_v8, inf }
0x2c07   :  { %2992 = vmin.xlane.f32.xlu1 %v2991_v61  ;;  %v2996_v42 = vshll.u32 %v2995_v62, 16 }
0x2c94   :  { %v2993_v1 = vpop.xlane.xlu1 %2992 }
0x2c95   :  { %v2994_v2 = vcvt.f32.s32 %v2993_v1 }
0x2c97   :  { %v6885_v17 = vadd.s32 %v2996_v42, %v2994_v2 }
0x2c99   :  { %vm2998_vm8 = vcmp.eq.s32.totalorder %v6612_v14, %v6885_v17  ;;  %v6891_v24 = vsel %vm3056_vm3, %v6885_v17, %v6787_v9 }
0x2c9a   :  { %v6897_v50 = vsel %vm2998_vm8, 1.0, %v7489_v13  ;;  %vm3086_vm9 = vmxor %vm2998_vm8, %vm6166_vm6 }
0x2c9b   :  { %v3068_v54 = vrot.slane %v6897_v50, %v6338_v34  ;;  %v3061_v4 = vrot.slane %v6897_v50, %v6335_v33  ;;  %vm6952_vm10 = vmand %vm6843_vm15, %vm3086_vm9 }
0x2c9d   :  { %3070 = vbcast.lane.b32.xlu0 %v3068_v54, 256  ;;  %3063 = vbcast.lane.b32.xlu1 %v3061_v4, 256 }
0x2cbf   :  { %v3160_v18 = vpop.f32.mrb[20].mxu0 }
0x2cc0   :  { %v5421_v28 = vpop.f32.mrb[21].mxu0  ;;  %v3165_v59 = vrot.slane %v3160_v18, 1 }
0x2d0f   :  { %v3071_v31 = vpop.permute.xlu0 %3070  ;;  %v3064_v57 = vpop.permute.xlu1 %3063 }
0x2d10   :  { %v3073_v9 = vmul.f32 %v3071_v31, %v6691_v56  ;;  %v3072_v12 = vmul.f32 %v3064_v57, %v6694_v5 }
0x2d12   :  { %v3080_v32 = vrot.slane %v3073_v9, 4  ;;  %v3074_v23 = vrot.slane %v3072_v12, 4 }
0x2d14   :  { %v3081_v37 = vadd.f32 %v3080_v32, %v3073_v9  ;;  %v3075_v41 = vadd.f32 %v3074_v23, %v3072_v12 }
0x2d16   :  { %v3082_v45 = vrot.slane %v3081_v37, 2  ;;  %v3076_v10 = vrot.slane %v3075_v41, 2 }
0x2d18   :  { %v3083_v47 = vadd.f32 %v3082_v45, %v3081_v37  ;;  %v3077_v48 = vadd.f32 %v3076_v10, %v3075_v41 }
0x2d1a   :  { %v3084_v53 = vrot.slane %v3083_v47, 1  ;;  %v3078_v20 = vrot.slane %v3077_v48, 1 }
0x2d1c   :  { %v3085_v39 = vadd.f32 %v3084_v53, %v3083_v47  ;;  %v3079_v49 = vadd.f32 %v3078_v20, %v3077_v48 }
0x2d1e   :  { %v3169_v8 = vadd.f32 %v3165_v59, %v3085_v39  ;;  %v3168_v61 = vadd.f32 %v3160_v18, %v3079_v49 }
0x2d20   :  { %5926 = vtanh.f32 %v3169_v8  ;;  %v5040_v42 = vmul.f32 -1.442695, %v3169_v8  ;;  %v5039_v2 = vmul.f32 -1.442695, %v3168_v61 }
0x2d21   :  { %5928 = vtanh.f32 %v3168_v61 }
0x2d22   :  { %5930 = vpow2.f32 %v5040_v42 }
0x2d23   :  { %5932 = vpow2.f32 %v5039_v2 }
0x2d2a   :  { %v5927_v62 = vpop.eup %5926 }
0x2d2b   :  { %v5929_v1 = vpop.eup %5928  ;;  %3190 = vrot.lane.b32.xlu0 %v5927_v62, %s6161_s20 }
0x2d2c   :  { %3188 = vrot.lane.b32.xlu1 %v5929_v1, %s6161_s20  ;;  %v5931_v54 = vpop.eup %5930 }
0x2d2d   :  { %v5933_v4 = vpop.eup %5932  ;;  %v3177_v28 = vadd.f32 1.0, %v5931_v54 }
0x2d2e   :  { %v3176_v31 = vadd.f32 1.0, %v5933_v4 }
0x2d2f   :  { %5934 = vrcp.f32 %v3177_v28 }
0x2d30   :  { %5936 = vrcp.f32 %v3176_v31 }
0x2d39   :  { %v5935_v57 = vpop.eup %5934 }
0x2d3a   :  { %v5937_v9 = vpop.eup %5936  ;;  %v3185_v37 = vmul.f32 %v5935_v57, %v6807_v21 }
0x2d3b   :  { %v3184_v41 = vmul.f32 %v5937_v9, %v6809_v22 }
0x2d9d   :  { %v3191_v18 = vpop.permute.xlu0 %3190 }
0x2d9e   :  { %v3189_v12 = vpop.permute.xlu1 %3188  ;;  %v3195_v32 = vmul.f32 %v5935_v57, %v3191_v18 }
0x2d9f   :  { %v3194_v23 = vmul.f32 %v5937_v9, %v3189_v12  ;;  %v6938_v12 = vld [vmem:[%s7482_s5 + $0x3] ss:$0 sm:$0xff] }
0x2da0   :  { %3200 = vrot.lane.b32.xlu0 %v3195_v32, %s6162_s21 }
0x2da1   :  { %3198 = vrot.lane.b32.xlu1 %v3194_v23, %s6162_s21 }
0x2e12   :  { %v3201_v45 = vpop.permute.xlu0 %3200 }
0x2e13   :  { %v3199_v10 = vpop.permute.xlu1 %3198  ;;  %v6911_v47 = vadd.f32 %v3201_v45, %v3185_v37 }
0x2e14   :  { %v6913_v48 = vadd.f32 %v3199_v10, %v3184_v41 }
0x2e15   :  { %5938 = vtanh.f32 %v6911_v47 }
0x2e16   :  { %5940 = vtanh.f32 %v6913_v48 }
0x2e1f   :  { %v5939_v53 = vpop.eup %5938 }
0x2e20   :  { %v5941_v20 = vpop.eup %5940  ;;  %3212 = vrot.lane.b32.xlu0 %v5939_v53, %s6161_s20 }
0x2e21   :  { %3210 = vrot.lane.b32.xlu1 %v5941_v20, %s6161_s20 }
0x2e92   :  { %v3213_v59 = vpop.permute.xlu0 %3212 }
0x2e93   :  { %v3211_v21 = vpop.permute.xlu1 %3210  ;;  %v3217_v39 = vmul.f32 %v5935_v57, %v3213_v59 }
0x2e94   :  { %v3216_v22 = vmul.f32 %v5937_v9, %v3211_v21  ;;  %v7506_v21 = vmov 0 }
0x2e95   :  { %v3220_v49 = vrot.slane %v3217_v39, 7  ;;  %v7507_v21 = vsel %vm6952_vm10, 4294967295, %v7506_v21 }
0x2e96   :  { %7508 = vst [vmem:[#allocation13_spill] sm:$0xff] %v7507_v21 }
0x2e97   :  { %v3221_v8 = vsel %vm413_vm4, %v3220_v49, %v3216_v22 }
0x2e98   :  { %3222 = vrot.lane.b32.xlu0 %v3221_v8, %s6162_s21 }
0x2f0a   :  { %v3223_v61 = vpop.permute.xlu0 %3222 }
0x2f0b   :  { %5431 = vmatmul.mubr.msk.f32.vlgmr.msra.gmra.mrb[20].mxu1 %vm269_vm5, %v3223_v61 }
0x2f0c   :  { %5652 = vmatpush3.bf16.msra.mxu1 %v6563_v44  ;;  %5452 = vmatprep.mubr.msk.f32.mxu1 %vm6159_vm2, %v7489_v13 }
0x2f0d   :  { %5653 = vmatprep.subr.bf16.mxu1 %v7487_v6 }
0x2f10   :  { %5655 = vmatpush3.bf16.msra.mxu1 %v6566_v46 }
0x2f11   :  { %5662 = vmatprep.subr.bf16.mxu1 %v7487_v6 }
0x2fde   :  { %v3292_v62 = vpop.f32.mrb[20].mxu1 }
0x2fdf   :  { %v3303_v1 = vrot.slane %v3292_v62, %v6581_v55  ;;  %v5432_v42 = vpop.f32.mrb[21].mxu1 }
0x2fe1   :  { %v3304_v2 = vcombine.high %v3303_v1, %v3303_v1  ;;  %v3311_v54 = vrot.slane %v3303_v1, %v6581_v55 }
0x2fe3   :  { %v3318_v4 = vrot.slane %v3304_v2, %v6581_v55  ;;  %v3322_v28 = vrot.slane %v3311_v54, %v6335_v33 }
0x2fe5   :  { %v3326_v31 = vrot.slane %v3318_v4, %v6335_v33  ;;  %v3329_v57 = vadd.f32 %v3322_v28, %v6592_v51 }
0x2fe7   :  { %v3330_v18 = vadd.f32 %v3326_v31, %v6597_v63  ;;  %5942 = vtanh.f32 %v3329_v57 }
0x2fe9   :  { %5944 = vtanh.f32 %v3330_v18  ;;  %v3431_v18 = vrot.slane %v3292_v62, 1 }
0x2ff1   :  { %v5943_v9 = vpop.eup %5942 }
0x2ff2   :  { %v3333_v32 = vmul.f32 %v6938_v12, %v5943_v9 }
0x2ff3   :  { %v5945_v23 = vpop.eup %5944 }
0x2ff4   :  { %v3335_v37 = vsel %vm269_vm5, %v3333_v32, 0.0  ;;  %v3334_v41 = vmul.f32 %v6938_v12, %v5945_v23 }
0x2ff5   :  { %3336 = vadd.xlane.f32.xlu1 %v3335_v37 }
0x2ff6   :  { %v3338_v45 = vsel %vm269_vm5, %v3334_v41, 0.0 }
0x2ff7   :  { %3339 = vadd.xlane.f32.xlu0 %v3338_v45 }
0x3082   :  { %v3337_v10 = vpop.xlane.xlu1 %3336 }
0x3083   :  { %v3346_v20 = vrot.slane %v3337_v10, %v6616_v15 }
0x3084   :  { %v3340_v53 = vpop.xlane.xlu0 %3339 }
0x3085   :  { %v3350_v59 = vrot.slane %v3340_v53, %v6616_v15 }
0x3087   :  { %v3351_v39 = vsel %vm413_vm4, %v3350_v59, %v3346_v20 }
0x3088   :  { %v3353_v22 = vsel %vm6952_vm10, %v3351_v39, -1e+30 }
0x3089   :  { %v3354_v49 = vsel %vm2073_vm14, %v3353_v22, -inf }
0x308a   :  { %3355 = vmax.xlane.f32.xlu0 %v3354_v49 }
0x3117   :  { %v3356_v17 = vpop.xlane.xlu0 %3355 }
0x3118   :  { %v6960_v8 = vsub.f32 %v3353_v22, %v3356_v17  ;;  %vm3369_vm11 = vcmp.ge.f32.partialorder %v3353_v22, %v3356_v17 }
0x3119   :  { %v3370_v9 = vsel %vm3369_vm11, %v6612_v14, 8  ;;  %vm3832_vm11 = vcmp.eq.s32.totalorder %v6612_v14, 4 }
0x311a   :  { %v3358_v61 = vmul.f32 1.442695, %v6960_v8  ;;  %v3371_v32 = vsel %vm2073_vm14, %v3370_v9, 2147483647 }
0x311b   :  { %v3373_v23 = vshra.s32 %v3371_v32, 16 }
0x311c   :  { %5946 = vpow2.f32 %v3358_v61 }
0x311d   :  { %v3375_v37 = vcvt.s32.f32 %v3373_v23 }
0x3126   :  { %v5947_v1 = vpop.eup %5946 }
0x3127   :  { %v3360_v42 = vsel %vm6952_vm10, %v5947_v1, 0.0 }
0x3128   :  { %v3361_v2 = vsel %vm2073_vm14, %v3360_v42, 0.0 }
0x3129   :  { %3362 = vadd.xlane.f32.xlu0 %v3361_v2 }
0x31b6   :  { %v6966_v54 = vpop.xlane.xlu0 %3362 }
0x31b7   :  { %5948 = vrcp.f32 %v6966_v54 }
0x31c1   :  { %v5949_v4 = vpop.eup %5948 }
0x31c2   :  { %v6969_v28 = vmul.f32 %v5949_v4, %v3360_v42 }
0x31c4   :  { %7509 = vst [vmem:[#allocation14_spill] sm:$0xff] %v6969_v28  ;;  %v3411_v31 = vrot.slane %v6969_v28, %v6338_v34  ;;  %v3404_v57 = vrot.slane %v6969_v28, %v6335_v33 }
0x31c6   :  { %3413 = vbcast.lane.b32.xlu1 %v3411_v31, 256  ;;  %3406 = vbcast.lane.b32.xlu0 %v3404_v57, 256 }
0x31ca   :  { %3434 = vrot.lane.b32.xlu1 %v3431_v18, %s6163_s22 }
0x31ce   :  { %3432 = vrot.lane.b32.xlu1 %v3292_v62, %s6163_s22 }
0x31f2   :  { %3376 = vmin.xlane.f32.xlu1 %v3375_v37 }
0x3238   :  { %v3414_v41 = vpop.permute.xlu1 %3413  ;;  %v3407_v45 = vpop.permute.xlu0 %3406 }
0x3239   :  { %v3416_v10 = vmul.f32 %v6546_v16, %v3414_v41  ;;  %v3415_v53 = vmul.f32 %v3407_v45, %v6548_v19  ;;  %v6986_v45 = vld [vmem:[%s7482_s5] ss:$0 sm:$0xff] }
0x323b   :  { %v3424_v20 = vsel %vm269_vm5, %v3416_v10, 0.0  ;;  %v3417_v59 = vsel %vm269_vm5, %v3415_v53, 0.0 }
0x323c   :  { %v3425_v39 = vrot.slane %v3424_v20, 4  ;;  %v3418_v62 = vrot.slane %v3417_v59, 4  ;;  %v3435_v1 = vpop.permute.xlu1 %3434 }
0x323e   :  { %v3426_v22 = vadd.f32 %v3425_v39, %v3424_v20  ;;  %v3419_v49 = vadd.f32 %v3418_v62, %v3417_v59 }
0x3240   :  { %v3427_v17 = vrot.slane %v3426_v22, 2  ;;  %v3420_v61 = vrot.slane %v3419_v49, 2  ;;  %v3433_v9 = vpop.permute.xlu1 %3432 }
0x3242   :  { %v3428_v42 = vadd.f32 %v3427_v17, %v3426_v22  ;;  %v3421_v2 = vadd.f32 %v3420_v61, %v3419_v49  ;;  %v3372_v22 = vand.u32 65535, %v3371_v32 }
0x3244   :  { %v3429_v4 = vrot.slane %v3428_v42, 1  ;;  %v3422_v31 = vrot.slane %v3421_v2, 1  ;;  %v3374_v17 = vcvt.s32.f32 %v3372_v22 }
0x3246   :  { %v3430_v57 = vadd.f32 %v3429_v4, %v3428_v42  ;;  %v3423_v18 = vadd.f32 %v3422_v31, %v3421_v2 }
0x3248   :  { %v3439_v23 = vadd.f32 %v3435_v1, %v3430_v57  ;;  %v3438_v41 = vadd.f32 %v3433_v9, %v3423_v18 }
0x324a   :  { %v3441_v10 = vadd.f32 %v6986_v45, %v3439_v23  ;;  %v3440_v53 = vadd.f32 %v6986_v45, %v3438_v41 }
0x324c   :  { %5950 = vtanh.f32 %v3441_v10 }
0x324d   :  { %5952 = vtanh.f32 %v3440_v53 }
0x3256   :  { %v5951_v20 = vpop.eup %5950 }
0x3257   :  { %v3478_v59 = vrot.slane %v5951_v20, 7  ;;  %v5953_v39 = vpop.eup %5952 }
0x3259   :  { %v3479_v62 = vsel %vm413_vm4, %v3478_v59, %v5953_v39 }
0x325a   :  { %5442 = vmatmul.mubr.msk.f32.vlgmr.msra.gmra.mrb[22].mxu0 %vm269_vm5, %v3479_v62 }
0x325b   :  { %5658 = vmatpush3.bf16.msra.mxu0 %v6499_v0  ;;  %5463 = vmatprep.mubr.msk.f32.mxu0 %vm6159_vm2, %v7489_v13 }
0x325c   :  { %5659 = vmatprep.subr.bf16.mxu0 %v7487_v6 }
0x325f   :  { %5661 = vmatpush3.bf16.msra.mxu0 %v6505_v26 }
0x3260   :  { %5668 = vmatprep.subr.bf16.mxu0 %v7487_v6 }
0x327f   :  { %v3377_v49 = vpop.xlane.xlu1 %3376 }
0x3280   :  { %vm3378_vm12 = vcmp.eq.f32.partialorder %v3375_v37, %v3377_v49  ;;  %v3383_v1 = vcvt.f32.s32 %v3377_v49 }
0x3281   :  { %v3379_v61 = vsel %vm3378_vm12, %v3374_v17, inf }
0x3282   :  { %3380 = vmin.xlane.f32.xlu0 %v3379_v61  ;;  %v3384_v2 = vshll.u32 %v3383_v1, 16 }
0x330f   :  { %v3381_v42 = vpop.xlane.xlu0 %3380 }
0x3310   :  { %v3382_v4 = vcvt.f32.s32 %v3381_v42 }
0x3312   :  { %v6999_v31 = vadd.s32 %v3384_v2, %v3382_v4 }
0x3314   :  { %vm3386_vm0 = vcmp.eq.s32.totalorder %v6612_v14, %v6999_v31  ;;  %v7005_v57 = vsel %vm3444_vm13, %v6999_v31, %v6891_v24 }
0x3315   :  { %v7011_v32 = vsel %vm3386_vm0, 1.0, %v7489_v13  ;;  %vm3474_vm1 = vmxor %vm3386_vm0, %vm6166_vm6 }
0x3316   :  { %v3456_v37 = vrot.slane %v7011_v32, %v6338_v34  ;;  %v3449_v18 = vrot.slane %v7011_v32, %v6335_v33  ;;  %vm7061_vm3 = vmand %vm6952_vm10, %vm3474_vm1 }
0x3318   :  { %3458 = vbcast.lane.b32.xlu0 %v3456_v37, 256  ;;  %3451 = vbcast.lane.b32.xlu1 %v3449_v18, 256 }
0x332d   :  { %v3548_v9 = vpop.f32.mrb[22].mxu0 }
0x332e   :  { %v5443_v23 = vpop.f32.mrb[23].mxu0  ;;  %v3553_v2 = vrot.slane %v3548_v9, 1 }
0x338a   :  { %v3459_v41 = vpop.permute.xlu0 %3458  ;;  %v3452_v10 = vpop.permute.xlu1 %3451 }
0x338b   :  { %v3461_v24 = vmul.f32 %v3459_v41, %v6691_v56  ;;  %v3460_v53 = vmul.f32 %v3452_v10, %v6694_v5 }
0x338d   :  { %v3468_v20 = vrot.slane %v3461_v24, 4  ;;  %v3462_v59 = vrot.slane %v3460_v53, 4 }
0x338f   :  { %v3469_v39 = vadd.f32 %v3468_v20, %v3461_v24  ;;  %v3463_v62 = vadd.f32 %v3462_v59, %v3460_v53 }
0x3391   :  { %v3470_v22 = vrot.slane %v3469_v39, 2  ;;  %v3464_v49 = vrot.slane %v3463_v62, 2 }
0x3393   :  { %v3471_v17 = vadd.f32 %v3470_v22, %v3469_v39  ;;  %v3465_v61 = vadd.f32 %v3464_v49, %v3463_v62 }
0x3395   :  { %v3472_v1 = vrot.slane %v3471_v17, 1  ;;  %v3466_v42 = vrot.slane %v3465_v61, 1 }
0x3397   :  { %v3473_v4 = vadd.f32 %v3472_v1, %v3471_v17  ;;  %v3467_v37 = vadd.f32 %v3466_v42, %v3465_v61 }
0x3399   :  { %v3557_v18 = vadd.f32 %v3553_v2, %v3473_v4  ;;  %v3556_v23 = vadd.f32 %v3548_v9, %v3467_v37 }
0x339b   :  { %5954 = vtanh.f32 %v3557_v18  ;;  %v5045_v10 = vmul.f32 -1.442695, %v3557_v18  ;;  %v5044_v24 = vmul.f32 -1.442695, %v3556_v23 }
0x339c   :  { %5956 = vtanh.f32 %v3556_v23 }
0x339d   :  { %5958 = vpow2.f32 %v5045_v10 }
0x339e   :  { %5960 = vpow2.f32 %v5044_v24 }
0x33a5   :  { %v5955_v41 = vpop.eup %5954 }
0x33a6   :  { %v5957_v6 = vpop.eup %5956  ;;  %3578 = vrot.lane.b32.xlu1 %v5955_v41, %s6161_s20 }
0x33a7   :  { %3576 = vrot.lane.b32.xlu0 %v5957_v6, %s6161_s20  ;;  %v5959_v53 = vpop.eup %5958 }
0x33a8   :  { %v5961_v20 = vpop.eup %5960  ;;  %v3565_v59 = vadd.f32 1.0, %v5959_v53 }
0x33a9   :  { %v3564_v39 = vadd.f32 1.0, %v5961_v20 }
0x33aa   :  { %5962 = vrcp.f32 %v3565_v59  ;;  %v7510_v59 = vmov 0.0|0.0  }
0x33ab   :  { %5964 = vrcp.f32 %v3564_v39 }
0x33b4   :  { %v5963_v62 = vpop.eup %5962 }
0x33b5   :  { %v5965_v22 = vpop.eup %5964  ;;  %v3573_v6 = vmul.f32 %v5963_v62, %v6911_v47 }
0x33b6   :  { %v3572_v1 = vmul.f32 %v5965_v22, %v6913_v48 }
0x3418   :  { %v3579_v9 = vpop.permute.xlu1 %3578 }
0x3419   :  { %v3577_v49 = vpop.permute.xlu0 %3576  ;;  %v3583_v17 = vmul.f32 %v5963_v62, %v3579_v9 }
0x341a   :  { %v3582_v61 = vmul.f32 %v5965_v22, %v3577_v49 }
0x341b   :  { %3588 = vrot.lane.b32.xlu1 %v3583_v17, %s6162_s21 }
0x341c   :  { %3586 = vrot.lane.b32.xlu0 %v3582_v61, %s6162_s21 }
0x348d   :  { %v3589_v42 = vpop.permute.xlu1 %3588 }
0x348e   :  { %v3587_v2 = vpop.permute.xlu0 %3586  ;;  %v7025_v4 = vadd.f32 %v3589_v42, %v3573_v6 }
0x348f   :  { %v7027_v37 = vadd.f32 %v3587_v2, %v3572_v1 }
0x3490   :  { %5966 = vtanh.f32 %v7025_v4 }
0x3491   :  { %5968 = vtanh.f32 %v7027_v37 }
0x349a   :  { %v5967_v18 = vpop.eup %5966 }
0x349b   :  { %v5969_v23 = vpop.eup %5968  ;;  %3600 = vrot.lane.b32.xlu1 %v5967_v18, %s6161_s20 }
0x349c   :  { %3598 = vrot.lane.b32.xlu0 %v5969_v23, %s6161_s20 }
0x350d   :  { %v3601_v41 = vpop.permute.xlu1 %3600 }
0x350e   :  { %v3599_v47 = vpop.permute.xlu0 %3598  ;;  %v3605_v10 = vmul.f32 %v5963_v62, %v3601_v41 }
0x350f   :  { %v3604_v48 = vmul.f32 %v5965_v22, %v3599_v47 }
0x3510   :  { %v3608_v24 = vrot.slane %v3605_v10, 7 }
0x3512   :  { %v3609_v53 = vsel %vm413_vm4, %v3608_v24, %v3604_v48 }
0x3513   :  { %3610 = vrot.lane.b32.xlu1 %v3609_v53, %s6162_s21 }
0x3585   :  { %v3611_v20 = vpop.permute.xlu1 %3610 }
0x3586   :  { %5453 = vmatmul.mubr.msk.f32.vlgmr.msra.gmra.mrb[22].mxu1 %vm269_vm5, %v3611_v20 }
0x3587   :  { %5664 = vmatpush3.bf16.msra.mxu1 %v6563_v44  ;;  %5474 = vmatprep.mubr.msk.f32.mxu1 %vm6159_vm2, %v7489_v13 }
0x3588   :  { %5665 = vmatprep.subr.bf16.mxu1 %v7510_v59 }
0x358b   :  { %5667 = vmatpush3.bf16.msra.mxu1 %v6566_v46 }
0x358c   :  { %5674 = vmatprep.subr.bf16.mxu1 %v7510_v59 }
0x3659   :  { %v3680_v39 = vpop.f32.mrb[22].mxu1 }
0x365a   :  { %v3691_v62 = vrot.slane %v3680_v39, %v6581_v55  ;;  %v5454_v9 = vpop.f32.mrb[23].mxu1 }
0x365c   :  { %v3692_v22 = vcombine.high %v3691_v62, %v3691_v62  ;;  %v3699_v49 = vrot.slane %v3691_v62, %v6581_v55  ;;  %v7511_v62 = vmov 0 }
0x365d   :  { %v7512_v62 = vsel %vm7061_vm3, 4294967295, %v7511_v62 }
0x365e   :  { %v3706_v17 = vrot.slane %v3692_v22, %v6581_v55  ;;  %v3710_v61 = vrot.slane %v3699_v49, %v6335_v33  ;;  %7513 = vst [vmem:[#allocation15_spill] sm:$0xff] %v7512_v62 }
0x3660   :  { %v3714_v6 = vrot.slane %v3706_v17, %v6335_v33  ;;  %v3717_v1 = vadd.f32 %v3710_v61, %v6592_v51 }
0x3662   :  { %v3718_v42 = vadd.f32 %v3714_v6, %v6597_v63  ;;  %5970 = vtanh.f32 %v3717_v1 }
0x3664   :  { %5972 = vtanh.f32 %v3718_v42 }
0x366c   :  { %v5971_v2 = vpop.eup %5970 }
0x366d   :  { %v3721_v18 = vmul.f32 %v6938_v12, %v5971_v2 }
0x366e   :  { %v5973_v23 = vpop.eup %5972 }
0x366f   :  { %v3723_v41 = vsel %vm269_vm5, %v3721_v18, 0.0  ;;  %v3722_v47 = vmul.f32 %v6938_v12, %v5973_v23 }
0x3670   :  { %3724 = vadd.xlane.f32.xlu0 %v3723_v41 }
0x3671   :  { %v3726_v10 = vsel %vm269_vm5, %v3722_v47, 0.0 }
0x3672   :  { %3727 = vadd.xlane.f32.xlu1 %v3726_v10  ;;  %v3819_v10 = vrot.slane %v3680_v39, 1 }
0x36fd   :  { %v3725_v48 = vpop.xlane.xlu0 %3724 }
0x36fe   :  { %v3734_v53 = vrot.slane %v3725_v48, %v6616_v15 }
0x36ff   :  { %v3728_v24 = vpop.xlane.xlu1 %3727 }
0x3700   :  { %v3738_v20 = vrot.slane %v3728_v24, %v6616_v15 }
0x3702   :  { %v3739_v9 = vsel %vm413_vm4, %v3738_v20, %v3734_v53 }
0x3703   :  { %v3741_v22 = vsel %vm7061_vm3, %v3739_v9, -1e+30 }
0x3704   :  { %v3742_v49 = vsel %vm2073_vm14, %v3741_v22, -inf }
0x3705   :  { %3743 = vmax.xlane.f32.xlu0 %v3742_v49 }
0x3792   :  { %v3744_v31 = vpop.xlane.xlu0 %3743 }
0x3793   :  { %v7069_v17 = vsub.f32 %v3741_v22, %v3744_v31  ;;  %vm3757_vm8 = vcmp.ge.f32.partialorder %v3741_v22, %v3744_v31 }
0x3794   :  { %v3758_v48 = vsel %vm3757_vm8, %v6612_v14, 8 }
0x3795   :  { %v3746_v61 = vmul.f32 1.442695, %v7069_v17  ;;  %v3759_v24 = vsel %vm2073_vm14, %v3758_v48, 2147483647 }
0x3796   :  { %v3761_v53 = vshra.s32 %v3759_v24, 16 }
0x3797   :  { %5974 = vpow2.f32 %v3746_v61 }
0x3798   :  { %v3763_v20 = vcvt.s32.f32 %v3761_v53 }
0x37a1   :  { %v5975_v6 = vpop.eup %5974 }
0x37a2   :  { %v3748_v1 = vsel %vm7061_vm3, %v5975_v6, 0.0 }
0x37a3   :  { %v3749_v42 = vsel %vm2073_vm14, %v3748_v1, 0.0 }
0x37a4   :  { %3750 = vadd.xlane.f32.xlu0 %v3749_v42 }
0x3831   :  { %v7075_v2 = vpop.xlane.xlu0 %3750 }
0x3832   :  { %5976 = vrcp.f32 %v7075_v2 }
0x383c   :  { %v5977_v18 = vpop.eup %5976 }
0x383d   :  { %v7078_v23 = vmul.f32 %v5977_v18, %v3748_v1 }
0x383f   :  { %7514 = vst [vmem:[#allocation16_spill] sm:$0xff] %v7078_v23  ;;  %v3799_v41 = vrot.slane %v7078_v23, %v6338_v34  ;;  %v3792_v47 = vrot.slane %v7078_v23, %v6335_v33 }
0x3841   :  { %3801 = vbcast.lane.b32.xlu0 %v3799_v41, 256  ;;  %3794 = vbcast.lane.b32.xlu1 %v3792_v47, 256 }
0x3845   :  { %3822 = vrot.lane.b32.xlu1 %v3819_v10, %s6163_s22 }
0x3849   :  { %3820 = vrot.lane.b32.xlu1 %v3680_v39, %s6163_s22 }
0x3860   :  { %3764 = vmin.xlane.f32.xlu0 %v3763_v20 }
0x38b3   :  { %v3802_v9 = vpop.permute.xlu0 %3801  ;;  %v3795_v49 = vpop.permute.xlu1 %3794 }
0x38b4   :  { %v3804_v61 = vmul.f32 %v6546_v16, %v3802_v9  ;;  %v3803_v6 = vmul.f32 %v3795_v49, %v6548_v19 }
0x38b6   :  { %v3812_v1 = vsel %vm269_vm5, %v3804_v61, 0.0  ;;  %v3805_v42 = vsel %vm269_vm5, %v3803_v6, 0.0 }
0x38b7   :  { %v3813_v18 = vrot.slane %v3812_v1, 4  ;;  %v3806_v39 = vrot.slane %v3805_v42, 4  ;;  %v3823_v10 = vpop.permute.xlu1 %3822 }
0x38b9   :  { %v3814_v22 = vadd.f32 %v3813_v18, %v3812_v1  ;;  %v3807_v31 = vadd.f32 %v3806_v39, %v3805_v42 }
0x38bb   :  { %v3815_v41 = vrot.slane %v3814_v22, 2  ;;  %v3808_v47 = vrot.slane %v3807_v31, 2  ;;  %v3821_v9 = vpop.permute.xlu1 %3820 }
0x38bd   :  { %v3816_v48 = vadd.f32 %v3815_v41, %v3814_v22  ;;  %v3809_v53 = vadd.f32 %v3808_v47, %v3807_v31 }
0x38bf   :  { %v3817_v13 = vrot.slane %v3816_v48, 1  ;;  %v3810_v21 = vrot.slane %v3809_v53, 1 }
0x38c1   :  { %v3818_v7 = vadd.f32 %v3817_v13, %v3816_v48  ;;  %v3811_v23 = vadd.f32 %v3810_v21, %v3809_v53  ;;  %v7515_v13 = vmov 0.0  }
0x38c3   :  { %v3827_v28 = vadd.f32 %v3823_v10, %v3818_v7  ;;  %v3826_v49 = vadd.f32 %v3821_v9, %v3811_v23  ;;  %v3760_v7 = vand.u32 65535, %v3759_v24 }
0x38c5   :  { %v3829_v61 = vadd.f32 %v6986_v45, %v3827_v28  ;;  %v3828_v6 = vadd.f32 %v6986_v45, %v3826_v49  ;;  %v3762_v28 = vcvt.s32.f32 %v3760_v7 }
0x38c7   :  { %5978 = vtanh.f32 %v3829_v61 }
0x38c8   :  { %5980 = vtanh.f32 %v3828_v6 }
0x38d1   :  { %v5979_v1 = vpop.eup %5978 }
0x38d2   :  { %v3866_v42 = vrot.slane %v5979_v1, 7  ;;  %v5981_v18 = vpop.eup %5980 }
0x38d4   :  { %v3867_v39 = vsel %vm413_vm4, %v3866_v42, %v5981_v18 }
0x38d5   :  { %5464 = vmatmul.mubr.msk.f32.vlgmr.msra.gmra.mrb[24].mxu0 %vm269_vm5, %v3867_v39 }
0x38d6   :  { %5670 = vmatpush3.bf16.msra.mxu0 %v6499_v0  ;;  %5485 = vmatprep.mubr.msk.f32.mxu0 %vm6159_vm2, %v7515_v13 }
0x38d7   :  { %5671 = vmatprep.subr.bf16.mxu0 %v7510_v59 }
0x38da   :  { %5673 = vmatpush3.bf16.msra.mxu0 %v6505_v26 }
0x38db   :  { %5680 = vmatprep.subr.bf16.mxu0 %v7510_v59 }
0x38ed   :  { %v3765_v21 = vpop.xlane.xlu0 %3764 }
0x38ee   :  { %vm3766_vm9 = vcmp.eq.f32.partialorder %v3763_v20, %v3765_v21  ;;  %v3771_v22 = vcvt.f32.s32 %v3765_v21 }
0x38ef   :  { %v3767_v23 = vsel %vm3766_vm9, %v3762_v28, inf  ;;  %vm4220_vm9 = vcmp.eq.s32.totalorder %v6612_v14, 5 }
0x38f0   :  { %3768 = vmin.xlane.f32.xlu1 %v3767_v23  ;;  %v3772_v41 = vshll.u32 %v3771_v22, 16 }
0x397d   :  { %v3769_v31 = vpop.xlane.xlu1 %3768 }
0x397e   :  { %v3770_v47 = vcvt.f32.s32 %v3769_v31 }
0x3980   :  { %v7103_v10 = vadd.s32 %v3772_v41, %v3770_v47 }
0x3982   :  { %vm3774_vm12 = vcmp.eq.s32.totalorder %v6612_v14, %v7103_v10  ;;  %v7109_v48 = vsel %vm3832_vm11, %v7103_v10, %v7005_v57 }
0x3983   :  { %v7115_v24 = vsel %vm3774_vm12, 1.0, %v7515_v13  ;;  %vm3862_vm13 = vmxor %vm3774_vm12, %vm6166_vm6 }
0x3984   :  { %7516 = vst [vmem:[#allocation17_spill] sm:$0xff] %v7115_v24  ;;  %v3844_v20 = vrot.slane %v7115_v24, %v6338_v34  ;;  %v3837_v53 = vrot.slane %v7115_v24, %v6335_v33  ;;  %vm7165_vm0 = vmand %vm7061_vm3, %vm3862_vm13 }
0x3986   :  { %3846 = vbcast.lane.b32.xlu0 %v3844_v20, 256  ;;  %3839 = vbcast.lane.b32.xlu1 %v3837_v53, 256 }
0x39a8   :  { %v3936_v9 = vpop.f32.mrb[24].mxu0 }
0x39a9   :  { %v5465_v49 = vpop.f32.mrb[25].mxu0  ;;  %v3941_v47 = vrot.slane %v3936_v9, 1 }
0x39f8   :  { %v3847_v61 = vpop.permute.xlu0 %3846  ;;  %v3840_v6 = vpop.permute.xlu1 %3839 }
0x39f9   :  { %v3849_v57 = vmul.f32 %v3847_v61, %v6691_v56  ;;  %v3848_v1 = vmul.f32 %v3840_v6, %v6694_v5 }
0x39fb   :  { %v3856_v42 = vrot.slane %v3849_v57, 4  ;;  %v3850_v18 = vrot.slane %v3848_v1, 4 }
0x39fd   :  { %v3857_v39 = vadd.f32 %v3856_v42, %v3849_v57  ;;  %v3851_v7 = vadd.f32 %v3850_v18, %v3848_v1 }
0x39ff   :  { %v3858_v21 = vrot.slane %v3857_v39, 2  ;;  %v3852_v28 = vrot.slane %v3851_v7, 2 }
0x3a01   :  { %v3859_v23 = vadd.f32 %v3858_v21, %v3857_v39  ;;  %v3853_v22 = vadd.f32 %v3852_v28, %v3851_v7 }
0x3a03   :  { %v3860_v31 = vrot.slane %v3859_v23, 1  ;;  %v3854_v41 = vrot.slane %v3853_v22, 1 }
0x3a05   :  { %v3861_v20 = vadd.f32 %v3860_v31, %v3859_v23  ;;  %v3855_v53 = vadd.f32 %v3854_v41, %v3853_v22 }
0x3a07   :  { %v3945_v49 = vadd.f32 %v3941_v47, %v3861_v20  ;;  %v3944_v3 = vadd.f32 %v3936_v9, %v3855_v53 }
0x3a09   :  { %5982 = vtanh.f32 %v3945_v49  ;;  %v5050_v6 = vmul.f32 -1.442695, %v3945_v49  ;;  %v5049_v57 = vmul.f32 -1.442695, %v3944_v3 }
0x3a0a   :  { %5984 = vtanh.f32 %v3944_v3 }
0x3a0b   :  { %5986 = vpow2.f32 %v5050_v6 }
0x3a0c   :  { %5988 = vpow2.f32 %v5049_v57 }
0x3a13   :  { %v5983_v61 = vpop.eup %5982 }
0x3a14   :  { %v5985_v24 = vpop.eup %5984  ;;  %3966 = vrot.lane.b32.xlu0 %v5983_v61, %s6161_s20 }
0x3a15   :  { %3964 = vrot.lane.b32.xlu1 %v5985_v24, %s6161_s20  ;;  %v5987_v1 = vpop.eup %5986 }
0x3a16   :  { %v5989_v42 = vpop.eup %5988  ;;  %v3953_v18 = vadd.f32 1.0, %v5987_v1 }
0x3a17   :  { %v3952_v39 = vadd.f32 1.0, %v5989_v42 }
0x3a18   :  { %5990 = vrcp.f32 %v3953_v18 }
0x3a19   :  { %5992 = vrcp.f32 %v3952_v39 }
0x3a22   :  { %v5991_v7 = vpop.eup %5990 }
0x3a23   :  { %v5993_v21 = vpop.eup %5992  ;;  %v3961_v3 = vmul.f32 %v5991_v7, %v7025_v4 }
0x3a24   :  { %v3960_v24 = vmul.f32 %v5993_v21, %v7027_v37 }
0x3a86   :  { %v3967_v9 = vpop.permute.xlu0 %3966 }
0x3a87   :  { %v3965_v28 = vpop.permute.xlu1 %3964  ;;  %v3971_v23 = vmul.f32 %v5991_v7, %v3967_v9 }
0x3a88   :  { %v3970_v22 = vmul.f32 %v5993_v21, %v3965_v28 }
0x3a89   :  { %3976 = vrot.lane.b32.xlu0 %v3971_v23, %s6162_s21 }
0x3a8a   :  { %3974 = vrot.lane.b32.xlu1 %v3970_v22, %s6162_s21 }
0x3afb   :  { %v3977_v31 = vpop.permute.xlu0 %3976 }
0x3afc   :  { %v3975_v41 = vpop.permute.xlu1 %3974  ;;  %v7129_v47 = vadd.f32 %v3977_v31, %v3961_v3 }
0x3afd   :  { %v7131_v20 = vadd.f32 %v3975_v41, %v3960_v24 }
0x3afe   :  { %5994 = vtanh.f32 %v7129_v47 }
0x3aff   :  { %5996 = vtanh.f32 %v7131_v20 }
0x3b08   :  { %v5995_v53 = vpop.eup %5994 }
0x3b09   :  { %v5997_v49 = vpop.eup %5996  ;;  %3988 = vrot.lane.b32.xlu0 %v5995_v53, %s6161_s20 }
0x3b0a   :  { %3986 = vrot.lane.b32.xlu1 %v5997_v49, %s6161_s20 }
0x3b7b   :  { %v3989_v61 = vpop.permute.xlu0 %3988 }
0x3b7c   :  { %v3987_v4 = vpop.permute.xlu1 %3986  ;;  %v3993_v6 = vmul.f32 %v5991_v7, %v3989_v61 }
0x3b7d   :  { %v3992_v37 = vmul.f32 %v5993_v21, %v3987_v4 }
0x3b7e   :  { %v3996_v57 = vrot.slane %v3993_v6, 7 }
0x3b80   :  { %v3997_v1 = vsel %vm413_vm4, %v3996_v57, %v3992_v37 }
0x3b81   :  { %3998 = vrot.lane.b32.xlu0 %v3997_v1, %s6162_s21 }
0x3bf3   :  { %v3999_v42 = vpop.permute.xlu0 %3998 }
0x3bf4   :  { %5475 = vmatmul.mubr.msk.f32.vlgmr.msra.gmra.mrb[24].mxu1 %vm269_vm5, %v3999_v42 }
0x3bf5   :  { %5676 = vmatpush3.bf16.msra.mxu1 %v6563_v44  ;;  %5496 = vmatprep.mubr.msk.f32.mxu1 %vm6159_vm2, %v7515_v13 }
0x3bf6   :  { %5677 = vmatprep.subr.bf16.mxu1 %v7510_v59 }
0x3bf9   :  { %5679 = vmatpush3.bf16.msra.mxu1 %v6566_v46 }
0x3bfa   :  { %5686 = vmatprep.subr.bf16.mxu1 %v7510_v59 }
0x3cc7   :  { %v4068_v18 = vpop.f32.mrb[24].mxu1 }
0x3cc8   :  { %v4079_v39 = vrot.slane %v4068_v18, %v6581_v55  ;;  %v5476_v7 = vpop.f32.mrb[25].mxu1 }
0x3cca   :  { %v4080_v9 = vcombine.high %v4079_v39, %v4079_v39  ;;  %v4087_v21 = vrot.slane %v4079_v39, %v6581_v55 }
0x3ccc   :  { %v4094_v28 = vrot.slane %v4080_v9, %v6581_v55  ;;  %v4098_v23 = vrot.slane %v4087_v21, %v6335_v33 }
0x3cce   :  { %v4102_v22 = vrot.slane %v4094_v28, %v6335_v33  ;;  %v4105_v3 = vadd.f32 %v4098_v23, %v6592_v51 }
0x3cd0   :  { %v4106_v24 = vadd.f32 %v4102_v22, %v6597_v63  ;;  %5998 = vtanh.f32 %v4105_v3 }
0x3cd2   :  { %6000 = vtanh.f32 %v4106_v24 }
0x3cda   :  { %v5999_v31 = vpop.eup %5998 }
0x3cdb   :  { %v4109_v41 = vmul.f32 %v6938_v12, %v5999_v31 }
0x3cdc   :  { %v6001_v53 = vpop.eup %6000 }
0x3cdd   :  { %v4111_v49 = vsel %vm269_vm5, %v4109_v41, 0.0  ;;  %v4110_v61 = vmul.f32 %v6938_v12, %v6001_v53 }
0x3cde   :  { %4112 = vadd.xlane.f32.xlu1 %v4111_v49  ;;  %v4207_v49 = vrot.slane %v4068_v18, 1 }
0x3cdf   :  { %v4114_v4 = vsel %vm269_vm5, %v4110_v61, 0.0 }
0x3ce0   :  { %4115 = vadd.xlane.f32.xlu0 %v4114_v4 }
0x3d6b   :  { %v4113_v6 = vpop.xlane.xlu1 %4112 }
0x3d6c   :  { %v4122_v57 = vrot.slane %v4113_v6, %v6616_v15 }
0x3d6d   :  { %v4116_v37 = vpop.xlane.xlu0 %4115 }
0x3d6e   :  { %v4126_v1 = vrot.slane %v4116_v37, %v6616_v15 }
0x3d70   :  { %v4127_v12 = vsel %vm413_vm4, %v4126_v1, %v4122_v57 }
0x3d71   :  { %v4129_v39 = vsel %vm7165_vm0, %v4127_v12, -1e+30 }
0x3d72   :  { %v4130_v7 = vsel %vm2073_vm14, %v4129_v39, -inf }
0x3d73   :  { %4131 = vmax.xlane.f32.xlu0 %v4130_v7 }
0x3e00   :  { %v4132_v10 = vpop.xlane.xlu0 %4131 }
0x3e01   :  { %v7173_v9 = vsub.f32 %v4129_v39, %v4132_v10  ;;  %vm4145_vm1 = vcmp.ge.f32.partialorder %v4129_v39, %v4132_v10 }
0x3e02   :  { %v4146_v61 = vsel %vm4145_vm1, %v6612_v14, 8 }
0x3e03   :  { %7519 = vst [vmem:[#allocation18_spill] sm:$0xff] %v7173_v9  ;;  %v4134_v21 = vmul.f32 1.442695, %v7173_v9  ;;  %v4147_v4 = vsel %vm2073_vm14, %v4146_v61, 2147483647 }
0x3e04   :  { %v4149_v6 = vshra.s32 %v4147_v4, 16 }
0x3e05   :  { %6002 = vpow2.f32 %v4134_v21 }
0x3e06   :  { %v4151_v37 = vcvt.s32.f32 %v4149_v6 }
0x3e0f   :  { %v6003_v28 = vpop.eup %6002 }
0x3e10   :  { %v4136_v23 = vsel %vm7165_vm0, %v6003_v28, 0.0 }
0x3e11   :  { %v4137_v22 = vsel %vm2073_vm14, %v4136_v23, 0.0 }
0x3e12   :  { %4138 = vadd.xlane.f32.xlu0 %v4137_v22 }
0x3e9f   :  { %v7179_v3 = vpop.xlane.xlu0 %4138 }
0x3ea0   :  { %6004 = vrcp.f32 %v7179_v3 }
0x3eaa   :  { %v6005_v24 = vpop.eup %6004 }
0x3eab   :  { %v7182_v31 = vmul.f32 %v6005_v24, %v4136_v23 }
0x3ead   :  { %7520 = vst [vmem:[#allocation19_spill] sm:$0xff] %v7182_v31  ;;  %v4187_v41 = vrot.slane %v7182_v31, %v6338_v34  ;;  %v4180_v53 = vrot.slane %v7182_v31, %v6335_v33 }
0x3eaf   :  { %4189 = vbcast.lane.b32.xlu1 %v4187_v41, 256  ;;  %4182 = vbcast.lane.b32.xlu0 %v4180_v53, 256 }
0x3eb3   :  { %4210 = vrot.lane.b32.xlu1 %v4207_v49, %s6163_s22 }
0x3eb7   :  { %4208 = vrot.lane.b32.xlu1 %v4068_v18, %s6163_s22 }
0x3edb   :  { %4152 = vmin.xlane.f32.xlu1 %v4151_v37 }
0x3f21   :  { %v4190_v57 = vpop.permute.xlu1 %4189  ;;  %v4183_v1 = vpop.permute.xlu0 %4182 }
0x3f22   :  { %v4192_v12 = vmul.f32 %v6546_v16, %v4190_v57  ;;  %v4191_v7 = vmul.f32 %v4183_v1, %v6548_v19 }
0x3f24   :  { %v4200_v21 = vsel %vm269_vm5, %v4192_v12, 0.0  ;;  %v4193_v28 = vsel %vm269_vm5, %v4191_v7, 0.0 }
0x3f25   :  { %v4201_v23 = vrot.slane %v4200_v21, 4  ;;  %v4194_v18 = vrot.slane %v4193_v28, 4  ;;  %v4211_v41 = vpop.permute.xlu1 %4210 }
0x3f27   :  { %v4202_v39 = vadd.f32 %v4201_v23, %v4200_v21  ;;  %v4195_v10 = vadd.f32 %v4194_v18, %v4193_v28 }
0x3f29   :  { %v4203_v22 = vrot.slane %v4202_v39, 2  ;;  %v4196_v24 = vrot.slane %v4195_v10, 2  ;;  %v4209_v57 = vpop.permute.xlu1 %4208 }
0x3f2b   :  { %v4204_v53 = vadd.f32 %v4203_v22, %v4202_v39  ;;  %v4197_v49 = vadd.f32 %v4196_v24, %v4195_v10 }
0x3f2d   :  { %v4205_v61 = vrot.slane %v4204_v53, 1  ;;  %v4198_v6 = vrot.slane %v4197_v49, 1 }
0x3f2f   :  { %v4206_v62 = vadd.f32 %v4205_v61, %v4204_v53  ;;  %v4199_v31 = vadd.f32 %v4198_v6, %v4197_v49 }
0x3f31   :  { %v4215_v9 = vadd.f32 %v4211_v41, %v4206_v62  ;;  %v4214_v1 = vadd.f32 %v4209_v57, %v4199_v31  ;;  %v4148_v62 = vand.u32 65535, %v4147_v4 }
0x3f33   :  { %v4217_v12 = vadd.f32 %v6986_v45, %v4215_v9  ;;  %v4216_v7 = vadd.f32 %v6986_v45, %v4214_v1  ;;  %v4150_v9 = vcvt.s32.f32 %v4148_v62 }
0x3f35   :  { %6006 = vtanh.f32 %v4217_v12 }
0x3f36   :  { %6008 = vtanh.f32 %v4216_v7 }
0x3f3f   :  { %v6007_v21 = vpop.eup %6006 }
0x3f40   :  { %v4254_v28 = vrot.slane %v6007_v21, 7  ;;  %v6009_v23 = vpop.eup %6008 }
0x3f42   :  { %v4255_v18 = vsel %vm413_vm4, %v4254_v28, %v6009_v23 }
0x3f43   :  { %5486 = vmatmul.mubr.msk.f32.vlgmr.msra.gmra.mrb[26].mxu0 %vm269_vm5, %v4255_v18 }
0x3f44   :  { %5682 = vmatpush3.bf16.msra.mxu0 %v6499_v0  ;;  %5507 = vmatprep.mubr.msk.f32.mxu0 %vm6159_vm2, %v7515_v13 }
0x3f45   :  { %5683 = vmatprep.subr.bf16.mxu0 %v7510_v59 }
0x3f48   :  { %5685 = vmatpush3.bf16.msra.mxu0 %v6505_v26 }
0x3f68   :  { %v4153_v45 = vpop.xlane.xlu1 %4152 }
0x3f69   :  { %vm4154_vm8 = vcmp.eq.f32.partialorder %v4151_v37, %v4153_v45  ;;  %v4159_v39 = vcvt.f32.s32 %v4153_v45 }
0x3f6a   :  { %v4155_v31 = vsel %vm4154_vm8, %v4150_v9, inf  ;;  %vm4608_vm8 = vcmp.eq.s32.totalorder %v6612_v14, 6 }
0x3f6b   :  { %4156 = vmin.xlane.f32.xlu0 %v4155_v31  ;;  %v4160_v22 = vshll.u32 %v4159_v39, 16 }
0x3ff8   :  { %v4157_v10 = vpop.xlane.xlu0 %4156 }
0x3ff9   :  { %v4158_v24 = vcvt.f32.s32 %v4157_v10 }
0x3ffb   :  { %v7206_v0 = vadd.s32 %v4160_v22, %v4158_v24 }
0x3ffd   :  { %vm4162_vm11 = vcmp.eq.s32.totalorder %v6612_v14, %v7206_v0  ;;  %v7212_v26 = vsel %vm4220_vm9, %v7206_v0, %v7109_v48 }
0x3ffe   :  { %v7218_v4 = vsel %vm4162_vm11, 1.0, %v7515_v13 }
0x3fff   :  { %v4232_v37 = vrot.slane %v7218_v4, %v6338_v34  ;;  %v4225_v41 = vrot.slane %v7218_v4, %v6335_v33 }
0x4001   :  { %4234 = vbcast.lane.b32.xlu0 %v4232_v37, 256  ;;  %4227 = vbcast.lane.b32.xlu1 %v4225_v41, 256 }
0x4016   :  { %v4324_v53 = vpop.f32.mrb[26].mxu0 }
0x4017   :  { %v5487_v49 = vpop.f32.mrb[27].mxu0  ;;  %v4329_v31 = vrot.slane %v4324_v53, 1 }
0x4073   :  { %v4235_v61 = vpop.permute.xlu0 %4234  ;;  %v4228_v6 = vpop.permute.xlu1 %4227 }
0x4074   :  { %v4237_v48 = vmul.f32 %v4235_v61, %v6691_v56  ;;  %v4236_v57 = vmul.f32 %v4228_v6, %v6694_v5 }
0x4076   :  { %v4244_v1 = vrot.slane %v4237_v48, 4  ;;  %v4238_v12 = vrot.slane %v4236_v57, 4 }
0x4078   :  { %v4245_v7 = vadd.f32 %v4244_v1, %v4237_v48  ;;  %v4239_v21 = vadd.f32 %v4238_v12, %v4236_v57 }
0x407a   :  { %v4246_v28 = vrot.slane %v4245_v7, 2  ;;  %v4240_v23 = vrot.slane %v4239_v21, 2 }
0x407c   :  { %v4247_v18 = vadd.f32 %v4246_v28, %v4245_v7  ;;  %v4241_v62 = vadd.f32 %v4240_v23, %v4239_v21 }
0x407e   :  { %v4248_v45 = vrot.slane %v4247_v18, 1  ;;  %v4242_v9 = vrot.slane %v4241_v62, 1 }
0x4080   :  { %v4249_v39 = vadd.f32 %v4248_v45, %v4247_v18  ;;  %v4243_v10 = vadd.f32 %v4242_v9, %v4241_v62 }
0x4082   :  { %v4333_v22 = vadd.f32 %v4329_v31, %v4249_v39  ;;  %v4332_v24 = vadd.f32 %v4324_v53, %v4243_v10 }
0x4084   :  { %6010 = vtanh.f32 %v4333_v22  ;;  %v5055_v49 = vmul.f32 -1.442695, %v4333_v22  ;;  %v5054_v61 = vmul.f32 -1.442695, %v4332_v24 }
0x4085   :  { %6012 = vtanh.f32 %v4332_v24 }
0x4086   :  { %6014 = vpow2.f32 %v5055_v49 }
0x4087   :  { %6016 = vpow2.f32 %v5054_v61 }
0x408e   :  { %v6011_v37 = vpop.eup %6010 }
0x408f   :  { %v6013_v41 = vpop.eup %6012  ;;  %4354 = vrot.lane.b32.xlu1 %v6011_v37, %s6161_s20 }
0x4090   :  { %4352 = vrot.lane.b32.xlu0 %v6013_v41, %s6161_s20  ;;  %v6015_v6 = vpop.eup %6014 }
0x4091   :  { %v6017_v48 = vpop.eup %6016  ;;  %v4341_v57 = vadd.f32 1.0, %v6015_v6 }
0x4092   :  { %v4340_v1 = vadd.f32 1.0, %v6017_v48 }
0x4093   :  { %6018 = vrcp.f32 %v4341_v57 }
0x4094   :  { %6020 = vrcp.f32 %v4340_v1 }
0x409d   :  { %v6019_v12 = vpop.eup %6018 }
0x409e   :  { %v6021_v7 = vpop.eup %6020  ;;  %v4349_v18 = vmul.f32 %v6019_v12, %v7129_v47 }
0x409f   :  { %v4348_v62 = vmul.f32 %v6021_v7, %v7131_v20 }
0x4101   :  { %v4355_v53 = vpop.permute.xlu1 %4354 }
0x4102   :  { %v4353_v21 = vpop.permute.xlu0 %4352  ;;  %v4359_v28 = vmul.f32 %v6019_v12, %v4355_v53 }
0x4103   :  { %v4358_v23 = vmul.f32 %v6021_v7, %v4353_v21 }
0x4104   :  { %4364 = vrot.lane.b32.xlu1 %v4359_v28, %s6162_s21 }
0x4105   :  { %4362 = vrot.lane.b32.xlu0 %v4358_v23, %s6162_s21 }
0x4176   :  { %v4365_v45 = vpop.permute.xlu1 %4364 }
0x4177   :  { %v4363_v9 = vpop.permute.xlu0 %4362  ;;  %v7232_v31 = vadd.f32 %v4365_v45, %v4349_v18 }
0x4178   :  { %v7234_v39 = vadd.f32 %v4363_v9, %v4348_v62 }
0x4179   :  { %6022 = vtanh.f32 %v7232_v31 }
0x417a   :  { %6024 = vtanh.f32 %v7234_v39 }
0x4183   :  { %v6023_v10 = vpop.eup %6022 }
0x4184   :  { %v6025_v22 = vpop.eup %6024  ;;  %4376 = vrot.lane.b32.xlu1 %v6023_v10, %s6161_s20 }
0x4185   :  { %4374 = vrot.lane.b32.xlu0 %v6025_v22, %s6161_s20 }
0x41f6   :  { %v4377_v24 = vpop.permute.xlu1 %4376 }
0x41f7   :  { %v4375_v47 = vpop.permute.xlu0 %4374  ;;  %v4381_v37 = vmul.f32 %v6019_v12, %v4377_v24 }
0x41f8   :  { %v4380_v20 = vmul.f32 %v6021_v7, %v4375_v47 }
0x41f9   :  { %v4384_v41 = vrot.slane %v4381_v37, 7 }
0x41fb   :  { %v4385_v49 = vsel %vm413_vm4, %v4384_v41, %v4380_v20 }
0x41fc   :  { %4386 = vrot.lane.b32.xlu1 %v4385_v49, %s6162_s21 }
0x426e   :  { %v4387_v61 = vpop.permute.xlu1 %4386 }
0x426f   :  { %5497 = vmatmul.mubr.msk.f32.vlgmr.msra.gmra.mrb[26].mxu1 %vm269_vm5, %v4387_v61 }
0x4270   :  { %5688 = vmatpush3.bf16.msra.mxu1 %v6563_v44  ;;  %5518 = vmatprep.mubr.msk.f32.mxu1 %vm6159_vm2, %v7515_v13  ;;  %vm4250_vm2 = vmxor %vm4162_vm11, %vm6166_vm6 }
0x4271   :  { %5689 = vmatprep.subr.bf16.mxu1 %v7510_v59  ;;  %v7258_v59 = vld [vmem:[%s7482_s5 + $0x3] ss:$0 sm:$0xff]  ;;  %vm7272_vm12 = vmand %vm7165_vm0, %vm4250_vm2 }
0x4274   :  { %5691 = vmatpush3.bf16.msra.mxu1 %v6566_v46 }
0x4342   :  { %v4456_v6 = vpop.f32.mrb[26].mxu1 }
0x4343   :  { %v4467_v48 = vrot.slane %v4456_v6, %v6581_v55  ;;  %v5498_v57 = vpop.f32.mrb[27].mxu1 }
0x4345   :  { %v4468_v1 = vcombine.high %v4467_v48, %v4467_v48  ;;  %v4475_v12 = vrot.slane %v4467_v48, %v6581_v55 }
0x4347   :  { %v4482_v53 = vrot.slane %v4468_v1, %v6581_v55  ;;  %v4486_v7 = vrot.slane %v4475_v12, %v6335_v33 }
0x4349   :  { %v4490_v44 = vrot.slane %v4482_v53, %v6335_v33  ;;  %v4493_v21 = vadd.f32 %v4486_v7, %v6592_v51 }
0x434b   :  { %v4494_v28 = vadd.f32 %v4490_v44, %v6597_v63  ;;  %6026 = vtanh.f32 %v4493_v21 }
0x434d   :  { %6028 = vtanh.f32 %v4494_v28 }
0x4355   :  { %v6027_v46 = vpop.eup %6026 }
0x4356   :  { %v4497_v23 = vmul.f32 %v7258_v59, %v6027_v46  ;;  %v4595_v46 = vrot.slane %v4456_v6, 1 }
0x4357   :  { %v6029_v18 = vpop.eup %6028 }
0x4358   :  { %v4499_v62 = vsel %vm269_vm5, %v4497_v23, 0.0  ;;  %v4498_v45 = vmul.f32 %v7258_v59, %v6029_v18 }
0x4359   :  { %4500 = vadd.xlane.f32.xlu0 %v4499_v62 }
0x435a   :  { %v4502_v9 = vsel %vm269_vm5, %v4498_v45, 0.0 }
0x435b   :  { %4503 = vadd.xlane.f32.xlu1 %v4502_v9 }
0x43e6   :  { %v4501_v10 = vpop.xlane.xlu0 %4500 }
0x43e7   :  { %v4510_v24 = vrot.slane %v4501_v10, %v6616_v15 }
0x43e8   :  { %v4504_v22 = vpop.xlane.xlu1 %4503 }
0x43e9   :  { %v4514_v47 = vrot.slane %v4504_v22, %v6616_v15 }
0x43eb   :  { %v4515_v20 = vsel %vm413_vm4, %v4514_v47, %v4510_v24 }
0x43ec   :  { %v4517_v41 = vsel %vm7272_vm12, %v4515_v20, -1e+30 }
0x43ed   :  { %v4518_v49 = vsel %vm2073_vm14, %v4517_v41, -inf }
0x43ee   :  { %4519 = vmax.xlane.f32.xlu0 %v4518_v49 }
0x447b   :  { %v4520_v0 = vpop.xlane.xlu0 %4519 }
0x447c   :  { %v7280_v61 = vsub.f32 %v4517_v41, %v4520_v0  ;;  %vm4533_vm13 = vcmp.ge.f32.partialorder %v4517_v41, %v4520_v0 }
0x447d   :  { %v4534_v23 = vsel %vm4533_vm13, %v6612_v14, 8 }
0x447e   :  { %v4522_v48 = vmul.f32 1.442695, %v7280_v61  ;;  %v4535_v18 = vsel %vm2073_vm14, %v4534_v23, 2147483647 }
0x447f   :  { %v4537_v62 = vshra.s32 %v4535_v18, 16 }
0x4480   :  { %6030 = vpow2.f32 %v4522_v48 }
0x4481   :  { %v4539_v45 = vcvt.s32.f32 %v4537_v62 }
0x448a   :  { %v6031_v57 = vpop.eup %6030 }
0x448b   :  { %v4524_v1 = vsel %vm7272_vm12, %v6031_v57, 0.0 }
0x448c   :  { %v4525_v12 = vsel %vm2073_vm14, %v4524_v1, 0.0 }
0x448d   :  { %4526 = vadd.xlane.f32.xlu0 %v4525_v12 }
0x451a   :  { %v7286_v53 = vpop.xlane.xlu0 %4526 }
0x451b   :  { %6032 = vrcp.f32 %v7286_v53 }
0x4525   :  { %v6033_v7 = vpop.eup %6032 }
0x4526   :  { %v7289_v44 = vmul.f32 %v6033_v7, %v4524_v1 }
0x4528   :  { %v4575_v21 = vrot.slane %v7289_v44, %v6338_v34  ;;  %v4568_v28 = vrot.slane %v7289_v44, %v6335_v33 }
0x452a   :  { %4577 = vbcast.lane.b32.xlu0 %v4575_v21, 256  ;;  %4570 = vbcast.lane.b32.xlu1 %v4568_v28, 256 }
0x452e   :  { %4598 = vrot.lane.b32.xlu1 %v4595_v46, %s6163_s22 }
0x4532   :  { %4596 = vrot.lane.b32.xlu1 %v4456_v6, %s6163_s22 }
0x4549   :  { %4540 = vmin.xlane.f32.xlu0 %v4539_v45 }
0x459c   :  { %v4578_v9 = vpop.permute.xlu0 %4577  ;;  %v4571_v10 = vpop.permute.xlu1 %4570 }
0x459d   :  { %v4580_v22 = vmul.f32 %v6546_v16, %v4578_v9  ;;  %v4579_v24 = vmul.f32 %v4571_v10, %v6548_v19  ;;  %v6081_v9 = vld [vmem:[%s7482_s5] ss:$0 sm:$0xff]  ;;  %s6167_s5 = smov [#allocation7]  }
0x459e   :  { %s4965_s0 = sshll.u32 %s6167_s5, 4  ;;  %s4966_s0 = int_to_ptr.vmem [resolvable:$true] %s4965_s0 }
0x459f   :  { %v4588_v47 = vsel %vm269_vm5, %v4580_v22, 0.0  ;;  %v4581_v20 = vsel %vm269_vm5, %v4579_v24, 0.0  ;;  %s6126_s1 = scalar_lea.vmem %s4966_s0, 32  ;;  %p6131_p3 = scmp.lt.s32.totalorder %s4966_s0, %s4966_s0 }
0x45a0   :  { %v4589_v49 = vrot.slane %v4588_v47, 4  ;;  %v4582_v6 = vrot.slane %v4581_v20, 4  ;;  %v4599_v1 = vpop.permute.xlu1 %4598  ;;  %p6127_p2 = scmp.ne.s32.totalorder %s4966_s0, %s6126_s1  ;;  %p6132_p4 = scmp.lt.s32.totalorder %s6126_s1, %s6126_s1 }
0x45a2   :  { %v4590_v41 = vadd.f32 %v4589_v49, %v4588_v47  ;;  %v4583_v0 = vadd.f32 %v4582_v6, %v4581_v20  ;;  %v4536_v6 = vand.u32 65535, %v4535_v18  ;;  %p6133_p5 = por %p6132_p4, %p6131_p3 }
0x45a4   :  { %v4591_v48 = vrot.slane %v4590_v41, 2  ;;  %v4584_v57 = vrot.slane %v4583_v0, 2  ;;  %v4597_v16 = vpop.permute.xlu1 %4596  ;;  %p6134_p6 = pnand %p6133_p5, %p6127_p2 }
0x45a6   :  { %v4592_v12 = vadd.f32 %v4591_v48, %v4590_v41  ;;  %v4585_v7 = vadd.f32 %v4584_v57, %v4583_v0  ;;  %v4538_v0 = vcvt.s32.f32 %v4536_v6 }
0x45a8   :  { %v4593_v21 = vrot.slane %v4592_v12, 1  ;;  %v4586_v28 = vrot.slane %v4585_v7, 1 }
0x45aa   :  { %v4594_v46 = vadd.f32 %v4593_v21, %v4592_v12  ;;  %v4587_v23 = vadd.f32 %v4586_v28, %v4585_v7 }
0x45ac   :  { %v4603_v62 = vadd.f32 %v4599_v1, %v4594_v46  ;;  %v4602_v19 = vadd.f32 %v4597_v16, %v4587_v23 }
0x45ae   :  { %v4605_v10 = vadd.f32 %v6081_v9, %v4603_v62  ;;  %v4604_v22 = vadd.f32 %v6081_v9, %v4602_v19 }
0x45b0   :  { %6034 = vtanh.f32 %v4605_v10 }
0x45b1   :  { %6036 = vtanh.f32 %v4604_v22 }
0x45ba   :  { %v6035_v24 = vpop.eup %6034 }
0x45bb   :  { %v4642_v47 = vrot.slane %v6035_v24, 7  ;;  %v6037_v20 = vpop.eup %6036 }
0x45bd   :  { %v4643_v49 = vsel %vm413_vm4, %v4642_v47, %v6037_v20 }
0x45be   :  { %5508 = vmatmul.mubr.msk.f32.vlgmr.msra.gmra.mrb[28].mxu0 %vm269_vm5, %v4643_v49 }
0x45d6   :  { %v4541_v41 = vpop.xlane.xlu0 %4540 }
0x45d7   :  { %vm4542_vm1 = vcmp.eq.f32.partialorder %v4539_v45, %v4541_v41  ;;  %v4547_v57 = vcvt.f32.s32 %v4541_v41 }
0x45d8   :  { %v4543_v48 = vsel %vm4542_vm1, %v4538_v0, inf }
0x45d9   :  { %4544 = vmin.xlane.f32.xlu1 %v4543_v48  ;;  %v4548_v12 = vshll.u32 %v4547_v57, 16 }
0x4666   :  { %v4545_v1 = vpop.xlane.xlu1 %4544 }
0x4667   :  { %v4546_v7 = vcvt.f32.s32 %v4545_v1 }
0x4669   :  { %v7309_v21 = vadd.s32 %v4548_v12, %v4546_v7 }
0x466b   :  { %vm4550_vm9 = vcmp.eq.s32.totalorder %v6612_v14, %v7309_v21  ;;  %v7315_v28 = vsel %vm4608_vm8, %v7309_v21, %v7212_v26 }
0x466c   :  { %v7321_v18 = vsel %vm4550_vm9, 1.0, %v7515_v13 }
0x466d   :  { %v4620_v45 = vrot.slane %v7321_v18, %v6338_v34  ;;  %v4613_v46 = vrot.slane %v7321_v18, %v6335_v33 }
0x466f   :  { %4622 = vbcast.lane.b32.xlu0 %v4620_v45, 256  ;;  %4615 = vbcast.lane.b32.xlu1 %v4613_v46, 256 }
0x4691   :  { %v4712_v23 = vpop.f32.mrb[28].mxu0 }
0x4692   :  { %v5509_v16 = vpop.f32.mrb[29].mxu0  ;;  %v4717_v57 = vrot.slane %v4712_v23, 1 }
0x46e1   :  { %v4623_v62 = vpop.permute.xlu0 %4622  ;;  %v4616_v19 = vpop.permute.xlu1 %4615 }
0x46e2   :  { %v4625_v26 = vmul.f32 %v4623_v62, %v6691_v56  ;;  %v4624_v9 = vmul.f32 %v4616_v19, %v6694_v5 }
0x46e4   :  { %v4632_v10 = vrot.slane %v4625_v26, 4  ;;  %v4626_v22 = vrot.slane %v4624_v9, 4 }
0x46e6   :  { %v4633_v24 = vadd.f32 %v4632_v10, %v4625_v26  ;;  %v4627_v47 = vadd.f32 %v4626_v22, %v4624_v9 }
0x46e8   :  { %v4634_v20 = vrot.slane %v4633_v24, 2  ;;  %v4628_v49 = vrot.slane %v4627_v47, 2 }
0x46ea   :  { %v4635_v6 = vadd.f32 %v4634_v20, %v4633_v24  ;;  %v4629_v41 = vadd.f32 %v4628_v49, %v4627_v47 }
0x46ec   :  { %v4636_v0 = vrot.slane %v4635_v6, 1  ;;  %v4630_v48 = vrot.slane %v4629_v41, 1 }
0x46ee   :  { %v4637_v1 = vadd.f32 %v4636_v0, %v4635_v6  ;;  %v4631_v12 = vadd.f32 %v4630_v48, %v4629_v41 }
0x46f0   :  { %v4721_v7 = vadd.f32 %v4717_v57, %v4637_v1  ;;  %v4720_v45 = vadd.f32 %v4712_v23, %v4631_v12 }
0x46f2   :  { %6038 = vtanh.f32 %v4721_v7  ;;  %v5060_v5 = vmul.f32 -1.442695, %v4721_v7  ;;  %v5059_v16 = vmul.f32 -1.442695, %v4720_v45 }
0x46f3   :  { %6040 = vtanh.f32 %v4720_v45 }
0x46f4   :  { %6042 = vpow2.f32 %v5060_v5 }
0x46f5   :  { %6044 = vpow2.f32 %v5059_v16 }
0x46fc   :  { %v6039_v56 = vpop.eup %6038 }
0x46fd   :  { %v6041_v46 = vpop.eup %6040  ;;  %4742 = vrot.lane.b32.xlu0 %v6039_v56, %s6161_s20 }
0x46fe   :  { %4740 = vrot.lane.b32.xlu1 %v6041_v46, %s6161_s20  ;;  %v6043_v62 = vpop.eup %6042 }
0x46ff   :  { %v6045_v19 = vpop.eup %6044  ;;  %v4729_v26 = vadd.f32 1.0, %v6043_v62 }
0x4700   :  { %v4728_v9 = vadd.f32 1.0, %v6045_v19 }
0x4701   :  { %6046 = vrcp.f32 %v4729_v26 }
0x4702   :  { %6048 = vrcp.f32 %v4728_v9 }
0x470b   :  { %v6047_v10 = vpop.eup %6046 }
0x470c   :  { %v6049_v22 = vpop.eup %6048  ;;  %v4737_v49 = vmul.f32 %v6047_v10, %v7232_v31 }
0x470d   :  { %v4736_v6 = vmul.f32 %v6049_v22, %v7234_v39 }
0x476f   :  { %v4743_v23 = vpop.permute.xlu0 %4742 }
0x4770   :  { %v4741_v24 = vpop.permute.xlu1 %4740  ;;  %v4747_v47 = vmul.f32 %v6047_v10, %v4743_v23 }
0x4771   :  { %v4746_v20 = vmul.f32 %v6049_v22, %v4741_v24 }
0x4772   :  { %4752 = vrot.lane.b32.xlu0 %v4747_v47, %s6162_s21 }
0x4773   :  { %4750 = vrot.lane.b32.xlu1 %v4746_v20, %s6162_s21 }
0x47e4   :  { %v4753_v41 = vpop.permute.xlu0 %4752 }
0x47e5   :  { %v4751_v0 = vpop.permute.xlu1 %4750  ;;  %v4757_v48 = vadd.f32 %v4753_v41, %v4737_v49 }
0x47e6   :  { %v4756_v57 = vadd.f32 %v4751_v0, %v4736_v6 }
0x47e7   :  { %6050 = vtanh.f32 %v4757_v48 }
0x47e8   :  { %6052 = vtanh.f32 %v4756_v57 }
0x47f1   :  { %v6051_v1 = vpop.eup %6050 }
0x47f2   :  { %v6053_v12 = vpop.eup %6052  ;;  %4764 = vrot.lane.b32.xlu0 %v6051_v1, %s6161_s20 }
0x47f3   :  { %4762 = vrot.lane.b32.xlu1 %v6053_v12, %s6161_s20 }
0x4864   :  { %v4765_v7 = vpop.permute.xlu0 %4764 }
0x4865   :  { %v4763_v45 = vpop.permute.xlu1 %4762  ;;  %v4769_v56 = vmul.f32 %v6047_v10, %v4765_v7 }
0x4866   :  { %v4768_v46 = vmul.f32 %v6049_v22, %v4763_v45 }
0x4867   :  { %v4772_v5 = vrot.slane %v4769_v56, 7 }
0x4869   :  { %v4773_v31 = vsel %vm413_vm4, %v4772_v5, %v4768_v46 }
0x486a   :  { %4774 = vrot.lane.b32.xlu0 %v4773_v31, %s6162_s21 }
0x48dc   :  { %v4775_v39 = vpop.permute.xlu0 %4774 }
0x48dd   :  { %5519 = vmatmul.mubr.msk.f32.vlgmr.msra.gmra.mrb[28].mxu1 %vm269_vm5, %v4775_v39 }
0x49b0   :  { %v4844_v16 = vpop.f32.mrb[28].mxu1 }
0x49b1   :  { %v4855_v62 = vrot.slane %v4844_v16, %v6581_v55  ;;  %v5520_v19 = vpop.f32.mrb[29].mxu1 }
0x49b3   :  { %v4856_v26 = vcombine.high %v4855_v62, %v4855_v62  ;;  %v4863_v9 = vrot.slane %v4855_v62, %v6581_v55 }
0x49b5   :  { %v4870_v23 = vrot.slane %v4856_v26, %v6581_v55  ;;  %v4874_v10 = vrot.slane %v4863_v9, %v6335_v33 }
0x49b7   :  { %v4878_v22 = vrot.slane %v4870_v23, %v6335_v33  ;;  %v4881_v24 = vadd.f32 %v4874_v10, %v6592_v51  ;;  %v2209_v23 = vsub.f32 0.0, %v6641_v58 }
0x49b9   :  { %v4882_v47 = vadd.f32 %v4878_v22, %v6597_v63  ;;  %6054 = vtanh.f32 %v4881_v24 }
0x49bb   :  { %6056 = vtanh.f32 %v4882_v47 }
0x49bc   :  { %6058 = vlog2.f32 %v6635_v52  ;;  %v2208_v52 = vsub.f32 0.0, %v6644_v60 }
0x49c3   :  { %v6055_v20 = vpop.eup %6054 }
0x49c4   :  { %v4885_v49 = vmul.f32 %v7258_v59, %v6055_v20 }
0x49c5   :  { %v6057_v6 = vpop.eup %6056 }
0x49c6   :  { %v4887_v41 = vsel %vm269_vm5, %v4885_v49, 0.0  ;;  %v4886_v55 = vmul.f32 %v7258_v59, %v6057_v6  ;;  %v6059_v48 = vpop.eup %6058 }
0x49c7   :  { %4888 = vadd.xlane.f32.xlu1 %v4887_v41  ;;  %v2131_v51 = vmul.f32 0.6931472, %v6059_v48 }
0x49c8   :  { %v4890_v0 = vsel %vm269_vm5, %v4886_v55, 0.0  ;;  %vm4638_vm5 = vmxor %vm4550_vm9, %vm6166_vm6 }
0x49c9   :  { %4891 = vadd.xlane.f32.xlu0 %v4890_v0  ;;  %v2136_v63 = vrot.slane %v2131_v51, %v6335_v33  ;;  %v2140_v57 = vrot.slane %v2131_v51, %v6338_v34  ;;  %vm7365_vm11 = vmand %vm7272_vm12, %vm4638_vm5 }
0x49cb   :  { %v2144_v1 = vsub.f32 %v6626_v35, %v2140_v57  ;;  %v2143_v12 = vsub.f32 %v6624_v30, %v2136_v63 }
0x49cd   :  { %v2210_v7 = vmul.f32 %v2208_v52, %v2143_v12  ;;  %v2211_v10 = vmul.f32 %v2209_v23, %v2144_v1 }
0x49d8   :  { %2191 = vperm.xlu1 %5717, %v2144_v1  }
0x49dc   :  { %2215 = vperm.xlu1 %5717, %v2210_v7  }
0x4a54   :  { %v4889_v59 = vpop.xlane.xlu1 %4888 }
0x4a55   :  { %v4898_v33 = vrot.slane %v4889_v59, %v6616_v15 }
0x4a56   :  { %v4892_v45 = vpop.xlane.xlu0 %4891 }
0x4a57   :  { %v4902_v34 = vrot.slane %v4892_v45, %v6616_v15 }
0x4a58   :  { %v2192_v24 = vpop.permute.xlu1 %2191 }
0x4a59   :  { %v4903_v30 = vsel %vm413_vm4, %v4902_v34, %v4898_v33  ;;  %v2618_v33 = vsub.f32 0.0, %v6755_v40 }
0x4a5a   :  { %v4905_v60 = vsel %vm7365_vm11, %v4903_v30, -1e+30 }
0x4a5b   :  { %v4906_v56 = vsel %vm2073_vm14, %v4905_v60, -inf }
0x4a5c   :  { %4907 = vmax.xlane.f32.xlu0 %v4906_v56  ;;  %v2216_v6 = vpop.permute.xlu1 %2215 }
0x4a5d   :  { %v2223_v59 = vrot.slane %v2216_v6, %v6616_v15 }
0x4ae9   :  { %v4908_v21 = vpop.xlane.xlu0 %4907 }
0x4aea   :  { %v7373_v46 = vsub.f32 %v4905_v60, %v4908_v21  ;;  %vm4921_vm6 = vcmp.ge.f32.partialorder %v4905_v60, %v4908_v21 }
0x4aeb   :  { %v4922_v5 = vsel %vm4921_vm6, %v6612_v14, 8 }
0x4aec   :  { %v4910_v31 = vmul.f32 1.442695, %v7373_v46  ;;  %v4923_v39 = vsel %vm2073_vm14, %v4922_v5, 2147483647 }
0x4aed   :  { %v4925_v16 = vshra.s32 %v4923_v39, 16  ;;  %v4924_v22 = vand.u32 65535, %v4923_v39 }
0x4aee   :  { %6060 = vpow2.f32 %v4910_v31 }
0x4aef   :  { %v4927_v62 = vcvt.s32.f32 %v4925_v16  ;;  %6062 = vlog2.f32 %v6857_v38  ;;  %v4926_v20 = vcvt.s32.f32 %v4924_v22  ;;  %v7525_v16 = vld [vmem:[#allocation17_spill] sm:$0xff] }
0x4af0   :  { %6064 = vlog2.f32 %v6752_v36 }
0x4af1   :  { %4928 = vmin.xlane.f32.xlu0 %v4927_v62  ;;  %6066 = vlog2.f32 %v6966_v54  ;;  %v2200_v54 = vrot.slane %v2192_v24, %v6616_v15 }
0x4af2   :  { %6068 = vlog2.f32 %v7075_v2 }
0x4af3   :  { %6070 = vlog2.f32 %v7179_v3 }
0x4af4   :  { %6072 = vlog2.f32 %v7286_v53 }
0x4af8   :  { %v6061_v19 = vpop.eup %6060 }
0x4af9   :  { %v7380_v26 = vsel %vm7365_vm11, %v6061_v19, 0.0  ;;  %v6063_v58 = vpop.eup %6062 }
0x4afa   :  { %v4913_v9 = vsel %vm2073_vm14, %v7380_v26, 0.0  ;;  %v6065_v38 = vpop.eup %6064  ;;  %v2979_v41 = vmul.f32 0.6931472, %v6063_v58 }
0x4afb   :  { %4914 = vadd.xlane.f32.xlu1 %v4913_v9  ;;  %v6067_v36 = vpop.eup %6066  ;;  %v2591_v51 = vmul.f32 0.6931472, %v6065_v38  ;;  %v7527_v9 = vld [vmem:[#allocation14_spill] sm:$0xff] }
0x4afc   :  { %v3367_v2 = vmul.f32 0.6931472, %v6067_v36  ;;  %v2980_v52 = vsub.f32 %v6851_v29, %v2979_v41  ;;  %v6069_v3 = vpop.eup %6068 }
0x4afd   :  { %v2592_v53 = vsub.f32 %v6746_v27, %v2591_v51  ;;  %v3755_v34 = vmul.f32 0.6931472, %v6069_v3  ;;  %v6071_v30 = vpop.eup %6070  ;;  %v3006_v27 = vsub.f32 0.0, %v6860_v43  ;;  %v3394_v43 = vsub.f32 0.0, %v7527_v9 }
0x4afe   :  { %v3001_v7 = vmul.f32 %v6897_v50, %v2980_v52  ;;  %v4143_v40 = vmul.f32 0.6931472, %v6071_v30 }
0x4aff   :  { %v2613_v21 = vmul.f32 %v6793_v25, %v2592_v53  ;;  %v3756_v5 = vsub.f32 %v7069_v17, %v3755_v34  ;;  %v3007_v19 = vmul.f32 %v3006_v27, %v2980_v52 }
0x4b00   :  { %v3002_v60 = vsel %vm2073_vm14, %v3001_v7, 0.0 }
0x4b01   :  { %v2614_v39 = vsel %vm2073_vm14, %v2613_v21, 0.0  ;;  %v3008_v38 = vsel %vm6843_vm15, %v3007_v19, 0.0 }
0x4b07   :  { %2188 = vperm.xlu0 %5716, %v2143_v12  }
0x4b0c   :  { %2218 = vperm.xlu1 %5717, %v2211_v10   ;;  %v7528_v10 = vld [vmem:[#allocation18_spill] sm:$0xff] }
0x4b0d   :  { %v4144_v17 = vsub.f32 %v7528_v10, %v4143_v40 }
0x4b7e   :  { %v7388_v47 = vpop.xlane.xlu0 %4928 }
0x4b7f   :  { %vm4930_vm2 = vcmp.eq.f32.partialorder %v4927_v62, %v7388_v47  ;;  %v3777_v62 = vmul.f32 %v7525_v16, %v3756_v5  ;;  %v4935_v42 = vcvt.f32.s32 %v7388_v47 }
0x4b80   :  { %v4931_v49 = vsel %vm4930_vm2, %v4926_v20, inf  ;;  %v4165_v20 = vmul.f32 %v7218_v4, %v4144_v17 }
0x4b81   :  { %4932 = vmin.xlane.f32.xlu0 %v4931_v49  ;;  %v3778_v22 = vsel %vm2073_vm14, %v3777_v62, 0.0  ;;  %v7529_v49 = vld [vmem:[#allocation16_spill] sm:$0xff]  ;;  %v4936_v21 = vshll.u32 %v4935_v42, 16 }
0x4b82   :  { %v3782_v58 = vsub.f32 0.0, %v7529_v49  ;;  %v4166_v36 = vsel %vm2073_vm14, %v4165_v20, 0.0 }
0x4b86   :  { %v2189_v55 = vpop.permute.xlu0 %2188 }
0x4b87   :  { %v2196_v0 = vrot.slane %v2189_v55, %v6616_v15 }
0x4b88   :  { %v4915_v48 = vpop.xlane.xlu1 %4914 }
0x4b89   :  { %v2201_v63 = vsel %vm413_vm4, %v2200_v54, %v2196_v0  ;;  %6074 = vrcp.f32 %v4915_v48  ;;  %v3009_v54 = vsel %vm2073_vm14, %v3008_v38, 0.0 }
0x4b8a   :  { %v2203_v57 = vmul.f32 %v6682_v11, %v2201_v63  ;;  %v3368_v11 = vsub.f32 %v6960_v8, %v3367_v2  ;;  %v6073_v8 = vpop.eup %6072  ;;  %6076 = vlog2.f32 %v4915_v48  ;;  %v3783_v48 = vmul.f32 %v3782_v58, %v3756_v5  ;;  %v7532_v2 = vld [vmem:[#allocation19_spill] sm:$0xff] }
0x4b8b   :  { %v4531_v23 = vmul.f32 0.6931472, %v6073_v8 }
0x4b8c   :  { %v2219_v1 = vpop.permute.xlu1 %2218  ;;  %v2204_v12 = vsel %vm2073_vm14, %v2203_v57, 0.0  ;;  %v3389_v50 = vmul.f32 %v7011_v32, %v3368_v11  ;;  %v3395_v41 = vmul.f32 %v3394_v43, %v3368_v11  ;;  %v4170_v57 = vsub.f32 0.0, %v7532_v2 }
0x4b8d   :  { %v2227_v45 = vrot.slane %v2219_v1, %v6616_v15  ;;  %2205 = vadd.xlane.f32.xlu1 %v2204_v12  ;;  %v2619_v15 = vmul.f32 %v2618_v33, %v2592_v53  ;;  %v4532_v55 = vsub.f32 %v7280_v61, %v4531_v23  ;;  %v3784_v12 = vsel %vm7061_vm3, %v3783_v48, 0.0 }
0x4b8e   :  { %v3390_v31 = vsel %vm2073_vm14, %v3389_v50, 0.0  ;;  %v3396_v63 = vsel %vm6952_vm10, %v3395_v41, 0.0  ;;  %v3785_v53 = vsel %vm2073_vm14, %v3784_v12, 0.0 }
0x4b8f   :  { %v2228_v29 = vsel %vm413_vm4, %v2227_v45, %v2223_v59  ;;  %v2620_v32 = vsel %vm6738_vm7, %v2619_v15, 0.0  ;;  %v4553_v0 = vmul.f32 %v7321_v18, %v4532_v55  ;;  %v3397_v61 = vsel %vm2073_vm14, %v3396_v63, 0.0 }
0x4b90   :  { %v2230_v56 = vsel %vm2073_vm14, %v2228_v29, 0.0  ;;  %v2621_v24 = vsel %vm2073_vm14, %v2620_v32, 0.0  ;;  %v4171_v18 = vmul.f32 %v4170_v57, %v4144_v17  ;;  %v4558_v59 = vsub.f32 0.0, %v7289_v44 }
0x4b91   :  { %3003 = vadd.xlane.f32.xlu1 %v3002_v60  ;;  %2231 = vadd.xlane.f32.xlu0 %v2230_v56  ;;  %v4554_v3 = vsel %vm2073_vm14, %v4553_v0, 0.0  ;;  %vm4953_vm4 = vcmp.eq.s32.totalorder %v6612_v14, 7 }
0x4b92   :  { %v4172_v34 = vsel %vm7165_vm0, %v4171_v18, 0.0  ;;  %v4559_v11 = vmul.f32 %v4558_v59, %v4532_v55 }
0x4b93   :  { %v6075_v51 = vpop.eup %6074  ;;  %v4173_v29 = vsel %vm2073_vm14, %v4172_v34, 0.0 }
0x4b94   :  { %v6077_v52 = vpop.eup %6076  ;;  %v4917_v45 = vmul.f32 %v6075_v51, %v7380_v26  ;;  %v4560_v60 = vsel %vm7272_vm12, %v4559_v11, 0.0 }
0x4b95   :  { %3391 = vadd.xlane.f32.xlu1 %v3390_v31  ;;  %2615 = vadd.xlane.f32.xlu0 %v2614_v39  ;;  %v4919_v7 = vmul.f32 0.6931472, %v6077_v52  ;;  %v4561_v44 = vsel %vm2073_vm14, %v4560_v60, 0.0 }
0x4b96   :  { %v4946_v30 = vsub.f32 0.0, %v4917_v45 }
0x4b97   :  { %v4920_v33 = vsub.f32 %v7373_v46, %v4919_v7 }
0x4b99   :  { %3779 = vadd.xlane.f32.xlu1 %v3778_v22  ;;  %2622 = vadd.xlane.f32.xlu0 %v2621_v24  ;;  %v4947_v56 = vmul.f32 %v4946_v30, %v4920_v33 }
0x4b9b   :  { %v4948_v26 = vsel %vm7365_vm11, %v4947_v56, 0.0 }
0x4b9c   :  { %v4949_v46 = vsel %vm2073_vm14, %v4948_v26, 0.0 }
0x4b9d   :  { %4167 = vadd.xlane.f32.xlu1 %v4166_v36  ;;  %3010 = vadd.xlane.f32.xlu0 %v3009_v54 }
0x4ba1   :  { %4555 = vadd.xlane.f32.xlu1 %v4554_v3  ;;  %3398 = vadd.xlane.f32.xlu0 %v3397_v61 }
0x4ba5   :  { %3786 = vadd.xlane.f32.xlu0 %v3785_v53 }
0x4ba9   :  { %4174 = vadd.xlane.f32.xlu0 %v4173_v29 }
0x4bad   :  { %4562 = vadd.xlane.f32.xlu0 %v4561_v44 }
0x4bb1   :  { %4950 = vadd.xlane.f32.xlu0 %v4949_v46 }
0x4c0e   :  { %v4933_v50 = vpop.xlane.xlu0 %4932 }
0x4c0f   :  { %v4934_v15 = vcvt.f32.s32 %v4933_v50 }
0x4c11   :  { %v4937_v27 = vadd.s32 %v4936_v21, %v4934_v15 }
0x4c13   :  { %vm4938_vm7 = vcmp.eq.s32.totalorder %v6612_v14, %v4937_v27  ;;  %v4954_v37 = vsel %vm4953_vm4, %v4937_v27, %v7315_v28 }
0x4c14   :  { %v5062_v40 = vsel %vm4938_vm7, 1.0, %v7515_v13  ;;  %4955 = vst.msk [vmem:[#allocation7] sm:$0x3] %vm2073_vm14, %v4954_v37 }
0x4c15   :  { %v4941_v35 = vmul.f32 %v5062_v40, %v4920_v33 }
0x4c17   :  { %v4942_v5 = vsel %vm2073_vm14, %v4941_v35, 0.0 }
0x4c18   :  { %4943 = vadd.xlane.f32.xlu1 %v4942_v5 }
0x4c1e   :  { %v2232_v8 = vpop.xlane.xlu0 %2231 }
0x4c22   :  { %v2616_v47 = vpop.xlane.xlu0 %2615 }
0x4c26   :  { %v2623_v31 = vpop.xlane.xlu0 %2622 }
0x4c27   :  { %6137 = shalt.err (!%p6134_p6)
}
0x4c28   :  { %s6138_s20 = scalar_lea.hbm %s7484_s7, 32 }
0x4c29   :  { %p6139_p7 = scmp.ne.s32.totalorder %s7484_s7, %s6138_s20  ;;  %p6142_p8 = scmp.lt.u32.totalorder %s6138_s20, %s7484_s7 }
0x4c2b   :  { %p6144_p9 = pnand %p6142_p8, %p6139_p7 }
0x4c2d   :  { %6147 = shalt.err (!%p6144_p9)
}
0x4c2e   :  { %4968 = dma.vmem_to_hbm [thread:$0]  %s4966_s0, 32, %s7484_s7, [#allocation4]   ;;  %v3011_v14 = vpop.xlane.xlu0 %3010  ;;  %v2624_v39 = vadd.f32 %v2623_v31, %v2232_v8  ;;  %vm4956_vm14 = vcmask 1024   ;;  %v2206_v17 = vpop.xlane.xlu1 %2205 }
0x4c2f   :  { %v2617_v20 = vadd.f32 %v2616_v47, %v2206_v17 }
0x4c30   :  { %v3012_v16 = vadd.f32 %v3011_v14, %v2624_v39 }
0x4c32   :  { %v3399_v13 = vpop.xlane.xlu0 %3398  ;;  %v3004_v22 = vpop.xlane.xlu1 %3003 }
0x4c33   :  { %v3400_v25 = vadd.f32 %v3399_v13, %v3012_v16  ;;  %v3005_v58 = vadd.f32 %v3004_v22, %v2617_v20 }
0x4c36   :  { %v3787_v28 = vpop.xlane.xlu0 %3786  ;;  %v3392_v24 = vpop.xlane.xlu1 %3391 }
0x4c37   :  { %v3788_v32 = vadd.f32 %v3787_v28, %v3400_v25  ;;  %v3393_v6 = vadd.f32 %v3392_v24, %v3005_v58 }
0x4c3a   :  { %v4175_v62 = vpop.xlane.xlu0 %4174  ;;  %v3780_v49 = vpop.xlane.xlu1 %3779 }
0x4c3b   :  { %v4176_v9 = vadd.f32 %v4175_v62, %v3788_v32  ;;  %v3781_v41 = vadd.f32 %v3780_v49, %v3393_v6 }
0x4c3e   :  { %v4563_v19 = vpop.xlane.xlu0 %4562  ;;  %v4168_v38 = vpop.xlane.xlu1 %4167 }
0x4c3f   :  { %v4564_v43 = vadd.f32 %v4563_v19, %v4176_v9  ;;  %v4169_v36 = vadd.f32 %v4168_v38, %v3781_v41 }
0x4c42   :  { %v4951_v23 = vpop.xlane.xlu0 %4950  ;;  %v4556_v55 = vpop.xlane.xlu1 %4555 }
0x4c43   :  { %v4952_v10 = vadd.f32 %v4951_v23, %v4564_v43  ;;  %v4557_v54 = vadd.f32 %v4556_v55, %v4169_v36 }
0x4c45   :  { %4958 = vst.msk [vmem:[%s7486_s9] sm:$0x3] %vm4956_vm14, %v4952_v10 }
0x4ca5   :  { %v4944_v0 = vpop.xlane.xlu1 %4943 }
0x4ca6   :  { %v4945_v48 = vadd.f32 %v4944_v0, %v4557_v54 }
0x4ca8   :  { %4957 = vst.msk [vmem:[%s7485_s8] sm:$0x3] %vm4956_vm14, %v4945_v48 }
0x4ca9   :  { %6152 = dma.done.wait [#allocation4], 32  }
0x4caa   :  { %6153 = vsyncadd [#allocation4], 4294967264 }
0x4cab   :  { %4980 = vsyncpa [#allocation3], 1 }
0x4cac   :  { %4981 = vsyncpa [#allocation6], 1 }
0x4cad   :  { %4982 = vsyncpa [#allocation4], 1 }

</bundles_post_ra>
